<compile_context>
chip_gen: v6e
topology: v6e:2x2x1
jax: 0.10.0
libtpu: 0.0.40
codegen_flags: <defaults>
</compile_context>

<pallas_src>
import functools

import jax
import jax.numpy as jnp
from jax.experimental import pallas as pl
from jax.experimental.pallas import tpu as pltpu

K = 4       # every conv in D is 4x4, padding 1, bias=False
LANE = 128  # TPU lane width; all activation lane dims are padded to this


def _conv_out(n, stride):
    return (n + 2 - K) // stride + 1


def _round_up(n, m=LANE):
    return ((n + m - 1) // m) * m


# ----------------------------------------------------------------------------
# One-time weight -> constant-matrix transforms (outside the jitted forward).
# ----------------------------------------------------------------------------
def _row_select(h_in, h_out, stride):
    """(4, h_out, h_in) 0/1: S[kh, ho, hi] = [hi == stride*ho + kh - 1].
    Out-of-range rows (the zero padding) become all-zero rows.  Exact in bf16."""
    ho = jnp.arange(h_out)[:, None]
    hi = jnp.arange(h_in)[None, :]
    s = jnp.stack([(hi == stride * ho + kh - 1).astype(jnp.float32)
                   for kh in range(K)])
    return s.astype(jnp.bfloat16)


def _col_weight_stacked(weight, w_in, w_out, stride, wc_in_pad, wc_out_pad):
    """Fold kw taps + weights + column gather + lane padding into ONE stacked
    matrix R of shape (4*wc_in_pad, wc_out_pad):
        R[kh*wc_in_pad + wi*c_in + ci, wo*c_out + co] =
            sum_kw weight[co, ci, kh, kw] * [wi == stride*wo + kw - 1]
    Rows/cols belonging to lane padding are zero, so padded lanes stay zero.
    Each entry is a single weight value (or 0), so the bf16 cast is exactly
    the bf16 cast of the original weights."""
    c_out, c_in = weight.shape[0], weight.shape[1]
    wi = jnp.arange(w_in)[:, None]
    wo = jnp.arange(w_out)[None, :]
    sel = jnp.stack([(wi == stride * wo + kw - 1).astype(jnp.float32)
                     for kw in range(K)])                     # (4, w_in, w_out)
    r = jnp.zeros((K * wc_in_pad, wc_out_pad), jnp.float32)
    for kh in range(K):
        blk = jnp.einsum("oik,kvw->viwo", weight[:, :, kh, :], sel)
        blk = blk.reshape(w_in * c_in, w_out * c_out)
        r = r.at[kh * wc_in_pad:kh * wc_in_pad + w_in * c_in,
                 :w_out * c_out].set(blk)
    return r.astype(jnp.bfloat16)


def _chan_indicator(w, c, wc_pad):
    """(wc_pad, wc_pad): B[i, j] = [i, j are real lanes and chan(i) == chan(j)].
    One matmul does the per-channel reduce+broadcast over the interleaved W*C
    lanes.  Kept float32 so InstanceNorm statistics stay exact-f32."""
    lane = jnp.arange(wc_pad)
    real = lane < w * c
    ch = lane % c
    b = real[:, None] & real[None, :] & (ch[:, None] == ch[None, :])
    return b.astype(jnp.float32)


def prepare_params(weights, nc, nf, h, w):
    """Transform raw OIHW conv weights into the kernel's constant matrices."""
    strides = (2, 2, 2, 1, 1)
    chans = (nc, nf, 2 * nf, 4 * nf, 8 * nf, 1)
    mats = {"s": [], "r": [], "b": []}
    dims = []
    hi, wi = h, w
    in_pad = _round_up(w * nc)
    for idx, (stride, wgt) in enumerate(zip(strides, weights)):
        c_in, c_out = chans[idx], chans[idx + 1]
        assert wgt.shape == (c_out, c_in, K, K), wgt.shape
        ho, wo = _conv_out(hi, stride), _conv_out(wi, stride)
        wc_in_pad = _round_up(wi * c_in)
        wc_out_pad = _round_up(wo * c_out)
        mats["s"].append(_row_select(hi, ho, stride))
        mats["r"].append(_col_weight_stacked(wgt, wi, wo, stride,
                                             wc_in_pad, wc_out_pad))
        if idx in (1, 2, 3):                       # layers 2..4 have InstanceNorm
            mats["b"].append(_chan_indicator(wo, c_out, wc_out_pad))
        dims.append((ho, wo, c_out, wc_out_pad))
        hi, wi = ho, wo
    return mats, dims, in_pad


# ----------------------------------------------------------------------------
# The fused Pallas kernel: all 5 layers for `batch_tile` images per grid step.
# ----------------------------------------------------------------------------
def _d_kernel(x_ref,
              s1, r1, s2, r2, s3, r3, s4, r4, s5, r5,
              b2, b3, b4,
              o_ref, *, hw, batch_tile):
    f32, bf16 = jnp.float32, jnp.bfloat16

    def conv(x, s_ref, r_ref):
        # MXU operands in bf16, accumulation in f32.
        xb = x.astype(bf16)
        # 4 small row-gather pushes (S_kh is 0/1 -> result is an exact copy) ...
        taps = [jnp.dot(s_ref[kh], xb, preferred_element_type=f32)
                for kh in range(K)]
        # ... then ONE 4*wc_in-deep contraction instead of 4 dot+add pairs.
        t = jnp.concatenate(taps, axis=1).astype(bf16)     # (h_out, 4*wc_in_pad)
        return jnp.dot(t, r_ref[...], preferred_element_type=f32)

    def lrelu(x):                                          # f32 epilogue
        return jnp.where(x > 0, x, 0.2 * x)

    def inorm(x, b_ref, n_spatial):
        # Single fused (2, wc) @ B reduce+broadcast for [sum(x); sum(x*x)].
        s = jnp.concatenate([jnp.sum(x, axis=0, keepdims=True),
                             jnp.sum(x * x, axis=0, keepdims=True)], axis=0)
        m = jnp.dot(s, b_ref[...], preferred_element_type=f32) * (1.0 / n_spatial)
        mean = m[0:1, :]
        var = jnp.maximum(m[1:2, :] - mean * mean, 0.0)    # clamp: no NaN rsqrt
        return (x - mean) * jax.lax.rsqrt(var + 1e-5)

    for b in range(batch_tile):                            # amortize grid step
        x = x_ref[b]                                       # (H, wc_in_pad) f32
        z = conv(x, s1, r1)                                # layer1
        z = inorm(conv(lrelu(z), s2, r2), b2, hw[0])       # layer2
        z = inorm(conv(lrelu(z), s3, r3), b3, hw[1])       # layer3
        z = inorm(conv(lrelu(z), s4, r4), b4, hw[2])       # layer4
        z = conv(lrelu(z), s5, r5)                         # layer5
        o_ref[b] = (1.0 / (1.0 + jnp.exp(-z))).astype(o_ref.dtype)   # sigmoid


# ----------------------------------------------------------------------------
# Forward wrapper: one pallas_call, only NCHW<->lane-dense reshapes at the edges.
# ----------------------------------------------------------------------------
def d_forward(mats, x_nchw, *, hw, dims, in_pad, batch_tile):
    n, nc, h, w = x_nchw.shape
    assert n % batch_tile == 0, (n, batch_tile)
    h_out, w_out, c_out, wc_out_pad = dims[-1]

    # NCHW -> lane-dense (N, H, W*C), zero-padded to a multiple of 128 lanes.
    x = jnp.transpose(x_nchw, (0, 2, 3, 1)).reshape(n, h, w * nc)
    if in_pad > w * nc:
        x = jnp.pad(x, ((0, 0), (0, 0), (0, in_pad - w * nc)))

    operands = [x]
    in_specs = [pl.BlockSpec((batch_tile, h, in_pad), lambda i: (i, 0, 0))]
    for s_m, r_m in zip(mats["s"], mats["r"]):
        operands += [s_m, r_m]
        in_specs += [pl.BlockSpec(s_m.shape, lambda i: (0, 0, 0)),
                     pl.BlockSpec(r_m.shape, lambda i: (0, 0))]
    for b_m in mats["b"]:
        operands.append(b_m)
        in_specs.append(pl.BlockSpec(b_m.shape, lambda i: (0, 0)))

    out = pl.pallas_call(
        functools.partial(_d_kernel, hw=hw, batch_tile=batch_tile),
        out_shape=jax.ShapeDtypeStruct((n, h_out, wc_out_pad), jnp.float32),
        grid=(n // batch_tile,),
        in_specs=in_specs,
        out_specs=pl.BlockSpec((batch_tile, h_out, wc_out_pad),
                               lambda i: (i, 0, 0)),
        compiler_params=pltpu.CompilerParams(
            dimension_semantics=("parallel",)),    # batch tiles across v7x TCs
    )(*operands)

    out = out[:, :, :w_out * c_out].reshape(n, h_out, w_out, c_out)
    return out.transpose(0, 3, 1, 2)               # -> NCHW


# ----------------------------------------------------------------------------
# Parameter init + pure-JAX references (validation only).
# ----------------------------------------------------------------------------
def init_weights(key, nc, nf):
    shapes = [(nf, nc), (2 * nf, nf), (4 * nf, 2 * nf), (8 * nf, 4 * nf), (1, 8 * nf)]
    keys = jax.random.split(key, len(shapes))
    ws = []
    for k, (c_out, c_in) in zip(keys, shapes):
        fan_in = c_in * K * K
        ws.append(jax.random.normal(k, (c_out, c_in, K, K), jnp.float32)
                  / jnp.sqrt(jnp.float32(fan_in)))
    return ws


def _reference(weights, x, dot_dtype=jnp.float32):
    """Pure-JAX reference.  dot_dtype=bf16 reproduces the kernel's MXU-operand
    rounding (tight structure check); dot_dtype=f32 is the exact PyTorch math."""
    def conv(h_, wgt, stride):
        return jax.lax.conv_general_dilated(
            h_.astype(dot_dtype), wgt.astype(dot_dtype),
            window_strides=(stride, stride), padding=((1, 1), (1, 1)),
            dimension_numbers=("NCHW", "OIHW", "NCHW"),
            preferred_element_type=jnp.float32,
            precision=jax.lax.Precision.HIGHEST)

    def lrelu(h_):
        return jnp.where(h_ > 0, h_, 0.2 * h_)

    def inorm(h_):
        m = jnp.mean(h_, axis=(2, 3), keepdims=True)
        v = jnp.mean((h_ - m) ** 2, axis=(2, 3), keepdims=True)
        return (h_ - m) * jax.lax.rsqrt(v + 1e-5)

    h_ = conv(x, weights[0], 2)
    h_ = inorm(conv(lrelu(h_), weights[1], 2))
    h_ = inorm(conv(lrelu(h_), weights[2], 2))
    h_ = inorm(conv(lrelu(h_), weights[3], 1))
    h_ = conv(lrelu(h_), weights[4], 1)
    return jax.nn.sigmoid(h_)


if __name__ == "__main__":
    # nc=3, nf=4; spatial 32 is the smallest size that keeps the two k4/s1/p1
    # layers non-empty: 32 -> 16 -> 8 -> 4 -> 3 -> 2, output (N, 1, 2, 2).
    nc, nf = 3, 4
    n, h, w = 2, 32, 32
    batch_tile = 2            # whole batch per grid step; for large batches pick
                              # a tile that keeps the grid a multiple of 2 (v7x)

    key = jax.random.PRNGKey(0)
    k_w, k_x = jax.random.split(key)
    weights = init_weights(k_w, nc, nf)
    x = jax.random.normal(k_x, (n, nc, h, w), jnp.float32)   # NCHW like PyTorch

    mats, dims, in_pad = prepare_params(weights, nc, nf, h, w)  # one-time transform
    hw = tuple(float(d[0] * d[1]) for d in dims[1:4])           # norm spatial sizes
    fwd = jax.jit(functools.partial(d_forward, hw=hw, dims=dims,
                                    in_pad=in_pad, batch_tile=batch_tile))

    y = jax.block_until_ready(fwd(mats, x))

    assert y.shape == (n, 1, dims[-1][0], dims[-1][1]), y.shape
    assert bool(jnp.all(jnp.isfinite(y)))

    # Structure check: reference with the same bf16 MXU-operand rounding.
    y_bf = _reference(weights, x, dot_dtype=jnp.bfloat16)
    assert float(jnp.max(jnp.abs(y - y_bf))) < 2e-3, float(jnp.max(jnp.abs(y - y_bf)))

    # Semantics check: full-f32 PyTorch-equivalent math (bf16 operand slack).
    y_f32 = _reference(weights, x, dot_dtype=jnp.float32)
    assert float(jnp.max(jnp.abs(y - y_f32))) < 8e-2, float(jnp.max(jnp.abs(y - y_f32)))

    print("KERNEL_OK")
</pallas_src>

<mosaic_0001>
module attributes {stable_mosaic.version = 11 : i64} {
  func.func @_d_kernel(%arg0: i32, %arg1: memref<2x32x128xf32, #tpu.memory_space<vmem>>, %arg2: memref<4x16x32xbf16, #tpu.memory_space<vmem>>, %arg3: memref<512x128xbf16, #tpu.memory_space<vmem>>, %arg4: memref<4x8x16xbf16, #tpu.memory_space<vmem>>, %arg5: memref<512x128xbf16, #tpu.memory_space<vmem>>, %arg6: memref<4x4x8xbf16, #tpu.memory_space<vmem>>, %arg7: memref<512x128xbf16, #tpu.memory_space<vmem>>, %arg8: memref<4x3x4xbf16, #tpu.memory_space<vmem>>, %arg9: memref<512x128xbf16, #tpu.memory_space<vmem>>, %arg10: memref<4x2x3xbf16, #tpu.memory_space<vmem>>, %arg11: memref<512x128xbf16, #tpu.memory_space<vmem>>, %arg12: memref<128x128xf32, #tpu.memory_space<vmem>>, %arg13: memref<128x128xf32, #tpu.memory_space<vmem>>, %arg14: memref<128x128xf32, #tpu.memory_space<vmem>>, %arg15: memref<2x2x128xf32, #tpu.memory_space<vmem>>) attributes {dimension_semantics = [#tpu.dimension_semantics<parallel>], iteration_bounds = array<i64: 1>, scalar_prefetch = 0 : i64, scratch_operands = 0 : i64, tpu.core_type = #tpu.core_type<tc>, window_params = [{transform_indices = @transform_0, window_bounds = array<i64: 2, 32, 128>}, {pipeline_mode = #tpu.pipeline_mode<synchronous>, transform_indices = @transform_1, window_bounds = array<i64: 4, 16, 32>}, {pipeline_mode = #tpu.pipeline_mode<synchronous>, transform_indices = @transform_2, window_bounds = array<i64: 512, 128>}, {pipeline_mode = #tpu.pipeline_mode<synchronous>, transform_indices = @transform_3, window_bounds = array<i64: 4, 8, 16>}, {pipeline_mode = #tpu.pipeline_mode<synchronous>, transform_indices = @transform_4, window_bounds = array<i64: 512, 128>}, {pipeline_mode = #tpu.pipeline_mode<synchronous>, transform_indices = @transform_5, window_bounds = array<i64: 4, 4, 8>}, {pipeline_mode = #tpu.pipeline_mode<synchronous>, transform_indices = @transform_6, window_bounds = array<i64: 512, 128>}, {pipeline_mode = #tpu.pipeline_mode<synchronous>, transform_indices = @transform_7, window_bounds = array<i64: 4, 3, 4>}, {pipeline_mode = #tpu.pipeline_mode<synchronous>, transform_indices = @transform_8, window_bounds = array<i64: 512, 128>}, {pipeline_mode = #tpu.pipeline_mode<synchronous>, transform_indices = @transform_9, window_bounds = array<i64: 4, 2, 3>}, {pipeline_mode = #tpu.pipeline_mode<synchronous>, transform_indices = @transform_10, window_bounds = array<i64: 512, 128>}, {pipeline_mode = #tpu.pipeline_mode<synchronous>, transform_indices = @transform_11, window_bounds = array<i64: 128, 128>}, {pipeline_mode = #tpu.pipeline_mode<synchronous>, transform_indices = @transform_12, window_bounds = array<i64: 128, 128>}, {pipeline_mode = #tpu.pipeline_mode<synchronous>, transform_indices = @transform_13, window_bounds = array<i64: 128, 128>}, {transform_indices = @transform_14, window_bounds = array<i64: 2, 2, 128>}]} {
    %c0 = arith.constant 0 : index
    %c0_0 = arith.constant 0 : index
    %c0_1 = arith.constant 0 : index
    %0 = vector.load %arg1[%c0, %c0_0, %c0_1] : memref<2x32x128xf32, #tpu.memory_space<vmem>>, vector<1x32x128xf32>
    %1 = vector.shape_cast %0 : vector<1x32x128xf32> to vector<32x128xf32>
    %2 = arith.truncf %1 : vector<32x128xf32> to vector<32x128xbf16>
    %c0_2 = arith.constant 0 : index
    %c0_3 = arith.constant 0 : index
    %c0_4 = arith.constant 0 : index
    %3 = vector.load %arg2[%c0_2, %c0_3, %c0_4] : memref<4x16x32xbf16, #tpu.memory_space<vmem>>, vector<1x16x32xbf16>
    %4 = vector.shape_cast %3 : vector<1x16x32xbf16> to vector<16x32xbf16>
    %cst = arith.constant dense<0.000000e+00> : vector<16x128xf32>
    %5 = tpu.matmul %4, %2, %cst {dimension_numbers = #tpu.dot_dimension_numbers<[1], [0], [0], [1], [0, 0, 1, 1], [], []>} : vector<16x32xbf16>, vector<32x128xbf16>, vector<16x128xf32> -> vector<16x128xf32>
    %c1 = arith.constant 1 : index
    %c0_5 = arith.constant 0 : index
    %c0_6 = arith.constant 0 : index
    %6 = vector.load %arg2[%c1, %c0_5, %c0_6] : memref<4x16x32xbf16, #tpu.memory_space<vmem>>, vector<1x16x32xbf16>
    %7 = vector.shape_cast %6 : vector<1x16x32xbf16> to vector<16x32xbf16>
    %cst_7 = arith.constant dense<0.000000e+00> : vector<16x128xf32>
    %8 = tpu.matmul %7, %2, %cst_7 {dimension_numbers = #tpu.dot_dimension_numbers<[1], [0], [0], [1], [0, 0, 1, 1], [], []>} : vector<16x32xbf16>, vector<32x128xbf16>, vector<16x128xf32> -> vector<16x128xf32>
    %c2 = arith.constant 2 : index
    %c0_8 = arith.constant 0 : index
    %c0_9 = arith.constant 0 : index
    %9 = vector.load %arg2[%c2, %c0_8, %c0_9] : memref<4x16x32xbf16, #tpu.memory_space<vmem>>, vector<1x16x32xbf16>
    %10 = vector.shape_cast %9 : vector<1x16x32xbf16> to vector<16x32xbf16>
    %cst_10 = arith.constant dense<0.000000e+00> : vector<16x128xf32>
    %11 = tpu.matmul %10, %2, %cst_10 {dimension_numbers = #tpu.dot_dimension_numbers<[1], [0], [0], [1], [0, 0, 1, 1], [], []>} : vector<16x32xbf16>, vector<32x128xbf16>, vector<16x128xf32> -> vector<16x128xf32>
    %c3 = arith.constant 3 : index
    %c0_11 = arith.constant 0 : index
    %c0_12 = arith.constant 0 : index
    %12 = vector.load %arg2[%c3, %c0_11, %c0_12] : memref<4x16x32xbf16, #tpu.memory_space<vmem>>, vector<1x16x32xbf16>
    %13 = vector.shape_cast %12 : vector<1x16x32xbf16> to vector<16x32xbf16>
    %cst_13 = arith.constant dense<0.000000e+00> : vector<16x128xf32>
    %14 = tpu.matmul %13, %2, %cst_13 {dimension_numbers = #tpu.dot_dimension_numbers<[1], [0], [0], [1], [0, 0, 1, 1], [], []>} : vector<16x32xbf16>, vector<32x128xbf16>, vector<16x128xf32> -> vector<16x128xf32>
    %15 = tpu.concatenate %5, %8, %11, %14 in 1 : vector<16x128xf32>, vector<16x128xf32>, vector<16x128xf32>, vector<16x128xf32> -> vector<16x512xf32>
    %16 = arith.truncf %15 : vector<16x512xf32> to vector<16x512xbf16>
    %c0_14 = arith.constant 0 : index
    %c0_15 = arith.constant 0 : index
    %17 = vector.load %arg3[%c0_14, %c0_15] : memref<512x128xbf16, #tpu.memory_space<vmem>>, vector<512x128xbf16>
    %cst_16 = arith.constant dense<0.000000e+00> : vector<16x128xf32>
    %18 = tpu.matmul %16, %17, %cst_16 {dimension_numbers = #tpu.dot_dimension_numbers<[1], [0], [0], [1], [0, 0, 1, 1], [], []>} : vector<16x512xbf16>, vector<512x128xbf16>, vector<16x128xf32> -> vector<16x128xf32>
    %cst_17 = arith.constant 0.000000e+00 : f32
    %19 = vector.broadcast %cst_17 : f32 to vector<16x128xf32>
    %20 = arith.cmpf ogt, %18, %19 : vector<16x128xf32>
    %cst_18 = arith.constant 2.000000e-01 : f32
    %21 = vector.broadcast %cst_18 : f32 to vector<16x128xf32>
    %22 = arith.mulf %21, %18 : vector<16x128xf32>
    %23 = arith.select %20, %18, %22 : vector<16x128xi1>, vector<16x128xf32>
    %24 = arith.truncf %23 : vector<16x128xf32> to vector<16x128xbf16>
    %c0_19 = arith.constant 0 : index
    %c0_20 = arith.constant 0 : index
    %c0_21 = arith.constant 0 : index
    %25 = vector.load %arg4[%c0_19, %c0_20, %c0_21] : memref<4x8x16xbf16, #tpu.memory_space<vmem>>, vector<1x8x16xbf16>
    %26 = vector.shape_cast %25 : vector<1x8x16xbf16> to vector<8x16xbf16>
    %cst_22 = arith.constant dense<0.000000e+00> : vector<8x128xf32>
    %27 = tpu.matmul %26, %24, %cst_22 {dimension_numbers = #tpu.dot_dimension_numbers<[1], [0], [0], [1], [0, 0, 1, 1], [], []>} : vector<8x16xbf16>, vector<16x128xbf16>, vector<8x128xf32> -> vector<8x128xf32>
    %c1_23 = arith.constant 1 : index
    %c0_24 = arith.constant 0 : index
    %c0_25 = arith.constant 0 : index
    %28 = vector.load %arg4[%c1_23, %c0_24, %c0_25] : memref<4x8x16xbf16, #tpu.memory_space<vmem>>, vector<1x8x16xbf16>
    %29 = vector.shape_cast %28 : vector<1x8x16xbf16> to vector<8x16xbf16>
    %cst_26 = arith.constant dense<0.000000e+00> : vector<8x128xf32>
    %30 = tpu.matmul %29, %24, %cst_26 {dimension_numbers = #tpu.dot_dimension_numbers<[1], [0], [0], [1], [0, 0, 1, 1], [], []>} : vector<8x16xbf16>, vector<16x128xbf16>, vector<8x128xf32> -> vector<8x128xf32>
    %c2_27 = arith.constant 2 : index
    %c0_28 = arith.constant 0 : index
    %c0_29 = arith.constant 0 : index
    %31 = vector.load %arg4[%c2_27, %c0_28, %c0_29] : memref<4x8x16xbf16, #tpu.memory_space<vmem>>, vector<1x8x16xbf16>
    %32 = vector.shape_cast %31 : vector<1x8x16xbf16> to vector<8x16xbf16>
    %cst_30 = arith.constant dense<0.000000e+00> : vector<8x128xf32>
    %33 = tpu.matmul %32, %24, %cst_30 {dimension_numbers = #tpu.dot_dimension_numbers<[1], [0], [0], [1], [0, 0, 1, 1], [], []>} : vector<8x16xbf16>, vector<16x128xbf16>, vector<8x128xf32> -> vector<8x128xf32>
    %c3_31 = arith.constant 3 : index
    %c0_32 = arith.constant 0 : index
    %c0_33 = arith.constant 0 : index
    %34 = vector.load %arg4[%c3_31, %c0_32, %c0_33] : memref<4x8x16xbf16, #tpu.memory_space<vmem>>, vector<1x8x16xbf16>
    %35 = vector.shape_cast %34 : vector<1x8x16xbf16> to vector<8x16xbf16>
    %cst_34 = arith.constant dense<0.000000e+00> : vector<8x128xf32>
    %36 = tpu.matmul %35, %24, %cst_34 {dimension_numbers = #tpu.dot_dimension_numbers<[1], [0], [0], [1], [0, 0, 1, 1], [], []>} : vector<8x16xbf16>, vector<16x128xbf16>, vector<8x128xf32> -> vector<8x128xf32>
    %37 = tpu.concatenate %27, %30, %33, %36 in 1 : vector<8x128xf32>, vector<8x128xf32>, vector<8x128xf32>, vector<8x128xf32> -> vector<8x512xf32>
    %38 = arith.truncf %37 : vector<8x512xf32> to vector<8x512xbf16>
    %c0_35 = arith.constant 0 : index
    %c0_36 = arith.constant 0 : index
    %39 = vector.load %arg5[%c0_35, %c0_36] : memref<512x128xbf16, #tpu.memory_space<vmem>>, vector<512x128xbf16>
    %cst_37 = arith.constant dense<0.000000e+00> : vector<8x128xf32>
    %40 = tpu.matmul %38, %39, %cst_37 {dimension_numbers = #tpu.dot_dimension_numbers<[1], [0], [0], [1], [0, 0, 1, 1], [], []>} : vector<8x512xbf16>, vector<512x128xbf16>, vector<8x128xf32> -> vector<8x128xf32>
    %cst_38 = arith.constant dense<0.000000e+00> : vector<128xf32>
    %41 = vector.multi_reduction <add>, %40, %cst_38 [0] : vector<8x128xf32> to vector<128xf32>
    %42 = vector.shape_cast %41 : vector<128xf32> to vector<1x128xf32>
    %43 = arith.mulf %40, %40 : vector<8x128xf32>
    %cst_39 = arith.constant dense<0.000000e+00> : vector<128xf32>
    %44 = vector.multi_reduction <add>, %43, %cst_39 [0] : vector<8x128xf32> to vector<128xf32>
    %45 = vector.shape_cast %44 : vector<128xf32> to vector<1x128xf32>
    %46 = tpu.concatenate %42, %45 in 0 : vector<1x128xf32>, vector<1x128xf32> -> vector<2x128xf32>
    %c0_40 = arith.constant 0 : index
    %c0_41 = arith.constant 0 : index
    %47 = vector.load %arg12[%c0_40, %c0_41] : memref<128x128xf32, #tpu.memory_space<vmem>>, vector<128x128xf32>
    %cst_42 = arith.constant dense<0.000000e+00> : vector<2x128xf32>
    %48 = tpu.matmul %46, %47, %cst_42 {dimension_numbers = #tpu.dot_dimension_numbers<[1], [0], [0], [1], [0, 0, 1, 1], [], []>} : vector<2x128xf32>, vector<128x128xf32>, vector<2x128xf32> -> vector<2x128xf32>
    %cst_43 = arith.constant 1.562500e-02 : f32
    %49 = vector.broadcast %cst_43 : f32 to vector<2x128xf32>
    %50 = arith.mulf %48, %49 : vector<2x128xf32>
    %51 = vector.extract_strided_slice %50 {offsets = [0, 0], sizes = [1, 128], strides = [1, 1]} : vector<2x128xf32> to vector<1x128xf32>
    %52 = vector.extract_strided_slice %50 {offsets = [1, 0], sizes = [1, 128], strides = [1, 1]} : vector<2x128xf32> to vector<1x128xf32>
    %53 = arith.mulf %51, %51 : vector<1x128xf32>
    %54 = arith.subf %52, %53 : vector<1x128xf32>
    %cst_44 = arith.constant 0.000000e+00 : f32
    %55 = vector.broadcast %cst_44 : f32 to vector<1x128xf32>
    %56 = arith.maximumf %54, %55 : vector<1x128xf32>
    %57 = vector.broadcast %51 : vector<1x128xf32> to vector<8x128xf32>
    %58 = arith.subf %40, %57 : vector<8x128xf32>
    %cst_45 = arith.constant 9.99999974E-6 : f32
    %59 = vector.broadcast %cst_45 : f32 to vector<1x128xf32>
    %60 = arith.addf %56, %59 : vector<1x128xf32>
    %61 = math.rsqrt %60 : vector<1x128xf32>
    %62 = vector.broadcast %61 : vector<1x128xf32> to vector<8x128xf32>
    %63 = arith.mulf %58, %62 : vector<8x128xf32>
    %cst_46 = arith.constant 0.000000e+00 : f32
    %64 = vector.broadcast %cst_46 : f32 to vector<8x128xf32>
    %65 = arith.cmpf ogt, %63, %64 : vector<8x128xf32>
    %cst_47 = arith.constant 2.000000e-01 : f32
    %66 = vector.broadcast %cst_47 : f32 to vector<8x128xf32>
    %67 = arith.mulf %66, %63 : vector<8x128xf32>
    %68 = arith.select %65, %63, %67 : vector<8x128xi1>, vector<8x128xf32>
    %69 = arith.truncf %68 : vector<8x128xf32> to vector<8x128xbf16>
    %c0_48 = arith.constant 0 : index
    %c0_49 = arith.constant 0 : index
    %c0_50 = arith.constant 0 : index
    %70 = vector.load %arg6[%c0_48, %c0_49, %c0_50] : memref<4x4x8xbf16, #tpu.memory_space<vmem>>, vector<1x4x8xbf16>
    %71 = vector.shape_cast %70 : vector<1x4x8xbf16> to vector<4x8xbf16>
    %cst_51 = arith.constant dense<0.000000e+00> : vector<4x128xf32>
    %72 = tpu.matmul %71, %69, %cst_51 {dimension_numbers = #tpu.dot_dimension_numbers<[1], [0], [0], [1], [0, 0, 1, 1], [], []>} : vector<4x8xbf16>, vector<8x128xbf16>, vector<4x128xf32> -> vector<4x128xf32>
    %c1_52 = arith.constant 1 : index
    %c0_53 = arith.constant 0 : index
    %c0_54 = arith.constant 0 : index
    %73 = vector.load %arg6[%c1_52, %c0_53, %c0_54] : memref<4x4x8xbf16, #tpu.memory_space<vmem>>, vector<1x4x8xbf16>
    %74 = vector.shape_cast %73 : vector<1x4x8xbf16> to vector<4x8xbf16>
    %cst_55 = arith.constant dense<0.000000e+00> : vector<4x128xf32>
    %75 = tpu.matmul %74, %69, %cst_55 {dimension_numbers = #tpu.dot_dimension_numbers<[1], [0], [0], [1], [0, 0, 1, 1], [], []>} : vector<4x8xbf16>, vector<8x128xbf16>, vector<4x128xf32> -> vector<4x128xf32>
    %c2_56 = arith.constant 2 : index
    %c0_57 = arith.constant 0 : index
    %c0_58 = arith.constant 0 : index
    %76 = vector.load %arg6[%c2_56, %c0_57, %c0_58] : memref<4x4x8xbf16, #tpu.memory_space<vmem>>, vector<1x4x8xbf16>
    %77 = vector.shape_cast %76 : vector<1x4x8xbf16> to vector<4x8xbf16>
    %cst_59 = arith.constant dense<0.000000e+00> : vector<4x128xf32>
    %78 = tpu.matmul %77, %69, %cst_59 {dimension_numbers = #tpu.dot_dimension_numbers<[1], [0], [0], [1], [0, 0, 1, 1], [], []>} : vector<4x8xbf16>, vector<8x128xbf16>, vector<4x128xf32> -> vector<4x128xf32>
    %c3_60 = arith.constant 3 : index
    %c0_61 = arith.constant 0 : index
    %c0_62 = arith.constant 0 : index
    %79 = vector.load %arg6[%c3_60, %c0_61, %c0_62] : memref<4x4x8xbf16, #tpu.memory_space<vmem>>, vector<1x4x8xbf16>
    %80 = vector.shape_cast %79 : vector<1x4x8xbf16> to vector<4x8xbf16>
    %cst_63 = arith.constant dense<0.000000e+00> : vector<4x128xf32>
    %81 = tpu.matmul %80, %69, %cst_63 {dimension_numbers = #tpu.dot_dimension_numbers<[1], [0], [0], [1], [0, 0, 1, 1], [], []>} : vector<4x8xbf16>, vector<8x128xbf16>, vector<4x128xf32> -> vector<4x128xf32>
    %82 = tpu.concatenate %72, %75, %78, %81 in 1 : vector<4x128xf32>, vector<4x128xf32>, vector<4x128xf32>, vector<4x128xf32> -> vector<4x512xf32>
    %83 = arith.truncf %82 : vector<4x512xf32> to vector<4x512xbf16>
    %c0_64 = arith.constant 0 : index
    %c0_65 = arith.constant 0 : index
    %84 = vector.load %arg7[%c0_64, %c0_65] : memref<512x128xbf16, #tpu.memory_space<vmem>>, vector<512x128xbf16>
    %cst_66 = arith.constant dense<0.000000e+00> : vector<4x128xf32>
    %85 = tpu.matmul %83, %84, %cst_66 {dimension_numbers = #tpu.dot_dimension_numbers<[1], [0], [0], [1], [0, 0, 1, 1], [], []>} : vector<4x512xbf16>, vector<512x128xbf16>, vector<4x128xf32> -> vector<4x128xf32>
    %cst_67 = arith.constant dense<0.000000e+00> : vector<128xf32>
    %86 = vector.multi_reduction <add>, %85, %cst_67 [0] : vector<4x128xf32> to vector<128xf32>
    %87 = vector.shape_cast %86 : vector<128xf32> to vector<1x128xf32>
    %88 = arith.mulf %85, %85 : vector<4x128xf32>
    %cst_68 = arith.constant dense<0.000000e+00> : vector<128xf32>
    %89 = vector.multi_reduction <add>, %88, %cst_68 [0] : vector<4x128xf32> to vector<128xf32>
    %90 = vector.shape_cast %89 : vector<128xf32> to vector<1x128xf32>
    %91 = tpu.concatenate %87, %90 in 0 : vector<1x128xf32>, vector<1x128xf32> -> vector<2x128xf32>
    %c0_69 = arith.constant 0 : index
    %c0_70 = arith.constant 0 : index
    %92 = vector.load %arg13[%c0_69, %c0_70] : memref<128x128xf32, #tpu.memory_space<vmem>>, vector<128x128xf32>
    %cst_71 = arith.constant dense<0.000000e+00> : vector<2x128xf32>
    %93 = tpu.matmul %91, %92, %cst_71 {dimension_numbers = #tpu.dot_dimension_numbers<[1], [0], [0], [1], [0, 0, 1, 1], [], []>} : vector<2x128xf32>, vector<128x128xf32>, vector<2x128xf32> -> vector<2x128xf32>
    %cst_72 = arith.constant 6.250000e-02 : f32
    %94 = vector.broadcast %cst_72 : f32 to vector<2x128xf32>
    %95 = arith.mulf %93, %94 : vector<2x128xf32>
    %96 = vector.extract_strided_slice %95 {offsets = [0, 0], sizes = [1, 128], strides = [1, 1]} : vector<2x128xf32> to vector<1x128xf32>
    %97 = vector.extract_strided_slice %95 {offsets = [1, 0], sizes = [1, 128], strides = [1, 1]} : vector<2x128xf32> to vector<1x128xf32>
    %98 = arith.mulf %96, %96 : vector<1x128xf32>
    %99 = arith.subf %97, %98 : vector<1x128xf32>
    %cst_73 = arith.constant 0.000000e+00 : f32
    %100 = vector.broadcast %cst_73 : f32 to vector<1x128xf32>
    %101 = arith.maximumf %99, %100 : vector<1x128xf32>
    %102 = vector.broadcast %96 : vector<1x128xf32> to vector<4x128xf32>
    %103 = arith.subf %85, %102 : vector<4x128xf32>
    %cst_74 = arith.constant 9.99999974E-6 : f32
    %104 = vector.broadcast %cst_74 : f32 to vector<1x128xf32>
    %105 = arith.addf %101, %104 : vector<1x128xf32>
    %106 = math.rsqrt %105 : vector<1x128xf32>
    %107 = vector.broadcast %106 : vector<1x128xf32> to vector<4x128xf32>
    %108 = arith.mulf %103, %107 : vector<4x128xf32>
    %cst_75 = arith.constant 0.000000e+00 : f32
    %109 = vector.broadcast %cst_75 : f32 to vector<4x128xf32>
    %110 = arith.cmpf ogt, %108, %109 : vector<4x128xf32>
    %cst_76 = arith.constant 2.000000e-01 : f32
    %111 = vector.broadcast %cst_76 : f32 to vector<4x128xf32>
    %112 = arith.mulf %111, %108 : vector<4x128xf32>
    %113 = arith.select %110, %108, %112 : vector<4x128xi1>, vector<4x128xf32>
    %114 = arith.truncf %113 : vector<4x128xf32> to vector<4x128xbf16>
    %c0_77 = arith.constant 0 : index
    %c0_78 = arith.constant 0 : index
    %c0_79 = arith.constant 0 : index
    %115 = vector.load %arg8[%c0_77, %c0_78, %c0_79] : memref<4x3x4xbf16, #tpu.memory_space<vmem>>, vector<1x3x4xbf16>
    %116 = vector.shape_cast %115 : vector<1x3x4xbf16> to vector<3x4xbf16>
    %cst_80 = arith.constant dense<0.000000e+00> : vector<3x128xf32>
    %117 = tpu.matmul %116, %114, %cst_80 {dimension_numbers = #tpu.dot_dimension_numbers<[1], [0], [0], [1], [0, 0, 1, 1], [], []>} : vector<3x4xbf16>, vector<4x128xbf16>, vector<3x128xf32> -> vector<3x128xf32>
    %c1_81 = arith.constant 1 : index
    %c0_82 = arith.constant 0 : index
    %c0_83 = arith.constant 0 : index
    %118 = vector.load %arg8[%c1_81, %c0_82, %c0_83] : memref<4x3x4xbf16, #tpu.memory_space<vmem>>, vector<1x3x4xbf16>
    %119 = vector.shape_cast %118 : vector<1x3x4xbf16> to vector<3x4xbf16>
    %cst_84 = arith.constant dense<0.000000e+00> : vector<3x128xf32>
    %120 = tpu.matmul %119, %114, %cst_84 {dimension_numbers = #tpu.dot_dimension_numbers<[1], [0], [0], [1], [0, 0, 1, 1], [], []>} : vector<3x4xbf16>, vector<4x128xbf16>, vector<3x128xf32> -> vector<3x128xf32>
    %c2_85 = arith.constant 2 : index
    %c0_86 = arith.constant 0 : index
    %c0_87 = arith.constant 0 : index
    %121 = vector.load %arg8[%c2_85, %c0_86, %c0_87] : memref<4x3x4xbf16, #tpu.memory_space<vmem>>, vector<1x3x4xbf16>
    %122 = vector.shape_cast %121 : vector<1x3x4xbf16> to vector<3x4xbf16>
    %cst_88 = arith.constant dense<0.000000e+00> : vector<3x128xf32>
    %123 = tpu.matmul %122, %114, %cst_88 {dimension_numbers = #tpu.dot_dimension_numbers<[1], [0], [0], [1], [0, 0, 1, 1], [], []>} : vector<3x4xbf16>, vector<4x128xbf16>, vector<3x128xf32> -> vector<3x128xf32>
    %c3_89 = arith.constant 3 : index
    %c0_90 = arith.constant 0 : index
    %c0_91 = arith.constant 0 : index
    %124 = vector.load %arg8[%c3_89, %c0_90, %c0_91] : memref<4x3x4xbf16, #tpu.memory_space<vmem>>, vector<1x3x4xbf16>
    %125 = vector.shape_cast %124 : vector<1x3x4xbf16> to vector<3x4xbf16>
    %cst_92 = arith.constant dense<0.000000e+00> : vector<3x128xf32>
    %126 = tpu.matmul %125, %114, %cst_92 {dimension_numbers = #tpu.dot_dimension_numbers<[1], [0], [0], [1], [0, 0, 1, 1], [], []>} : vector<3x4xbf16>, vector<4x128xbf16>, vector<3x128xf32> -> vector<3x128xf32>
    %127 = tpu.concatenate %117, %120, %123, %126 in 1 : vector<3x128xf32>, vector<3x128xf32>, vector<3x128xf32>, vector<3x128xf32> -> vector<3x512xf32>
    %128 = arith.truncf %127 : vector<3x512xf32> to vector<3x512xbf16>
    %c0_93 = arith.constant 0 : index
    %c0_94 = arith.constant 0 : index
    %129 = vector.load %arg9[%c0_93, %c0_94] : memref<512x128xbf16, #tpu.memory_space<vmem>>, vector<512x128xbf16>
    %cst_95 = arith.constant dense<0.000000e+00> : vector<3x128xf32>
    %130 = tpu.matmul %128, %129, %cst_95 {dimension_numbers = #tpu.dot_dimension_numbers<[1], [0], [0], [1], [0, 0, 1, 1], [], []>} : vector<3x512xbf16>, vector<512x128xbf16>, vector<3x128xf32> -> vector<3x128xf32>
    %cst_96 = arith.constant dense<0.000000e+00> : vector<128xf32>
    %131 = vector.multi_reduction <add>, %130, %cst_96 [0] : vector<3x128xf32> to vector<128xf32>
    %132 = vector.shape_cast %131 : vector<128xf32> to vector<1x128xf32>
    %133 = arith.mulf %130, %130 : vector<3x128xf32>
    %cst_97 = arith.constant dense<0.000000e+00> : vector<128xf32>
    %134 = vector.multi_reduction <add>, %133, %cst_97 [0] : vector<3x128xf32> to vector<128xf32>
    %135 = vector.shape_cast %134 : vector<128xf32> to vector<1x128xf32>
    %136 = tpu.concatenate %132, %135 in 0 : vector<1x128xf32>, vector<1x128xf32> -> vector<2x128xf32>
    %c0_98 = arith.constant 0 : index
    %c0_99 = arith.constant 0 : index
    %137 = vector.load %arg14[%c0_98, %c0_99] : memref<128x128xf32, #tpu.memory_space<vmem>>, vector<128x128xf32>
    %cst_100 = arith.constant dense<0.000000e+00> : vector<2x128xf32>
    %138 = tpu.matmul %136, %137, %cst_100 {dimension_numbers = #tpu.dot_dimension_numbers<[1], [0], [0], [1], [0, 0, 1, 1], [], []>} : vector<2x128xf32>, vector<128x128xf32>, vector<2x128xf32> -> vector<2x128xf32>
    %cst_101 = arith.constant 0.111111112 : f32
    %139 = vector.broadcast %cst_101 : f32 to vector<2x128xf32>
    %140 = arith.mulf %138, %139 : vector<2x128xf32>
    %141 = vector.extract_strided_slice %140 {offsets = [0, 0], sizes = [1, 128], strides = [1, 1]} : vector<2x128xf32> to vector<1x128xf32>
    %142 = vector.extract_strided_slice %140 {offsets = [1, 0], sizes = [1, 128], strides = [1, 1]} : vector<2x128xf32> to vector<1x128xf32>
    %143 = arith.mulf %141, %141 : vector<1x128xf32>
    %144 = arith.subf %142, %143 : vector<1x128xf32>
    %cst_102 = arith.constant 0.000000e+00 : f32
    %145 = vector.broadcast %cst_102 : f32 to vector<1x128xf32>
    %146 = arith.maximumf %144, %145 : vector<1x128xf32>
    %147 = vector.broadcast %141 : vector<1x128xf32> to vector<3x128xf32>
    %148 = arith.subf %130, %147 : vector<3x128xf32>
    %cst_103 = arith.constant 9.99999974E-6 : f32
    %149 = vector.broadcast %cst_103 : f32 to vector<1x128xf32>
    %150 = arith.addf %146, %149 : vector<1x128xf32>
    %151 = math.rsqrt %150 : vector<1x128xf32>
    %152 = vector.broadcast %151 : vector<1x128xf32> to vector<3x128xf32>
    %153 = arith.mulf %148, %152 : vector<3x128xf32>
    %cst_104 = arith.constant 0.000000e+00 : f32
    %154 = vector.broadcast %cst_104 : f32 to vector<3x128xf32>
    %155 = arith.cmpf ogt, %153, %154 : vector<3x128xf32>
    %cst_105 = arith.constant 2.000000e-01 : f32
    %156 = vector.broadcast %cst_105 : f32 to vector<3x128xf32>
    %157 = arith.mulf %156, %153 : vector<3x128xf32>
    %158 = arith.select %155, %153, %157 : vector<3x128xi1>, vector<3x128xf32>
    %159 = arith.truncf %158 : vector<3x128xf32> to vector<3x128xbf16>
    %c0_106 = arith.constant 0 : index
    %c0_107 = arith.constant 0 : index
    %c0_108 = arith.constant 0 : index
    %160 = vector.load %arg10[%c0_106, %c0_107, %c0_108] : memref<4x2x3xbf16, #tpu.memory_space<vmem>>, vector<1x2x3xbf16>
    %161 = vector.shape_cast %160 : vector<1x2x3xbf16> to vector<2x3xbf16>
    %cst_109 = arith.constant dense<0.000000e+00> : vector<2x128xf32>
    %162 = tpu.matmul %161, %159, %cst_109 {dimension_numbers = #tpu.dot_dimension_numbers<[1], [0], [0], [1], [0, 0, 1, 1], [], []>} : vector<2x3xbf16>, vector<3x128xbf16>, vector<2x128xf32> -> vector<2x128xf32>
    %c1_110 = arith.constant 1 : index
    %c0_111 = arith.constant 0 : index
    %c0_112 = arith.constant 0 : index
    %163 = vector.load %arg10[%c1_110, %c0_111, %c0_112] : memref<4x2x3xbf16, #tpu.memory_space<vmem>>, vector<1x2x3xbf16>
    %164 = vector.shape_cast %163 : vector<1x2x3xbf16> to vector<2x3xbf16>
    %cst_113 = arith.constant dense<0.000000e+00> : vector<2x128xf32>
    %165 = tpu.matmul %164, %159, %cst_113 {dimension_numbers = #tpu.dot_dimension_numbers<[1], [0], [0], [1], [0, 0, 1, 1], [], []>} : vector<2x3xbf16>, vector<3x128xbf16>, vector<2x128xf32> -> vector<2x128xf32>
    %c2_114 = arith.constant 2 : index
    %c0_115 = arith.constant 0 : index
    %c0_116 = arith.constant 0 : index
    %166 = vector.load %arg10[%c2_114, %c0_115, %c0_116] : memref<4x2x3xbf16, #tpu.memory_space<vmem>>, vector<1x2x3xbf16>
    %167 = vector.shape_cast %166 : vector<1x2x3xbf16> to vector<2x3xbf16>
    %cst_117 = arith.constant dense<0.000000e+00> : vector<2x128xf32>
    %168 = tpu.matmul %167, %159, %cst_117 {dimension_numbers = #tpu.dot_dimension_numbers<[1], [0], [0], [1], [0, 0, 1, 1], [], []>} : vector<2x3xbf16>, vector<3x128xbf16>, vector<2x128xf32> -> vector<2x128xf32>
    %c3_118 = arith.constant 3 : index
    %c0_119 = arith.constant 0 : index
    %c0_120 = arith.constant 0 : index
    %169 = vector.load %arg10[%c3_118, %c0_119, %c0_120] : memref<4x2x3xbf16, #tpu.memory_space<vmem>>, vector<1x2x3xbf16>
    %170 = vector.shape_cast %169 : vector<1x2x3xbf16> to vector<2x3xbf16>
    %cst_121 = arith.constant dense<0.000000e+00> : vector<2x128xf32>
    %171 = tpu.matmul %170, %159, %cst_121 {dimension_numbers = #tpu.dot_dimension_numbers<[1], [0], [0], [1], [0, 0, 1, 1], [], []>} : vector<2x3xbf16>, vector<3x128xbf16>, vector<2x128xf32> -> vector<2x128xf32>
    %172 = tpu.concatenate %162, %165, %168, %171 in 1 : vector<2x128xf32>, vector<2x128xf32>, vector<2x128xf32>, vector<2x128xf32> -> vector<2x512xf32>
    %173 = arith.truncf %172 : vector<2x512xf32> to vector<2x512xbf16>
    %c0_122 = arith.constant 0 : index
    %c0_123 = arith.constant 0 : index
    %174 = vector.load %arg11[%c0_122, %c0_123] : memref<512x128xbf16, #tpu.memory_space<vmem>>, vector<512x128xbf16>
    %cst_124 = arith.constant dense<0.000000e+00> : vector<2x128xf32>
    %175 = tpu.matmul %173, %174, %cst_124 {dimension_numbers = #tpu.dot_dimension_numbers<[1], [0], [0], [1], [0, 0, 1, 1], [], []>} : vector<2x512xbf16>, vector<512x128xbf16>, vector<2x128xf32> -> vector<2x128xf32>
    %cst_125 = arith.constant 0.000000e+00 : f32
    %176 = vector.broadcast %cst_125 : f32 to vector<2x128xf32>
    %177 = arith.subf %176, %175 : vector<2x128xf32>
    %178 = math.exp %177 : vector<2x128xf32>
    %cst_126 = arith.constant 1.000000e+00 : f32
    %179 = vector.broadcast %cst_126 : f32 to vector<2x128xf32>
    %180 = arith.addf %179, %178 : vector<2x128xf32>
    %cst_127 = arith.constant 1.000000e+00 : f32
    %181 = vector.broadcast %cst_127 : f32 to vector<2x128xf32>
    %182 = arith.divf %181, %180 : vector<2x128xf32>
    %c0_128 = arith.constant 0 : index
    %c0_129 = arith.constant 0 : index
    %c0_130 = arith.constant 0 : index
    %183 = vector.load %arg15[%c0_128, %c0_129, %c0_130] : memref<2x2x128xf32, #tpu.memory_space<vmem>>, vector<1x2x128xf32>
    %184 = vector.shape_cast %183 : vector<1x2x128xf32> to vector<2x128xf32>
    %185 = vector.shape_cast %182 : vector<2x128xf32> to vector<1x2x128xf32>
    tpu.vector_store %arg15[%c0_128, %c0_129, %c0_130], %185 {strides = array<i32>} : memref<2x2x128xf32, #tpu.memory_space<vmem>>, vector<1x2x128xf32>,
    %c1_131 = arith.constant 1 : index
    %c0_132 = arith.constant 0 : index
    %c0_133 = arith.constant 0 : index
    %186 = vector.load %arg1[%c1_131, %c0_132, %c0_133] : memref<2x32x128xf32, #tpu.memory_space<vmem>>, vector<1x32x128xf32>
    %187 = vector.shape_cast %186 : vector<1x32x128xf32> to vector<32x128xf32>
    %188 = arith.truncf %187 : vector<32x128xf32> to vector<32x128xbf16>
    %c0_134 = arith.constant 0 : index
    %c0_135 = arith.constant 0 : index
    %c0_136 = arith.constant 0 : index
    %189 = vector.load %arg2[%c0_134, %c0_135, %c0_136] : memref<4x16x32xbf16, #tpu.memory_space<vmem>>, vector<1x16x32xbf16>
    %190 = vector.shape_cast %189 : vector<1x16x32xbf16> to vector<16x32xbf16>
    %cst_137 = arith.constant dense<0.000000e+00> : vector<16x128xf32>
    %191 = tpu.matmul %190, %188, %cst_137 {dimension_numbers = #tpu.dot_dimension_numbers<[1], [0], [0], [1], [0, 0, 1, 1], [], []>} : vector<16x32xbf16>, vector<32x128xbf16>, vector<16x128xf32> -> vector<16x128xf32>
    %c1_138 = arith.constant 1 : index
    %c0_139 = arith.constant 0 : index
    %c0_140 = arith.constant 0 : index
    %192 = vector.load %arg2[%c1_138, %c0_139, %c0_140] : memref<4x16x32xbf16, #tpu.memory_space<vmem>>, vector<1x16x32xbf16>
    %193 = vector.shape_cast %192 : vector<1x16x32xbf16> to vector<16x32xbf16>
    %cst_141 = arith.constant dense<0.000000e+00> : vector<16x128xf32>
    %194 = tpu.matmul %193, %188, %cst_141 {dimension_numbers = #tpu.dot_dimension_numbers<[1], [0], [0], [1], [0, 0, 1, 1], [], []>} : vector<16x32xbf16>, vector<32x128xbf16>, vector<16x128xf32> -> vector<16x128xf32>
    %c2_142 = arith.constant 2 : index
    %c0_143 = arith.constant 0 : index
    %c0_144 = arith.constant 0 : index
    %195 = vector.load %arg2[%c2_142, %c0_143, %c0_144] : memref<4x16x32xbf16, #tpu.memory_space<vmem>>, vector<1x16x32xbf16>
    %196 = vector.shape_cast %195 : vector<1x16x32xbf16> to vector<16x32xbf16>
    %cst_145 = arith.constant dense<0.000000e+00> : vector<16x128xf32>
    %197 = tpu.matmul %196, %188, %cst_145 {dimension_numbers = #tpu.dot_dimension_numbers<[1], [0], [0], [1], [0, 0, 1, 1], [], []>} : vector<16x32xbf16>, vector<32x128xbf16>, vector<16x128xf32> -> vector<16x128xf32>
    %c3_146 = arith.constant 3 : index
    %c0_147 = arith.constant 0 : index
    %c0_148 = arith.constant 0 : index
    %198 = vector.load %arg2[%c3_146, %c0_147, %c0_148] : memref<4x16x32xbf16, #tpu.memory_space<vmem>>, vector<1x16x32xbf16>
    %199 = vector.shape_cast %198 : vector<1x16x32xbf16> to vector<16x32xbf16>
    %cst_149 = arith.constant dense<0.000000e+00> : vector<16x128xf32>
    %200 = tpu.matmul %199, %188, %cst_149 {dimension_numbers = #tpu.dot_dimension_numbers<[1], [0], [0], [1], [0, 0, 1, 1], [], []>} : vector<16x32xbf16>, vector<32x128xbf16>, vector<16x128xf32> -> vector<16x128xf32>
    %201 = tpu.concatenate %191, %194, %197, %200 in 1 : vector<16x128xf32>, vector<16x128xf32>, vector<16x128xf32>, vector<16x128xf32> -> vector<16x512xf32>
    %202 = arith.truncf %201 : vector<16x512xf32> to vector<16x512xbf16>
    %c0_150 = arith.constant 0 : index
    %c0_151 = arith.constant 0 : index
    %203 = vector.load %arg3[%c0_150, %c0_151] : memref<512x128xbf16, #tpu.memory_space<vmem>>, vector<512x128xbf16>
    %cst_152 = arith.constant dense<0.000000e+00> : vector<16x128xf32>
    %204 = tpu.matmul %202, %203, %cst_152 {dimension_numbers = #tpu.dot_dimension_numbers<[1], [0], [0], [1], [0, 0, 1, 1], [], []>} : vector<16x512xbf16>, vector<512x128xbf16>, vector<16x128xf32> -> vector<16x128xf32>
    %cst_153 = arith.constant 0.000000e+00 : f32
    %205 = vector.broadcast %cst_153 : f32 to vector<16x128xf32>
    %206 = arith.cmpf ogt, %204, %205 : vector<16x128xf32>
    %cst_154 = arith.constant 2.000000e-01 : f32
    %207 = vector.broadcast %cst_154 : f32 to vector<16x128xf32>
    %208 = arith.mulf %207, %204 : vector<16x128xf32>
    %209 = arith.select %206, %204, %208 : vector<16x128xi1>, vector<16x128xf32>
    %210 = arith.truncf %209 : vector<16x128xf32> to vector<16x128xbf16>
    %c0_155 = arith.constant 0 : index
    %c0_156 = arith.constant 0 : index
    %c0_157 = arith.constant 0 : index
    %211 = vector.load %arg4[%c0_155, %c0_156, %c0_157] : memref<4x8x16xbf16, #tpu.memory_space<vmem>>, vector<1x8x16xbf16>
    %212 = vector.shape_cast %211 : vector<1x8x16xbf16> to vector<8x16xbf16>
    %cst_158 = arith.constant dense<0.000000e+00> : vector<8x128xf32>
    %213 = tpu.matmul %212, %210, %cst_158 {dimension_numbers = #tpu.dot_dimension_numbers<[1], [0], [0], [1], [0, 0, 1, 1], [], []>} : vector<8x16xbf16>, vector<16x128xbf16>, vector<8x128xf32> -> vector<8x128xf32>
    %c1_159 = arith.constant 1 : index
    %c0_160 = arith.constant 0 : index
    %c0_161 = arith.constant 0 : index
    %214 = vector.load %arg4[%c1_159, %c0_160, %c0_161] : memref<4x8x16xbf16, #tpu.memory_space<vmem>>, vector<1x8x16xbf16>
    %215 = vector.shape_cast %214 : vector<1x8x16xbf16> to vector<8x16xbf16>
    %cst_162 = arith.constant dense<0.000000e+00> : vector<8x128xf32>
    %216 = tpu.matmul %215, %210, %cst_162 {dimension_numbers = #tpu.dot_dimension_numbers<[1], [0], [0], [1], [0, 0, 1, 1], [], []>} : vector<8x16xbf16>, vector<16x128xbf16>, vector<8x128xf32> -> vector<8x128xf32>
    %c2_163 = arith.constant 2 : index
    %c0_164 = arith.constant 0 : index
    %c0_165 = arith.constant 0 : index
    %217 = vector.load %arg4[%c2_163, %c0_164, %c0_165] : memref<4x8x16xbf16, #tpu.memory_space<vmem>>, vector<1x8x16xbf16>
    %218 = vector.shape_cast %217 : vector<1x8x16xbf16> to vector<8x16xbf16>
    %cst_166 = arith.constant dense<0.000000e+00> : vector<8x128xf32>
    %219 = tpu.matmul %218, %210, %cst_166 {dimension_numbers = #tpu.dot_dimension_numbers<[1], [0], [0], [1], [0, 0, 1, 1], [], []>} : vector<8x16xbf16>, vector<16x128xbf16>, vector<8x128xf32> -> vector<8x128xf32>
    %c3_167 = arith.constant 3 : index
    %c0_168 = arith.constant 0 : index
    %c0_169 = arith.constant 0 : index
    %220 = vector.load %arg4[%c3_167, %c0_168, %c0_169] : memref<4x8x16xbf16, #tpu.memory_space<vmem>>, vector<1x8x16xbf16>
    %221 = vector.shape_cast %220 : vector<1x8x16xbf16> to vector<8x16xbf16>
    %cst_170 = arith.constant dense<0.000000e+00> : vector<8x128xf32>
    %222 = tpu.matmul %221, %210, %cst_170 {dimension_numbers = #tpu.dot_dimension_numbers<[1], [0], [0], [1], [0, 0, 1, 1], [], []>} : vector<8x16xbf16>, vector<16x128xbf16>, vector<8x128xf32> -> vector<8x128xf32>
    %223 = tpu.concatenate %213, %216, %219, %222 in 1 : vector<8x128xf32>, vector<8x128xf32>, vector<8x128xf32>, vector<8x128xf32> -> vector<8x512xf32>
    %224 = arith.truncf %223 : vector<8x512xf32> to vector<8x512xbf16>
    %c0_171 = arith.constant 0 : index
    %c0_172 = arith.constant 0 : index
    %225 = vector.load %arg5[%c0_171, %c0_172] : memref<512x128xbf16, #tpu.memory_space<vmem>>, vector<512x128xbf16>
    %cst_173 = arith.constant dense<0.000000e+00> : vector<8x128xf32>
    %226 = tpu.matmul %224, %225, %cst_173 {dimension_numbers = #tpu.dot_dimension_numbers<[1], [0], [0], [1], [0, 0, 1, 1], [], []>} : vector<8x512xbf16>, vector<512x128xbf16>, vector<8x128xf32> -> vector<8x128xf32>
    %cst_174 = arith.constant dense<0.000000e+00> : vector<128xf32>
    %227 = vector.multi_reduction <add>, %226, %cst_174 [0] : vector<8x128xf32> to vector<128xf32>
    %228 = vector.shape_cast %227 : vector<128xf32> to vector<1x128xf32>
    %229 = arith.mulf %226, %226 : vector<8x128xf32>
    %cst_175 = arith.constant dense<0.000000e+00> : vector<128xf32>
    %230 = vector.multi_reduction <add>, %229, %cst_175 [0] : vector<8x128xf32> to vector<128xf32>
    %231 = vector.shape_cast %230 : vector<128xf32> to vector<1x128xf32>
    %232 = tpu.concatenate %228, %231 in 0 : vector<1x128xf32>, vector<1x128xf32> -> vector<2x128xf32>
    %c0_176 = arith.constant 0 : index
    %c0_177 = arith.constant 0 : index
    %233 = vector.load %arg12[%c0_176, %c0_177] : memref<128x128xf32, #tpu.memory_space<vmem>>, vector<128x128xf32>
    %cst_178 = arith.constant dense<0.000000e+00> : vector<2x128xf32>
    %234 = tpu.matmul %232, %233, %cst_178 {dimension_numbers = #tpu.dot_dimension_numbers<[1], [0], [0], [1], [0, 0, 1, 1], [], []>} : vector<2x128xf32>, vector<128x128xf32>, vector<2x128xf32> -> vector<2x128xf32>
    %cst_179 = arith.constant 1.562500e-02 : f32
    %235 = vector.broadcast %cst_179 : f32 to vector<2x128xf32>
    %236 = arith.mulf %234, %235 : vector<2x128xf32>
    %237 = vector.extract_strided_slice %236 {offsets = [0, 0], sizes = [1, 128], strides = [1, 1]} : vector<2x128xf32> to vector<1x128xf32>
    %238 = vector.extract_strided_slice %236 {offsets = [1, 0], sizes = [1, 128], strides = [1, 1]} : vector<2x128xf32> to vector<1x128xf32>
    %239 = arith.mulf %237, %237 : vector<1x128xf32>
    %240 = arith.subf %238, %239 : vector<1x128xf32>
    %cst_180 = arith.constant 0.000000e+00 : f32
    %241 = vector.broadcast %cst_180 : f32 to vector<1x128xf32>
    %242 = arith.maximumf %240, %241 : vector<1x128xf32>
    %243 = vector.broadcast %237 : vector<1x128xf32> to vector<8x128xf32>
    %244 = arith.subf %226, %243 : vector<8x128xf32>
    %cst_181 = arith.constant 9.99999974E-6 : f32
    %245 = vector.broadcast %cst_181 : f32 to vector<1x128xf32>
    %246 = arith.addf %242, %245 : vector<1x128xf32>
    %247 = math.rsqrt %246 : vector<1x128xf32>
    %248 = vector.broadcast %247 : vector<1x128xf32> to vector<8x128xf32>
    %249 = arith.mulf %244, %248 : vector<8x128xf32>
    %cst_182 = arith.constant 0.000000e+00 : f32
    %250 = vector.broadcast %cst_182 : f32 to vector<8x128xf32>
    %251 = arith.cmpf ogt, %249, %250 : vector<8x128xf32>
    %cst_183 = arith.constant 2.000000e-01 : f32
    %252 = vector.broadcast %cst_183 : f32 to vector<8x128xf32>
    %253 = arith.mulf %252, %249 : vector<8x128xf32>
    %254 = arith.select %251, %249, %253 : vector<8x128xi1>, vector<8x128xf32>
    %255 = arith.truncf %254 : vector<8x128xf32> to vector<8x128xbf16>
    %c0_184 = arith.constant 0 : index
    %c0_185 = arith.constant 0 : index
    %c0_186 = arith.constant 0 : index
    %256 = vector.load %arg6[%c0_184, %c0_185, %c0_186] : memref<4x4x8xbf16, #tpu.memory_space<vmem>>, vector<1x4x8xbf16>
    %257 = vector.shape_cast %256 : vector<1x4x8xbf16> to vector<4x8xbf16>
    %cst_187 = arith.constant dense<0.000000e+00> : vector<4x128xf32>
    %258 = tpu.matmul %257, %255, %cst_187 {dimension_numbers = #tpu.dot_dimension_numbers<[1], [0], [0], [1], [0, 0, 1, 1], [], []>} : vector<4x8xbf16>, vector<8x128xbf16>, vector<4x128xf32> -> vector<4x128xf32>
    %c1_188 = arith.constant 1 : index
    %c0_189 = arith.constant 0 : index
    %c0_190 = arith.constant 0 : index
    %259 = vector.load %arg6[%c1_188, %c0_189, %c0_190] : memref<4x4x8xbf16, #tpu.memory_space<vmem>>, vector<1x4x8xbf16>
    %260 = vector.shape_cast %259 : vector<1x4x8xbf16> to vector<4x8xbf16>
    %cst_191 = arith.constant dense<0.000000e+00> : vector<4x128xf32>
    %261 = tpu.matmul %260, %255, %cst_191 {dimension_numbers = #tpu.dot_dimension_numbers<[1], [0], [0], [1], [0, 0, 1, 1], [], []>} : vector<4x8xbf16>, vector<8x128xbf16>, vector<4x128xf32> -> vector<4x128xf32>
    %c2_192 = arith.constant 2 : index
    %c0_193 = arith.constant 0 : index
    %c0_194 = arith.constant 0 : index
    %262 = vector.load %arg6[%c2_192, %c0_193, %c0_194] : memref<4x4x8xbf16, #tpu.memory_space<vmem>>, vector<1x4x8xbf16>
    %263 = vector.shape_cast %262 : vector<1x4x8xbf16> to vector<4x8xbf16>
    %cst_195 = arith.constant dense<0.000000e+00> : vector<4x128xf32>
    %264 = tpu.matmul %263, %255, %cst_195 {dimension_numbers = #tpu.dot_dimension_numbers<[1], [0], [0], [1], [0, 0, 1, 1], [], []>} : vector<4x8xbf16>, vector<8x128xbf16>, vector<4x128xf32> -> vector<4x128xf32>
    %c3_196 = arith.constant 3 : index
    %c0_197 = arith.constant 0 : index
    %c0_198 = arith.constant 0 : index
    %265 = vector.load %arg6[%c3_196, %c0_197, %c0_198] : memref<4x4x8xbf16, #tpu.memory_space<vmem>>, vector<1x4x8xbf16>
    %266 = vector.shape_cast %265 : vector<1x4x8xbf16> to vector<4x8xbf16>
    %cst_199 = arith.constant dense<0.000000e+00> : vector<4x128xf32>
    %267 = tpu.matmul %266, %255, %cst_199 {dimension_numbers = #tpu.dot_dimension_numbers<[1], [0], [0], [1], [0, 0, 1, 1], [], []>} : vector<4x8xbf16>, vector<8x128xbf16>, vector<4x128xf32> -> vector<4x128xf32>
    %268 = tpu.concatenate %258, %261, %264, %267 in 1 : vector<4x128xf32>, vector<4x128xf32>, vector<4x128xf32>, vector<4x128xf32> -> vector<4x512xf32>
    %269 = arith.truncf %268 : vector<4x512xf32> to vector<4x512xbf16>
    %c0_200 = arith.constant 0 : index
    %c0_201 = arith.constant 0 : index
    %270 = vector.load %arg7[%c0_200, %c0_201] : memref<512x128xbf16, #tpu.memory_space<vmem>>, vector<512x128xbf16>
    %cst_202 = arith.constant dense<0.000000e+00> : vector<4x128xf32>
    %271 = tpu.matmul %269, %270, %cst_202 {dimension_numbers = #tpu.dot_dimension_numbers<[1], [0], [0], [1], [0, 0, 1, 1], [], []>} : vector<4x512xbf16>, vector<512x128xbf16>, vector<4x128xf32> -> vector<4x128xf32>
    %cst_203 = arith.constant dense<0.000000e+00> : vector<128xf32>
    %272 = vector.multi_reduction <add>, %271, %cst_203 [0] : vector<4x128xf32> to vector<128xf32>
    %273 = vector.shape_cast %272 : vector<128xf32> to vector<1x128xf32>
    %274 = arith.mulf %271, %271 : vector<4x128xf32>
    %cst_204 = arith.constant dense<0.000000e+00> : vector<128xf32>
    %275 = vector.multi_reduction <add>, %274, %cst_204 [0] : vector<4x128xf32> to vector<128xf32>
    %276 = vector.shape_cast %275 : vector<128xf32> to vector<1x128xf32>
    %277 = tpu.concatenate %273, %276 in 0 : vector<1x128xf32>, vector<1x128xf32> -> vector<2x128xf32>
    %c0_205 = arith.constant 0 : index
    %c0_206 = arith.constant 0 : index
    %278 = vector.load %arg13[%c0_205, %c0_206] : memref<128x128xf32, #tpu.memory_space<vmem>>, vector<128x128xf32>
    %cst_207 = arith.constant dense<0.000000e+00> : vector<2x128xf32>
    %279 = tpu.matmul %277, %278, %cst_207 {dimension_numbers = #tpu.dot_dimension_numbers<[1], [0], [0], [1], [0, 0, 1, 1], [], []>} : vector<2x128xf32>, vector<128x128xf32>, vector<2x128xf32> -> vector<2x128xf32>
    %cst_208 = arith.constant 6.250000e-02 : f32
    %280 = vector.broadcast %cst_208 : f32 to vector<2x128xf32>
    %281 = arith.mulf %279, %280 : vector<2x128xf32>
    %282 = vector.extract_strided_slice %281 {offsets = [0, 0], sizes = [1, 128], strides = [1, 1]} : vector<2x128xf32> to vector<1x128xf32>
    %283 = vector.extract_strided_slice %281 {offsets = [1, 0], sizes = [1, 128], strides = [1, 1]} : vector<2x128xf32> to vector<1x128xf32>
    %284 = arith.mulf %282, %282 : vector<1x128xf32>
    %285 = arith.subf %283, %284 : vector<1x128xf32>
    %cst_209 = arith.constant 0.000000e+00 : f32
    %286 = vector.broadcast %cst_209 : f32 to vector<1x128xf32>
    %287 = arith.maximumf %285, %286 : vector<1x128xf32>
    %288 = vector.broadcast %282 : vector<1x128xf32> to vector<4x128xf32>
    %289 = arith.subf %271, %288 : vector<4x128xf32>
    %cst_210 = arith.constant 9.99999974E-6 : f32
    %290 = vector.broadcast %cst_210 : f32 to vector<1x128xf32>
    %291 = arith.addf %287, %290 : vector<1x128xf32>
    %292 = math.rsqrt %291 : vector<1x128xf32>
    %293 = vector.broadcast %292 : vector<1x128xf32> to vector<4x128xf32>
    %294 = arith.mulf %289, %293 : vector<4x128xf32>
    %cst_211 = arith.constant 0.000000e+00 : f32
    %295 = vector.broadcast %cst_211 : f32 to vector<4x128xf32>
    %296 = arith.cmpf ogt, %294, %295 : vector<4x128xf32>
    %cst_212 = arith.constant 2.000000e-01 : f32
    %297 = vector.broadcast %cst_212 : f32 to vector<4x128xf32>
    %298 = arith.mulf %297, %294 : vector<4x128xf32>
    %299 = arith.select %296, %294, %298 : vector<4x128xi1>, vector<4x128xf32>
    %300 = arith.truncf %299 : vector<4x128xf32> to vector<4x128xbf16>
    %c0_213 = arith.constant 0 : index
    %c0_214 = arith.constant 0 : index
    %c0_215 = arith.constant 0 : index
    %301 = vector.load %arg8[%c0_213, %c0_214, %c0_215] : memref<4x3x4xbf16, #tpu.memory_space<vmem>>, vector<1x3x4xbf16>
    %302 = vector.shape_cast %301 : vector<1x3x4xbf16> to vector<3x4xbf16>
    %cst_216 = arith.constant dense<0.000000e+00> : vector<3x128xf32>
    %303 = tpu.matmul %302, %300, %cst_216 {dimension_numbers = #tpu.dot_dimension_numbers<[1], [0], [0], [1], [0, 0, 1, 1], [], []>} : vector<3x4xbf16>, vector<4x128xbf16>, vector<3x128xf32> -> vector<3x128xf32>
    %c1_217 = arith.constant 1 : index
    %c0_218 = arith.constant 0 : index
    %c0_219 = arith.constant 0 : index
    %304 = vector.load %arg8[%c1_217, %c0_218, %c0_219] : memref<4x3x4xbf16, #tpu.memory_space<vmem>>, vector<1x3x4xbf16>
    %305 = vector.shape_cast %304 : vector<1x3x4xbf16> to vector<3x4xbf16>
    %cst_220 = arith.constant dense<0.000000e+00> : vector<3x128xf32>
    %306 = tpu.matmul %305, %300, %cst_220 {dimension_numbers = #tpu.dot_dimension_numbers<[1], [0], [0], [1], [0, 0, 1, 1], [], []>} : vector<3x4xbf16>, vector<4x128xbf16>, vector<3x128xf32> -> vector<3x128xf32>
    %c2_221 = arith.constant 2 : index
    %c0_222 = arith.constant 0 : index
    %c0_223 = arith.constant 0 : index
    %307 = vector.load %arg8[%c2_221, %c0_222, %c0_223] : memref<4x3x4xbf16, #tpu.memory_space<vmem>>, vector<1x3x4xbf16>
    %308 = vector.shape_cast %307 : vector<1x3x4xbf16> to vector<3x4xbf16>
    %cst_224 = arith.constant dense<0.000000e+00> : vector<3x128xf32>
    %309 = tpu.matmul %308, %300, %cst_224 {dimension_numbers = #tpu.dot_dimension_numbers<[1], [0], [0], [1], [0, 0, 1, 1], [], []>} : vector<3x4xbf16>, vector<4x128xbf16>, vector<3x128xf32> -> vector<3x128xf32>
    %c3_225 = arith.constant 3 : index
    %c0_226 = arith.constant 0 : index
    %c0_227 = arith.constant 0 : index
    %310 = vector.load %arg8[%c3_225, %c0_226, %c0_227] : memref<4x3x4xbf16, #tpu.memory_space<vmem>>, vector<1x3x4xbf16>
    %311 = vector.shape_cast %310 : vector<1x3x4xbf16> to vector<3x4xbf16>
    %cst_228 = arith.constant dense<0.000000e+00> : vector<3x128xf32>
    %312 = tpu.matmul %311, %300, %cst_228 {dimension_numbers = #tpu.dot_dimension_numbers<[1], [0], [0], [1], [0, 0, 1, 1], [], []>} : vector<3x4xbf16>, vector<4x128xbf16>, vector<3x128xf32> -> vector<3x128xf32>
    %313 = tpu.concatenate %303, %306, %309, %312 in 1 : vector<3x128xf32>, vector<3x128xf32>, vector<3x128xf32>, vector<3x128xf32> -> vector<3x512xf32>
    %314 = arith.truncf %313 : vector<3x512xf32> to vector<3x512xbf16>
    %c0_229 = arith.constant 0 : index
    %c0_230 = arith.constant 0 : index
    %315 = vector.load %arg9[%c0_229, %c0_230] : memref<512x128xbf16, #tpu.memory_space<vmem>>, vector<512x128xbf16>
    %cst_231 = arith.constant dense<0.000000e+00> : vector<3x128xf32>
    %316 = tpu.matmul %314, %315, %cst_231 {dimension_numbers = #tpu.dot_dimension_numbers<[1], [0], [0], [1], [0, 0, 1, 1], [], []>} : vector<3x512xbf16>, vector<512x128xbf16>, vector<3x128xf32> -> vector<3x128xf32>
    %cst_232 = arith.constant dense<0.000000e+00> : vector<128xf32>
    %317 = vector.multi_reduction <add>, %316, %cst_232 [0] : vector<3x128xf32> to vector<128xf32>
    %318 = vector.shape_cast %317 : vector<128xf32> to vector<1x128xf32>
    %319 = arith.mulf %316, %316 : vector<3x128xf32>
    %cst_233 = arith.constant dense<0.000000e+00> : vector<128xf32>
    %320 = vector.multi_reduction <add>, %319, %cst_233 [0] : vector<3x128xf32> to vector<128xf32>
    %321 = vector.shape_cast %320 : vector<128xf32> to vector<1x128xf32>
    %322 = tpu.concatenate %318, %321 in 0 : vector<1x128xf32>, vector<1x128xf32> -> vector<2x128xf32>
    %c0_234 = arith.constant 0 : index
    %c0_235 = arith.constant 0 : index
    %323 = vector.load %arg14[%c0_234, %c0_235] : memref<128x128xf32, #tpu.memory_space<vmem>>, vector<128x128xf32>
    %cst_236 = arith.constant dense<0.000000e+00> : vector<2x128xf32>
    %324 = tpu.matmul %322, %323, %cst_236 {dimension_numbers = #tpu.dot_dimension_numbers<[1], [0], [0], [1], [0, 0, 1, 1], [], []>} : vector<2x128xf32>, vector<128x128xf32>, vector<2x128xf32> -> vector<2x128xf32>
    %cst_237 = arith.constant 0.111111112 : f32
    %325 = vector.broadcast %cst_237 : f32 to vector<2x128xf32>
    %326 = arith.mulf %324, %325 : vector<2x128xf32>
    %327 = vector.extract_strided_slice %326 {offsets = [0, 0], sizes = [1, 128], strides = [1, 1]} : vector<2x128xf32> to vector<1x128xf32>
    %328 = vector.extract_strided_slice %326 {offsets = [1, 0], sizes = [1, 128], strides = [1, 1]} : vector<2x128xf32> to vector<1x128xf32>
    %329 = arith.mulf %327, %327 : vector<1x128xf32>
    %330 = arith.subf %328, %329 : vector<1x128xf32>
    %cst_238 = arith.constant 0.000000e+00 : f32
    %331 = vector.broadcast %cst_238 : f32 to vector<1x128xf32>
    %332 = arith.maximumf %330, %331 : vector<1x128xf32>
    %333 = vector.broadcast %327 : vector<1x128xf32> to vector<3x128xf32>
    %334 = arith.subf %316, %333 : vector<3x128xf32>
    %cst_239 = arith.constant 9.99999974E-6 : f32
    %335 = vector.broadcast %cst_239 : f32 to vector<1x128xf32>
    %336 = arith.addf %332, %335 : vector<1x128xf32>
    %337 = math.rsqrt %336 : vector<1x128xf32>
    %338 = vector.broadcast %337 : vector<1x128xf32> to vector<3x128xf32>
    %339 = arith.mulf %334, %338 : vector<3x128xf32>
    %cst_240 = arith.constant 0.000000e+00 : f32
    %340 = vector.broadcast %cst_240 : f32 to vector<3x128xf32>
    %341 = arith.cmpf ogt, %339, %340 : vector<3x128xf32>
    %cst_241 = arith.constant 2.000000e-01 : f32
    %342 = vector.broadcast %cst_241 : f32 to vector<3x128xf32>
    %343 = arith.mulf %342, %339 : vector<3x128xf32>
    %344 = arith.select %341, %339, %343 : vector<3x128xi1>, vector<3x128xf32>
    %345 = arith.truncf %344 : vector<3x128xf32> to vector<3x128xbf16>
    %c0_242 = arith.constant 0 : index
    %c0_243 = arith.constant 0 : index
    %c0_244 = arith.constant 0 : index
    %346 = vector.load %arg10[%c0_242, %c0_243, %c0_244] : memref<4x2x3xbf16, #tpu.memory_space<vmem>>, vector<1x2x3xbf16>
    %347 = vector.shape_cast %346 : vector<1x2x3xbf16> to vector<2x3xbf16>
    %cst_245 = arith.constant dense<0.000000e+00> : vector<2x128xf32>
    %348 = tpu.matmul %347, %345, %cst_245 {dimension_numbers = #tpu.dot_dimension_numbers<[1], [0], [0], [1], [0, 0, 1, 1], [], []>} : vector<2x3xbf16>, vector<3x128xbf16>, vector<2x128xf32> -> vector<2x128xf32>
    %c1_246 = arith.constant 1 : index
    %c0_247 = arith.constant 0 : index
    %c0_248 = arith.constant 0 : index
    %349 = vector.load %arg10[%c1_246, %c0_247, %c0_248] : memref<4x2x3xbf16, #tpu.memory_space<vmem>>, vector<1x2x3xbf16>
    %350 = vector.shape_cast %349 : vector<1x2x3xbf16> to vector<2x3xbf16>
    %cst_249 = arith.constant dense<0.000000e+00> : vector<2x128xf32>
    %351 = tpu.matmul %350, %345, %cst_249 {dimension_numbers = #tpu.dot_dimension_numbers<[1], [0], [0], [1], [0, 0, 1, 1], [], []>} : vector<2x3xbf16>, vector<3x128xbf16>, vector<2x128xf32> -> vector<2x128xf32>
    %c2_250 = arith.constant 2 : index
    %c0_251 = arith.constant 0 : index
    %c0_252 = arith.constant 0 : index
    %352 = vector.load %arg10[%c2_250, %c0_251, %c0_252] : memref<4x2x3xbf16, #tpu.memory_space<vmem>>, vector<1x2x3xbf16>
    %353 = vector.shape_cast %352 : vector<1x2x3xbf16> to vector<2x3xbf16>
    %cst_253 = arith.constant dense<0.000000e+00> : vector<2x128xf32>
    %354 = tpu.matmul %353, %345, %cst_253 {dimension_numbers = #tpu.dot_dimension_numbers<[1], [0], [0], [1], [0, 0, 1, 1], [], []>} : vector<2x3xbf16>, vector<3x128xbf16>, vector<2x128xf32> -> vector<2x128xf32>
    %c3_254 = arith.constant 3 : index
    %c0_255 = arith.constant 0 : index
    %c0_256 = arith.constant 0 : index
    %355 = vector.load %arg10[%c3_254, %c0_255, %c0_256] : memref<4x2x3xbf16, #tpu.memory_space<vmem>>, vector<1x2x3xbf16>
    %356 = vector.shape_cast %355 : vector<1x2x3xbf16> to vector<2x3xbf16>
    %cst_257 = arith.constant dense<0.000000e+00> : vector<2x128xf32>
    %357 = tpu.matmul %356, %345, %cst_257 {dimension_numbers = #tpu.dot_dimension_numbers<[1], [0], [0], [1], [0, 0, 1, 1], [], []>} : vector<2x3xbf16>, vector<3x128xbf16>, vector<2x128xf32> -> vector<2x128xf32>
    %358 = tpu.concatenate %348, %351, %354, %357 in 1 : vector<2x128xf32>, vector<2x128xf32>, vector<2x128xf32>, vector<2x128xf32> -> vector<2x512xf32>
    %359 = arith.truncf %358 : vector<2x512xf32> to vector<2x512xbf16>
    %c0_258 = arith.constant 0 : index
    %c0_259 = arith.constant 0 : index
    %360 = vector.load %arg11[%c0_258, %c0_259] : memref<512x128xbf16, #tpu.memory_space<vmem>>, vector<512x128xbf16>
    %cst_260 = arith.constant dense<0.000000e+00> : vector<2x128xf32>
    %361 = tpu.matmul %359, %360, %cst_260 {dimension_numbers = #tpu.dot_dimension_numbers<[1], [0], [0], [1], [0, 0, 1, 1], [], []>} : vector<2x512xbf16>, vector<512x128xbf16>, vector<2x128xf32> -> vector<2x128xf32>
    %cst_261 = arith.constant 0.000000e+00 : f32
    %362 = vector.broadcast %cst_261 : f32 to vector<2x128xf32>
    %363 = arith.subf %362, %361 : vector<2x128xf32>
    %364 = math.exp %363 : vector<2x128xf32>
    %cst_262 = arith.constant 1.000000e+00 : f32
    %365 = vector.broadcast %cst_262 : f32 to vector<2x128xf32>
    %366 = arith.addf %365, %364 : vector<2x128xf32>
    %cst_263 = arith.constant 1.000000e+00 : f32
    %367 = vector.broadcast %cst_263 : f32 to vector<2x128xf32>
    %368 = arith.divf %367, %366 : vector<2x128xf32>
    %c1_264 = arith.constant 1 : index
    %c0_265 = arith.constant 0 : index
    %c0_266 = arith.constant 0 : index
    %369 = vector.load %arg15[%c1_264, %c0_265, %c0_266] : memref<2x2x128xf32, #tpu.memory_space<vmem>>, vector<1x2x128xf32>
    %370 = vector.shape_cast %369 : vector<1x2x128xf32> to vector<2x128xf32>
    %371 = vector.shape_cast %368 : vector<2x128xf32> to vector<1x2x128xf32>
    tpu.vector_store %arg15[%c1_264, %c0_265, %c0_266], %371 {strides = array<i32>} : memref<2x2x128xf32, #tpu.memory_space<vmem>>, vector<1x2x128xf32>,
    return
  }
  func.func @transform_0(%arg0: i32) -> (i32, i32, i32) {
    %c0_i32 = arith.constant 0 : i32
    %c0_i32_0 = arith.constant 0 : i32
    %c0_i32_1 = arith.constant 0 : i32
    return %arg0, %c0_i32, %c0_i32_0 : i32, i32, i32
  }
  func.func @transform_1(%arg0: i32) -> (i32, i32, i32) {
    %c0_i32 = arith.constant 0 : i32
    %c0_i32_0 = arith.constant 0 : i32
    %c0_i32_1 = arith.constant 0 : i32
    %c0_i32_2 = arith.constant 0 : i32
    return %c0_i32, %c0_i32_0, %c0_i32_1 : i32, i32, i32
  }
  func.func @transform_2(%arg0: i32) -> (i32, i32) {
    %c0_i32 = arith.constant 0 : i32
    %c0_i32_0 = arith.constant 0 : i32
    %c0_i32_1 = arith.constant 0 : i32
    return %c0_i32, %c0_i32_0 : i32, i32
  }
  func.func @transform_3(%arg0: i32) -> (i32, i32, i32) {
    %c0_i32 = arith.constant 0 : i32
    %c0_i32_0 = arith.constant 0 : i32
    %c0_i32_1 = arith.constant 0 : i32
    %c0_i32_2 = arith.constant 0 : i32
    return %c0_i32, %c0_i32_0, %c0_i32_1 : i32, i32, i32
  }
  func.func @transform_4(%arg0: i32) -> (i32, i32) {
    %c0_i32 = arith.constant 0 : i32
    %c0_i32_0 = arith.constant 0 : i32
    %c0_i32_1 = arith.constant 0 : i32
    return %c0_i32, %c0_i32_0 : i32, i32
  }
  func.func @transform_5(%arg0: i32) -> (i32, i32, i32) {
    %c0_i32 = arith.constant 0 : i32
    %c0_i32_0 = arith.constant 0 : i32
    %c0_i32_1 = arith.constant 0 : i32
    %c0_i32_2 = arith.constant 0 : i32
    return %c0_i32, %c0_i32_0, %c0_i32_1 : i32, i32, i32
  }
  func.func @transform_6(%arg0: i32) -> (i32, i32) {
    %c0_i32 = arith.constant 0 : i32
    %c0_i32_0 = arith.constant 0 : i32
    %c0_i32_1 = arith.constant 0 : i32
    return %c0_i32, %c0_i32_0 : i32, i32
  }
  func.func @transform_7(%arg0: i32) -> (i32, i32, i32) {
    %c0_i32 = arith.constant 0 : i32
    %c0_i32_0 = arith.constant 0 : i32
    %c0_i32_1 = arith.constant 0 : i32
    %c0_i32_2 = arith.constant 0 : i32
    return %c0_i32, %c0_i32_0, %c0_i32_1 : i32, i32, i32
  }
  func.func @transform_8(%arg0: i32) -> (i32, i32) {
    %c0_i32 = arith.constant 0 : i32
    %c0_i32_0 = arith.constant 0 : i32
    %c0_i32_1 = arith.constant 0 : i32
    return %c0_i32, %c0_i32_0 : i32, i32
  }
  func.func @transform_9(%arg0: i32) -> (i32, i32, i32) {
    %c0_i32 = arith.constant 0 : i32
    %c0_i32_0 = arith.constant 0 : i32
    %c0_i32_1 = arith.constant 0 : i32
    %c0_i32_2 = arith.constant 0 : i32
    return %c0_i32, %c0_i32_0, %c0_i32_1 : i32, i32, i32
  }
  func.func @transform_10(%arg0: i32) -> (i32, i32) {
    %c0_i32 = arith.constant 0 : i32
    %c0_i32_0 = arith.constant 0 : i32
    %c0_i32_1 = arith.constant 0 : i32
    return %c0_i32, %c0_i32_0 : i32, i32
  }
  func.func @transform_11(%arg0: i32) -> (i32, i32) {
    %c0_i32 = arith.constant 0 : i32
    %c0_i32_0 = arith.constant 0 : i32
    %c0_i32_1 = arith.constant 0 : i32
    return %c0_i32, %c0_i32_0 : i32, i32
  }
  func.func @transform_12(%arg0: i32) -> (i32, i32) {
    %c0_i32 = arith.constant 0 : i32
    %c0_i32_0 = arith.constant 0 : i32
    %c0_i32_1 = arith.constant 0 : i32
    return %c0_i32, %c0_i32_0 : i32, i32
  }
  func.func @transform_13(%arg0: i32) -> (i32, i32) {
    %c0_i32 = arith.constant 0 : i32
    %c0_i32_0 = arith.constant 0 : i32
    %c0_i32_1 = arith.constant 0 : i32
    return %c0_i32, %c0_i32_0 : i32, i32
  }
  func.func @transform_14(%arg0: i32) -> (i32, i32, i32) {
    %c0_i32 = arith.constant 0 : i32
    %c0_i32_0 = arith.constant 0 : i32
    %c0_i32_1 = arith.constant 0 : i32
    return %arg0, %c0_i32, %c0_i32_0 : i32, i32, i32
  }
}

</mosaic_0001>

<bundles_post_ra>
// kernel: d_forward.1
= control target key start
LH: loop header
LB: loop body
LE: loop exit
PB: predicated region body
PF: predicated region fallthrough
CT: control target
= control target key end

     0   :  { %19 = vsyncpa [#allocation3], 0  ;;  %s9326_s0 = inlined_call_operand.vmem [shape: f32[2,32,128], index: 0, kind: input, shape index: {}]   ;;  %s9327_s1 = inlined_call_operand.hbm [shape: bf16[4,16,32], index: 1, kind: input, shape index: {}]   ;;  %s9328_s2 = inlined_call_operand.vmem [shape: bf16[512,128], index: 2, kind: input, shape index: {}]   ;;  %s9329_s3 = inlined_call_operand.vmem [shape: bf16[4,8,16], index: 3, kind: input, shape index: {}]   ;;  %s9330_s4 = inlined_call_operand.vmem [shape: bf16[512,128], index: 4, kind: input, shape index: {}]   ;;  %s9331_s5 = inlined_call_operand.hbm [shape: bf16[4,4,8], index: 5, kind: input, shape index: {}]   ;;  %s9332_s6 = inlined_call_operand.vmem [shape: bf16[512,128], index: 6, kind: input, shape index: {}]   ;;  %s9333_s7 = inlined_call_operand.vmem [shape: bf16[4,3,4], index: 7, kind: input, shape index: {}]   ;;  %s9334_s8 = inlined_call_operand.hbm [shape: bf16[512,128], index: 8, kind: input, shape index: {}]   ;;  %s9335_s9 = inlined_call_operand.vmem [shape: bf16[4,2,3], index: 9, kind: input, shape index: {}]   ;;  %s9336_s10 = inlined_call_operand.hbm [shape: bf16[512,128], index: 10, kind: input, shape index: {}]   ;;  %s9337_s11 = inlined_call_operand.hbm [shape: f32[128,128], index: 11, kind: input, shape index: {}]   ;;  %s9338_s12 = inlined_call_operand.hbm [shape: f32[128,128], index: 12, kind: input, shape index: {}]   ;;  %s9339_s13 = inlined_call_operand.hbm [shape: f32[128,128], index: 13, kind: input, shape index: {}]   ;;  %s9340_s14 = inlined_call_operand.vmem [shape: f32[2,2,128], index: 14, kind: output, shape index: {}]  }
   0x1   :  { %20 = vsyncpa [#allocation5], 0 }
   0x2   :  { %21 = vsyncpa [#allocation8], 0 }
   0x3   :  { %22 = vsyncpa [#allocation11], 0  ;;  %s8202_s29 = smov [#allocation4]  }
   0x4   :  { %s48_s30 = sshll.u32 %s8202_s29, 4  ;;  %s49_s30 = int_to_ptr.vmem [resolvable:$true] %s48_s30 }
   0x5   :  { %s8062_s15 = scalar_lea.vmem %s49_s30, 128  ;;  %p8067_p1 = scmp.lt.s32.totalorder %s49_s30, %s49_s30 }
   0x6   :  { %p8063_p0 = scmp.ne.s32.totalorder %s49_s30, %s8062_s15  ;;  %p8068_p2 = scmp.lt.s32.totalorder %s8062_s15, %s8062_s15 }
   0x8   :  { %p8069_p3 = por %p8068_p2, %p8067_p1 }
   0xa   :  { %p8070_p4 = pnand %p8069_p3, %p8063_p0 }
   0xc   :  { %8073 = shalt.err (!%p8070_p4)
}
   0xd   :  { %s8203_s16 = smov 32   ;;  %s8204_s17 = smov 2  }
   0xe   :  { %54 = dma.hbm_to_vmem [thread:$0]  %s9331_s5, 128, %s49_s30, [#allocation5], %s8203_s16, %s8203_s16, %s8204_s17  }
   0xf   :  { %s8205_s20 = smov [#allocation7]  }
  0x10   :  { %s78_s21 = sshll.u32 %s8205_s20, 4  ;;  %s79_s21 = int_to_ptr.vmem [resolvable:$true] %s78_s21 }
  0x11   :  { %s8082_s22 = scalar_lea.vmem %s79_s21, 4096  ;;  %p8087_p6 = scmp.lt.s32.totalorder %s79_s21, %s79_s21 }
  0x12   :  { %p8083_p5 = scmp.ne.s32.totalorder %s79_s21, %s8082_s22  ;;  %p8088_p7 = scmp.lt.s32.totalorder %s8082_s22, %s8082_s22 }
  0x14   :  { %p8089_p8 = por %p8088_p7, %p8087_p6 }
  0x16   :  { %p8090_p9 = pnand %p8089_p8, %p8083_p5 }
  0x18   :  { %8093 = shalt.err (!%p8090_p9)
}
  0x19   :  { %s8206_s23 = smov 64   ;;  %s8207_s24 = smov 4  }
  0x1a   :  { %84 = dma.hbm_to_vmem [thread:$0]  %s9336_s10, 4096, %s79_s21, [#allocation8], %s8206_s23, %s8206_s23, %s8207_s24  }
  0x1b   :  { %s8208_s5 = smov [#allocation10]   ;;  %s8209_s28 = smov [#allocation2]  }
  0x1c   :  { %s102_s27 = sshll.u32 %s8208_s5, 4  ;;  %s30_s29 = sshll.u32 %s8209_s28, 4  ;;  %s103_s27 = int_to_ptr.vmem [resolvable:$true] %s102_s27  ;;  %s31_s29 = int_to_ptr.vmem [resolvable:$true] %s30_s29 }
  0x1d   :  { %s8102_s30 = scalar_lea.vmem %s103_s27, 2048  ;;  %p8107_p11 = scmp.lt.s32.totalorder %s103_s27, %s103_s27 }
  0x1e   :  { %p8103_p10 = scmp.ne.s32.totalorder %s103_s27, %s8102_s30  ;;  %p8108_p12 = scmp.lt.s32.totalorder %s8102_s30, %s8102_s30 }
  0x20   :  { %p8109_p13 = por %p8108_p12, %p8107_p11 }
  0x22   :  { %p8110_p0 = pnand %p8109_p13, %p8103_p10 }
  0x24   :  { %8113 = shalt.err (!%p8110_p0)
}
  0x25   :  { %s8210_s15 = smov 128   ;;  %s8211_s16 = smov 8  }
  0x26   :  { %108 = dma.hbm_to_vmem [thread:$0]  %s9338_s12, 2048, %s103_s27, [#allocation11], %s8210_s15, %s8210_s15, %s8211_s16  }
  0x27   :  { %s8122_s18 = scalar_lea.vmem %s31_s29, 512  ;;  %p8127_p2 = scmp.lt.s32.totalorder %s31_s29, %s31_s29 }
  0x28   :  { %p8123_p1 = scmp.ne.s32.totalorder %s31_s29, %s8122_s18  ;;  %p8128_p3 = scmp.lt.s32.totalorder %s8122_s18, %s8122_s18 }
  0x2a   :  { %p8129_p4 = por %p8128_p3, %p8127_p2 }
  0x2c   :  { %p8130_p5 = pnand %p8129_p4, %p8123_p1 }
  0x2e   :  { %8133 = shalt.err (!%p8130_p5)
}
  0x2f   :  { %36 = dma.hbm_to_vmem [thread:$0]  %s9327_s1, 512, %s31_s29, [#allocation3], %s8206_s23, %s8206_s23, %s8207_s24  }
  0x30   :  { %s8212_s21 = smov [#allocation6]   ;;  %s8213_s25 = smov [#allocation9]  }
  0x31   :  { %s64_s22 = sshll.u32 %s8212_s21, 4  ;;  %s90_s26 = sshll.u32 %s8213_s25, 4  ;;  %s65_s22 = int_to_ptr.vmem [resolvable:$true] %s64_s22  ;;  %s91_s26 = int_to_ptr.vmem [resolvable:$true] %s90_s26 }
  0x32   :  { %s8142_s12 = scalar_lea.vmem %s65_s22, 4096  ;;  %p8147_p7 = scmp.lt.s32.totalorder %s65_s22, %s65_s22 }
  0x33   :  { %p8143_p6 = scmp.ne.s32.totalorder %s65_s22, %s8142_s12  ;;  %p8148_p8 = scmp.lt.s32.totalorder %s8142_s12, %s8142_s12 }
  0x35   :  { %p8149_p9 = por %p8148_p8, %p8147_p7 }
  0x37   :  { %p8150_p10 = pnand %p8149_p9, %p8143_p6 }
  0x39   :  { %8153 = shalt.err (!%p8150_p10)
}
  0x3a   :  { %70 = dma.hbm_to_vmem [thread:$0]  %s9334_s8, 4096, %s65_s22, [#allocation5], %s8206_s23, %s8206_s23, %s8207_s24  }
  0x3b   :  { %s8162_s1 = scalar_lea.vmem %s91_s26, 2048  ;;  %p8167_p12 = scmp.lt.s32.totalorder %s91_s26, %s91_s26 }
  0x3c   :  { %p8163_p11 = scmp.ne.s32.totalorder %s91_s26, %s8162_s1  ;;  %p8168_p13 = scmp.lt.s32.totalorder %s8162_s1, %s8162_s1 }
  0x3e   :  { %p8169_p0 = por %p8168_p13, %p8167_p12 }
  0x40   :  { %p8170_p1 = pnand %p8169_p0, %p8163_p11 }
  0x42   :  { %8173 = shalt.err (!%p8170_p1)
}
  0x43   :  { %96 = dma.hbm_to_vmem [thread:$0]  %s9337_s11, 2048, %s91_s26, [#allocation8], %s8210_s15, %s8210_s15, %s8211_s16  }
  0x44   :  { %s8214_s30 = smov [#allocation12]  }
  0x45   :  { %s114_s17 = sshll.u32 %s8214_s30, 4  ;;  %s115_s17 = int_to_ptr.vmem [resolvable:$true] %s114_s17 }
  0x46   :  { %s8182_s10 = scalar_lea.vmem %s115_s17, 2048  ;;  %p8187_p3 = scmp.lt.s32.totalorder %s115_s17, %s115_s17 }
  0x47   :  { %p8183_p2 = scmp.ne.s32.totalorder %s115_s17, %s8182_s10  ;;  %p8188_p4 = scmp.lt.s32.totalorder %s8182_s10, %s8182_s10 }
  0x49   :  { %p8189_p5 = por %p8188_p4, %p8187_p3 }
  0x4b   :  { %p8190_p6 = pnand %p8189_p5, %p8183_p2 }
  0x4d   :  { %8193 = shalt.err (!%p8190_p6)
}
  0x4e   :  { %120 = dma.hbm_to_vmem [thread:$0]  %s9339_s13, 2048, %s115_s17, [#allocation11], %s8210_s15, %s8210_s15, %s8211_s16  }
  0x4f   :  { %8194 = dma.done.wait [#allocation3], 512  }
  0x50   :  { %8195 = vsyncadd [#allocation3], 4294966784 }
  0x51   :  { %8196 = dma.done.wait [#allocation5], 4224  }
  0x52   :  { %8197 = vsyncadd [#allocation5], 4294963072 }
  0x53   :  { %8198 = dma.done.wait [#allocation8], 6144  }
  0x54   :  { %8199 = vsyncadd [#allocation8], 4294961152 }
  0x55   :  { %8200 = dma.done.wait [#allocation11], 4096  }
  0x56   :  { %8201 = vsyncadd [#allocation11], 4294963200  ;;  %v8215_v0 = vmov 0.0   ;;  %vm8216_vm0 = vmmov 0   ;;  %v145_v1 = vld [vmem:[%s9326_s0 + $0x10] sm:$0xff]  ;;  %v146_v2 = vld [vmem:[%s9326_s0 + $0x18] sm:$0xff] }
  0x57   :  { %7224 = vmatprep.subr.bf16.mxu0 %v8215_v0  ;;  %7232 = vmatprep.subr.bf16.mxu1 %v8215_v0  ;;  %v143_v3 = vld [vmem:[%s9326_s0] sm:$0xff]  ;;  %v148_v4 = vpack.c.bf16 %v146_v2, %v145_v1  ;;  %v144_v5 = vld [vmem:[%s9326_s0 + $0x8] sm:$0xff]  ;;  %vm156_vm1 = vcmask 261120   ;;  %v7710_v9 = vld [vmem:[%s9328_s2 + $0x78] sm:$0xff]   ;;  %vm707_vm4 = vcmask 130048   ;;  %vm1239_vm5 = vcmask 1040384  }
  0x58   :  { %7228 = vmatprep.mubr.msk.bf16.mxu0 %vm8216_vm0, %v8215_v0  ;;  %7236 = vmatprep.mubr.msk.bf16.mxu1 %vm8216_vm0, %v8215_v0  ;;  %v147_v6 = vpack.c.bf16 %v144_v5, %v143_v3  ;;  %v7706_v7 = vld [vmem:[#allocation2] sm:$0xff]   ;;  %v7707_v8 = vld [vmem:[#allocation2 + $0x8] sm:$0xff]   ;;  %v7708_v10 = vld [vmem:[#allocation2 + $0x10] sm:$0xff]   ;;  %vm1355_vm7 = vcmask 1043456   ;;  %vm1351_vm8 = vcmask 64512   ;;  %vm2004_vm10 = vcmask 1041408  }
  0x59   :  { %7225 = vmatpush3.bf16.msra.mxu0 %v148_v4  ;;  %7233 = vmatpush3.bf16.msra.mxu1 %v148_v4  ;;  %v7709_v11 = vld [vmem:[#allocation2 + $0x18] sm:$0xff]   ;;  %v7712_v14 = vld [vmem:[%s9328_s2 + $0x70] sm:$0xff]   ;;  %v7714_v18 = vld [vmem:[%s9328_s2 + $0x68] sm:$0xff]   ;;  %vm2000_vm11 = vcmask 31744   ;;  %vm2523_vm12 = vcmask 1042432   ;;  %vm2650_vm14 = vcmask 23552  }
  0x5a   :  { %7226 = vmatprep.subr.bf16.mxu0 %v8215_v0  ;;  %7234 = vmatprep.subr.bf16.mxu1 %v8215_v0  ;;  %v7715_v12 = vld [vmem:[%s9328_s2 + $0xf8] sm:$0xff]   ;;  %v7719_v16 = vld [vmem:[%s9328_s2 + $0xf0] sm:$0xff]   ;;  %v7723_v20 = vld [vmem:[%s9328_s2 + $0xe8] sm:$0xff]  }
  0x5b   :  { %v7711_v13 = vld [vmem:[%s9328_s2 + $0x38] sm:$0xff]   ;;  %v7713_v17 = vld [vmem:[%s9328_s2 + $0x30] sm:$0xff]   ;;  %v7716_v21 = vld [vmem:[%s9328_s2 + $0x28] sm:$0xff]  }
  0x5c   :  { %v7717_v15 = vld [vmem:[%s9328_s2 + $0xb8] sm:$0xff]   ;;  %v7721_v19 = vld [vmem:[%s9328_s2 + $0xb0] sm:$0xff]   ;;  %v7718_v22 = vld [vmem:[%s9328_s2 + $0x60] sm:$0xff]  }
  0x5d   :  { %7227 = vmatpush3.bf16.msra.mxu0 %v147_v6  ;;  %7235 = vmatpush3.bf16.msra.mxu1 %v147_v6  ;;  %v7725_v23 = vld [vmem:[%s9328_s2 + $0xa8] sm:$0xff]   ;;  %v7727_v24 = vld [vmem:[%s9328_s2 + $0xe0] sm:$0xff]   ;;  %v7722_v27 = vld [vmem:[%s9328_s2 + $0x58] sm:$0xff]  }
  0x5e   :  { %7240 = vmatprep.subr.bf16.mxu0 %v8215_v0  ;;  %7248 = vmatprep.subr.bf16.mxu1 %v8215_v0  ;;  %v7720_v25 = vld [vmem:[%s9328_s2 + $0x20] sm:$0xff]   ;;  %v7724_v28 = vld [vmem:[%s9328_s2 + $0x18] sm:$0xff]   ;;  %v7726_v29 = vld [vmem:[%s9328_s2 + $0x50] sm:$0xff]  }
  0x5f   :  { %v7729_v26 = vld [vmem:[%s9328_s2 + $0xa0] sm:$0xff]   ;;  %v7728_v30 = vld [vmem:[%s9328_s2 + $0x10] sm:$0xff]   ;;  %v7730_v31 = vld [vmem:[%s9328_s2 + $0x48] sm:$0xff]  }
  0x60   :  { %7229 = vmatmul.mubr.msk.bf16.vlgmr.msra.gmra.mxu0 %vm156_vm1, %v7706_v7  ;;  %7237 = vmatmul.mubr.msk.bf16.vlgmr.msra.gmra.mxu1 %vm156_vm1, %v7707_v8  ;;  %v7731_v32 = vld [vmem:[%s9328_s2 + $0xd8] sm:$0xff]   ;;  %v7732_v33 = vld [vmem:[%s9328_s2 + $0x8] sm:$0xff]   ;;  %v7734_v35 = vld [vmem:[%s9328_s2 + $0x40] sm:$0xff]  }
  0x61   :  { %7241 = vmatpush3.bf16.msra.mxu0 %v148_v4  ;;  %7249 = vmatpush3.bf16.msra.mxu1 %v148_v4  ;;  %v7733_v34 = vld [vmem:[%s9328_s2 + $0x98] sm:$0xff]   ;;  %v7735_v36 = vld [vmem:[%s9328_s2 + $0xd0] sm:$0xff]   ;;  %v7736_v37 = vld [vmem:[%s9328_s2] sm:$0xff]  }
  0x62   :  { %7242 = vmatprep.subr.bf16.mxu0 %v8215_v0  ;;  %7250 = vmatprep.subr.bf16.mxu1 %v8215_v0  ;;  %v7737_v38 = vld [vmem:[%s9328_s2 + $0x90] sm:$0xff]   ;;  %v7738_v39 = vld [vmem:[%s9328_s2 + $0xc8] sm:$0xff]   ;;  %v7740_v41 = vld [vmem:[%s9328_s2 + $0xc0] sm:$0xff]  }
  0x63   :  { %7244 = vmatprep.mubr.msk.bf16.mxu0 %vm8216_vm0, %v8215_v0  ;;  %7252 = vmatprep.mubr.msk.bf16.mxu1 %vm8216_vm0, %v8215_v0  ;;  %v7739_v40 = vld [vmem:[%s9328_s2 + $0x88] sm:$0xff]   ;;  %v7741_v42 = vld [vmem:[%s9328_s2 + $0x80] sm:$0xff]  }
  0x65   :  { %7243 = vmatpush3.bf16.msra.mxu0 %v147_v6  ;;  %7251 = vmatpush3.bf16.msra.mxu1 %v147_v6 }
  0x66   :  { %6606 = vmatprep.subr.bf16.mxu0 %v7710_v9  ;;  %6628 = vmatprep.subr.bf16.mxu1 %v7715_v12 }
  0x68   :  { %7245 = vmatmul.mubr.msk.bf16.vlgmr.msra.gmra.mxu0 %vm156_vm1, %v7708_v10  ;;  %7253 = vmatmul.mubr.msk.bf16.vlgmr.msra.gmra.mxu1 %vm156_vm1, %v7709_v11 }
  0x69   :  { %6607 = vmatpush3.bf16.msra.mxu0 %v7711_v13  ;;  %6629 = vmatpush3.bf16.msra.mxu1 %v7717_v15 }
  0x6a   :  { %6608 = vmatprep.subr.bf16.mxu0 %v7712_v14  ;;  %6630 = vmatprep.subr.bf16.mxu1 %v7719_v16 }
  0x6d   :  { %6609 = vmatpush3.bf16.msra.mxu0 %v7713_v17  ;;  %6631 = vmatpush3.bf16.msra.mxu1 %v7721_v19  ;;  %v706_v19 = vld [vmem:[%s9329_s3] sm:$0xf] }
  0x6e   :  { %6610 = vmatprep.subr.bf16.mxu0 %v7714_v18  ;;  %6632 = vmatprep.subr.bf16.mxu1 %v7723_v20  ;;  %v6244_v20 = vld [vmem:[%s9329_s3 + $0x4] sm:$0xf] }
  0x71   :  { %6611 = vmatpush3.bf16.msra.mxu0 %v7716_v21  ;;  %6633 = vmatpush3.bf16.msra.mxu1 %v7725_v23  ;;  %v7742_v21 = vld [vmem:[%s9330_s4 + $0x78] sm:$0xff]   ;;  %v6246_v23 = vld [vmem:[%s9329_s3 + $0x8] sm:$0xf] }
  0x72   :  { %6612 = vmatprep.subr.bf16.mxu0 %v7718_v22  ;;  %6634 = vmatprep.subr.bf16.mxu1 %v7727_v24  ;;  %v7747_v22 = vld [vmem:[%s9330_s4 + $0xf8] sm:$0xff]   ;;  %v6248_v24 = vld [vmem:[%s9329_s3 + $0xc] sm:$0xf] }
  0x75   :  { %6613 = vmatpush3.bf16.msra.mxu0 %v7720_v25  ;;  %6635 = vmatpush3.bf16.msra.mxu1 %v7729_v26  ;;  %v7743_v25 = vld [vmem:[%s9330_s4 + $0x38] sm:$0xff]  }
  0x76   :  { %6614 = vmatprep.subr.bf16.mxu0 %v7722_v27  ;;  %6636 = vmatprep.subr.bf16.mxu1 %v7731_v32  ;;  %v7749_v26 = vld [vmem:[%s9330_s4 + $0xb8] sm:$0xff]   ;;  %v7744_v27 = vld [vmem:[%s9330_s4 + $0x70] sm:$0xff]   ;;  %v7755_v32 = vld [vmem:[%s9330_s4 + $0xe8] sm:$0xff]  }
  0x79   :  { %6615 = vmatpush3.bf16.msra.mxu0 %v7724_v28  ;;  %6637 = vmatpush3.bf16.msra.mxu1 %v7733_v34  ;;  %v7751_v28 = vld [vmem:[%s9330_s4 + $0xf0] sm:$0xff]   ;;  %v7757_v34 = vld [vmem:[%s9330_s4 + $0xa8] sm:$0xff]  }
  0x7a   :  { %6616 = vmatprep.subr.bf16.mxu0 %v7726_v29  ;;  %6638 = vmatprep.subr.bf16.mxu1 %v7735_v36  ;;  %v7745_v29 = vld [vmem:[%s9330_s4 + $0x30] sm:$0xff]   ;;  %v7759_v36 = vld [vmem:[%s9330_s4 + $0xe0] sm:$0xff]  }
  0x7d   :  { %6617 = vmatpush3.bf16.msra.mxu0 %v7728_v30  ;;  %6639 = vmatpush3.bf16.msra.mxu1 %v7737_v38  ;;  %v7753_v30 = vld [vmem:[%s9330_s4 + $0xb0] sm:$0xff]   ;;  %v7761_v38 = vld [vmem:[%s9330_s4 + $0xa0] sm:$0xff]  }
  0x7e   :  { %6618 = vmatprep.subr.bf16.mxu0 %v7730_v31  ;;  %6640 = vmatprep.subr.bf16.mxu1 %v7738_v39  ;;  %v7746_v31 = vld [vmem:[%s9330_s4 + $0x68] sm:$0xff]   ;;  %v7754_v39 = vld [vmem:[%s9330_s4 + $0x58] sm:$0xff]  }
  0x81   :  { %6619 = vmatpush3.bf16.msra.mxu0 %v7732_v33  ;;  %6641 = vmatpush3.bf16.msra.mxu1 %v7739_v40  ;;  %v7748_v33 = vld [vmem:[%s9330_s4 + $0x28] sm:$0xff]   ;;  %v7763_v40 = vld [vmem:[%s9330_s4 + $0xd8] sm:$0xff]  }
  0x82   :  { %6620 = vmatprep.subr.bf16.mxu0 %v7734_v35  ;;  %6642 = vmatprep.subr.bf16.mxu1 %v7740_v41  ;;  %v7750_v35 = vld [vmem:[%s9330_s4 + $0x60] sm:$0xff]   ;;  %v7756_v41 = vld [vmem:[%s9330_s4 + $0x18] sm:$0xff]  }
  0x85   :  { %6621 = vmatpush3.bf16.msra.mxu0 %v7736_v37  ;;  %6643 = vmatpush3.bf16.msra.mxu1 %v7741_v42  ;;  %v7752_v37 = vld [vmem:[%s9330_s4 + $0x20] sm:$0xff]   ;;  %v7765_v42 = vld [vmem:[%s9330_s4 + $0x98] sm:$0xff]  }
  0x86   :  { %7256 = vmatprep.subr.bf16.mxu0 %v8215_v0  ;;  %7262 = vmatprep.subr.bf16.mxu1 %v8215_v0 }
 0x120   :  { %v194_v43 = vpop.f32.mrf.mxu0  ;;  %v246_v44 = vpop.f32.mrf.mxu1 }
 0x122   :  { %v7230_v45 = vpop.f32.mrf.mxu0  ;;  %v7238_v46 = vpop.f32.mrf.mxu1 }
 0x123   :  { %v7762_v45 = vld [vmem:[%s9330_s4 + $0x48] sm:$0xff]  }
 0x124   :  { %v197_v47 = vpop.f32.mrf.mxu0  ;;  %v249_v48 = vpop.f32.mrf.mxu1  ;;  %v7764_v46 = vld [vmem:[%s9330_s4 + $0x8] sm:$0xff]  }
 0x125   :  { %v357_v49 = vpack.c.bf16 %v197_v47, %v194_v43  ;;  %v358_v50 = vpack.c.bf16 %v249_v48, %v246_v44  ;;  %v7758_v43 = vld [vmem:[%s9330_s4 + $0x50] sm:$0xff]   ;;  %v7766_v47 = vld [vmem:[%s9330_s4 + $0x40] sm:$0xff]  }
 0x126   :  { %v7231_v51 = vpop.f32.mrf.mxu0  ;;  %v7239_v52 = vpop.f32.mrf.mxu1  ;;  %v7760_v44 = vld [vmem:[%s9330_s4 + $0x10] sm:$0xff]  }
 0x127   :  { %649 = vmatprep.mubr.bf16.mxu0 %v358_v50  ;;  %v7767_v48 = vld [vmem:[%s9330_s4 + $0xd0] sm:$0xff]   ;;  %v7770_v51 = vld [vmem:[%s9330_s4 + $0xc8] sm:$0xff]  }
 0x128   :  { %v298_v53 = vpop.f32.mrf.mxu0  ;;  %v350_v54 = vpop.f32.mrf.mxu1  ;;  %650 = vmatmul.mubr.bf16.vlgmr.msra.gmra.mxu0 %v357_v49  ;;  %v7768_v49 = vld [vmem:[%s9330_s4] sm:$0xff]   ;;  %v7769_v50 = vld [vmem:[%s9330_s4 + $0x90] sm:$0xff]   ;;  %v7771_v52 = vld [vmem:[%s9330_s4 + $0x88] sm:$0xff]  }
 0x129   :  { %7258 = vmatprep.mubr.msk.bf16.mxu0 %vm8216_vm0, %v8215_v0 }
 0x12a   :  { %v7246_v55 = vpop.f32.mrf.mxu0  ;;  %v7254_v56 = vpop.f32.mrf.mxu1 }
 0x12c   :  { %v301_v57 = vpop.f32.mrf.mxu0  ;;  %v353_v58 = vpop.f32.mrf.mxu1 }
 0x12d   :  { %v359_v59 = vpack.c.bf16 %v301_v57, %v298_v53  ;;  %v360_v60 = vpack.c.bf16 %v353_v58, %v350_v54  ;;  %v7772_v53 = vld [vmem:[%s9330_s4 + $0xc0] sm:$0xff]  }
 0x12e   :  { %v7247_v61 = vpop.f32.mrf.mxu0  ;;  %v7255_v62 = vpop.f32.mrf.mxu1  ;;  %v7773_v54 = vld [vmem:[%s9330_s4 + $0x80] sm:$0xff]  }
 0x12f   :  { %690 = vmatprep.mubr.bf16.mxu1 %v360_v60  ;;  %v1256_v61 = vld [vmem:[#allocation9 + $0x78] sm:$0xff] }
 0x130   :  { %691 = vmatmul.mubr.bf16.vlgmr.msra.gmra.mxu1 %v359_v59 }
 0x131   :  { %7264 = vmatprep.mubr.msk.bf16.mxu1 %vm8216_vm0, %v8215_v0 }
 0x1e8   :  { %v6622_v63 = vpop.f32.mrf.mxu0 }
 0x1ea   :  { %v6623_v1 = vpop.f32.mrf.mxu0 }
 0x1eb   :  { %v6624_v5 = vadd.f32 %v6623_v1, %v6622_v63 }
 0x1ec   :  { %v6625_v2 = vpop.f32.mrf.mxu0 }
 0x1ee   :  { %v6626_v7 = vpop.f32.mrf.mxu0 }
 0x1ef   :  { %v6627_v11 = vadd.f32 %v6626_v7, %v6625_v2 }
 0x1f0   :  { %v6644_v3 = vpop.f32.mrf.mxu1 }
 0x1f2   :  { %v6645_v4 = vpop.f32.mrf.mxu1 }
 0x1f3   :  { %v6646_v6 = vadd.f32 %v6645_v4, %v6644_v3 }
 0x1f4   :  { %v6647_v8 = vpop.f32.mrf.mxu1 }
 0x1f5   :  { %v693_v9 = vadd.f32 %v6646_v6, %v6624_v5 }
 0x1f6   :  { %v6648_v10 = vpop.f32.mrf.mxu1 }
 0x1f7   :  { %v6649_v12 = vadd.f32 %v6648_v10, %v6647_v8  ;;  %v701_v13 = vmul.f32 0.2, %v693_v9  ;;  %vm699_vm2 = vcmp.gt.f32.partialorder %v693_v9, 0.0 }
 0x1f9   :  { %v696_v14 = vadd.f32 %v6649_v12, %v6627_v11  ;;  %v703_v16 = vsel %vm699_vm2, %v693_v9, %v701_v13  ;;  %v1255_v13 = vld [vmem:[#allocation9 + $0x70] sm:$0xff] }
 0x1fb   :  { %vm700_vm3 = vcmp.gt.f32.partialorder %v696_v14, 0.0  ;;  %v702_v15 = vmul.f32 0.2, %v696_v14 }
 0x1fd   :  { %v704_v17 = vsel %vm700_vm3, %v696_v14, %v702_v15  ;;  %v1254_v14 = vld [vmem:[#allocation9 + $0x68] sm:$0xff]  ;;  %v1253_v15 = vld [vmem:[#allocation9 + $0x60] sm:$0xff] }
 0x1fe   :  { %v705_v18 = vpack.c.bf16 %v704_v17, %v703_v16  ;;  %v1252_v16 = vld [vmem:[#allocation9 + $0x58] sm:$0xff]  ;;  %v1251_v17 = vld [vmem:[#allocation9 + $0x50] sm:$0xff] }
 0x200   :  { %7257 = vmatpush3.bf16.msra.mxu0 %v705_v18  ;;  %7263 = vmatpush3.bf16.msra.mxu1 %v705_v18 }
 0x201   :  { %7268 = vmatprep.subr.bf16.mxu0 %v8215_v0  ;;  %7274 = vmatprep.subr.bf16.mxu1 %v8215_v0 }
 0x203   :  { %7259 = vmatmul.mubr.msk.bf16.vlgmr.msra.gmra.mxu0 %vm707_vm4, %v706_v19  ;;  %7265 = vmatmul.mubr.msk.bf16.vlgmr.msra.gmra.mxu1 %vm707_vm4, %v6244_v20  ;;  %v1249_v19 = vld [vmem:[#allocation9 + $0x40] sm:$0xff]  ;;  %v1248_v20 = vld [vmem:[#allocation9 + $0x38] sm:$0xff] }
 0x204   :  { %7269 = vmatpush3.bf16.msra.mxu0 %v705_v18  ;;  %7275 = vmatpush3.bf16.msra.mxu1 %v705_v18  ;;  %v1250_v18 = vld [vmem:[#allocation9 + $0x48] sm:$0xff] }
 0x205   :  { %7270 = vmatprep.mubr.msk.bf16.mxu0 %vm8216_vm0, %v8215_v0  ;;  %7276 = vmatprep.mubr.msk.bf16.mxu1 %vm8216_vm0, %v8215_v0 }
 0x206   :  { %6658 = vmatprep.subr.bf16.mxu0 %v7742_v21  ;;  %6680 = vmatprep.subr.bf16.mxu1 %v7747_v22  ;;  %v1247_v21 = vld [vmem:[#allocation9 + $0x30] sm:$0xff]  ;;  %v1246_v22 = vld [vmem:[#allocation9 + $0x28] sm:$0xff] }
 0x20b   :  { %7271 = vmatmul.mubr.msk.bf16.vlgmr.msra.gmra.mxu0 %vm707_vm4, %v6246_v23  ;;  %7277 = vmatmul.mubr.msk.bf16.vlgmr.msra.gmra.mxu1 %vm707_vm4, %v6248_v24  ;;  %v1245_v23 = vld [vmem:[#allocation9 + $0x20] sm:$0xff]  ;;  %v1244_v24 = vld [vmem:[#allocation9 + $0x18] sm:$0xff] }
 0x20c   :  { %6659 = vmatpush3.bf16.msra.mxu0 %v7743_v25  ;;  %6681 = vmatpush3.bf16.msra.mxu1 %v7749_v26  ;;  %v1243_v25 = vld [vmem:[#allocation9 + $0x10] sm:$0xff]  ;;  %v1242_v26 = vld [vmem:[#allocation9 + $0x8] sm:$0xff] }
 0x20d   :  { %6660 = vmatprep.subr.bf16.mxu0 %v7744_v27  ;;  %6682 = vmatprep.subr.bf16.mxu1 %v7751_v28  ;;  %v1241_v27 = vld [vmem:[#allocation9] sm:$0xff] }
 0x210   :  { %6661 = vmatpush3.bf16.msra.mxu0 %v7745_v29  ;;  %6683 = vmatpush3.bf16.msra.mxu1 %v7753_v30 }
 0x211   :  { %6662 = vmatprep.subr.bf16.mxu0 %v7746_v31  ;;  %6684 = vmatprep.subr.bf16.mxu1 %v7755_v32 }
 0x214   :  { %6663 = vmatpush3.bf16.msra.mxu0 %v7748_v33  ;;  %6685 = vmatpush3.bf16.msra.mxu1 %v7757_v34 }
 0x215   :  { %6664 = vmatprep.subr.bf16.mxu0 %v7750_v35  ;;  %6686 = vmatprep.subr.bf16.mxu1 %v7759_v36 }
 0x218   :  { %6665 = vmatpush3.bf16.msra.mxu0 %v7752_v37  ;;  %6687 = vmatpush3.bf16.msra.mxu1 %v7761_v38 }
 0x219   :  { %6666 = vmatprep.subr.bf16.mxu0 %v7754_v39  ;;  %6688 = vmatprep.subr.bf16.mxu1 %v7763_v40 }
 0x21c   :  { %6667 = vmatpush3.bf16.msra.mxu0 %v7756_v41  ;;  %6689 = vmatpush3.bf16.msra.mxu1 %v7765_v42 }
 0x21d   :  { %6668 = vmatprep.subr.bf16.mxu0 %v7758_v43  ;;  %6690 = vmatprep.subr.bf16.mxu1 %v7767_v48 }
 0x220   :  { %6669 = vmatpush3.bf16.msra.mxu0 %v7760_v44  ;;  %6691 = vmatpush3.bf16.msra.mxu1 %v7769_v50 }
 0x221   :  { %6670 = vmatprep.subr.bf16.mxu0 %v7762_v45  ;;  %6692 = vmatprep.subr.bf16.mxu1 %v7770_v51 }
 0x224   :  { %6671 = vmatpush3.bf16.msra.mxu0 %v7764_v46  ;;  %6693 = vmatpush3.bf16.msra.mxu1 %v7771_v52 }
 0x225   :  { %6672 = vmatprep.subr.bf16.mxu0 %v7766_v47  ;;  %6694 = vmatprep.subr.bf16.mxu1 %v7772_v53  ;;  %v7774_v53 = vld [vmem:[%s9332_s6 + $0x78] sm:$0xff]  }
 0x228   :  { %6673 = vmatpush3.bf16.msra.mxu0 %v7768_v49  ;;  %6695 = vmatpush3.bf16.msra.mxu1 %v7773_v54  ;;  %v7775_v54 = vld [vmem:[%s9332_s6 + $0x38] sm:$0xff]  }
 0x229   :  { %7280 = vmatprep.subr.mxu0 %v8215_v0  ;;  %7315 = vmatprep.subr.bf16.mxu1 %v8215_v0 }
 0x2c3   :  { %v745_v55 = vpop.f32.mrf.mxu0  ;;  %v790_v56 = vpop.f32.mrf.mxu1 }
 0x2c4   :  { %v886_v57 = vpack.c.bf16 %v745_v55, %v745_v55  ;;  %v887_v58 = vpack.c.bf16 %v790_v56, %v790_v56  ;;  %v7776_v55 = vld [vmem:[%s9332_s6 + $0x70] sm:$0xff]  }
 0x2c5   :  { %v7260_v59 = vpop.f32.mrf.mxu0  ;;  %v7266_v60 = vpop.f32.mrf.mxu1  ;;  %v7777_v56 = vld [vmem:[%s9332_s6 + $0x30] sm:$0xff]  }
 0x2c6   :  { %1178 = vmatprep.mubr.bf16.mxu0 %v887_v58  ;;  %v7779_v58 = vld [vmem:[%s9332_s6 + $0x28] sm:$0xff]   ;;  %v7780_v59 = vld [vmem:[%s9332_s6 + $0x60] sm:$0xff]  }
 0x2c7   :  { %v748_v62 = vpop.f32.mrf.mxu0  ;;  %v793_v63 = vpop.f32.mrf.mxu1  ;;  %1179 = vmatmul.mubr.bf16.vlgmr.msra.gmra.mxu0 %v886_v57  ;;  %v7778_v57 = vld [vmem:[%s9332_s6 + $0x68] sm:$0xff]   ;;  %v7781_v60 = vld [vmem:[%s9332_s6 + $0x20] sm:$0xff]  }
 0x2c8   :  { %7281 = vmatpush3.msra.mxu0 %v1256_v61  ;;  %7312 = vmatprep.mubr.msk.f32.mxu0 %vm8216_vm0, %v8215_v0  ;;  %v7782_v61 = vld [vmem:[%s9332_s6 + $0x58] sm:$0xff]  }
 0x2c9   :  { %v7261_v1 = vpop.f32.mrf.mxu0  ;;  %v7267_v2 = vpop.f32.mrf.mxu1  ;;  %7282 = vmatprep.subr.mxu0 %v8215_v0  ;;  %v7784_v62 = vld [vmem:[%s9332_s6 + $0x18] sm:$0xff]  }
 0x2ca   :  { %7283 = vmatpush3.msra.mxu0 %v1255_v13 }
 0x2cb   :  { %v835_v3 = vpop.f32.mrf.mxu0  ;;  %v880_v4 = vpop.f32.mrf.mxu1  ;;  %7284 = vmatprep.subr.mxu0 %v8215_v0 }
 0x2cc   :  { %v888_v5 = vpack.c.bf16 %v835_v3, %v835_v3  ;;  %v889_v6 = vpack.c.bf16 %v880_v4, %v880_v4  ;;  %7285 = vmatpush3.msra.mxu0 %v1254_v14 }
 0x2cd   :  { %v7272_v7 = vpop.f32.mrf.mxu0  ;;  %v7278_v8 = vpop.f32.mrf.mxu1  ;;  %7286 = vmatprep.subr.mxu0 %v8215_v0 }
 0x2ce   :  { %1218 = vmatprep.mubr.bf16.mxu1 %v889_v6  ;;  %7287 = vmatpush3.msra.mxu0 %v1253_v15  ;;  %v1334_v7 = vlaneseq }
 0x2cf   :  { %v838_v9 = vpop.f32.mrf.mxu0  ;;  %v883_v10 = vpop.f32.mrf.mxu1  ;;  %1219 = vmatmul.mubr.bf16.vlgmr.msra.gmra.mxu1 %v888_v5  ;;  %7288 = vmatprep.subr.mxu0 %v8215_v0 }
 0x2d0   :  { %7317 = vmatprep.mubr.msk.bf16.mxu1 %vm8216_vm0, %v8215_v0  ;;  %7289 = vmatpush3.msra.mxu0 %v1252_v16  ;;  %v1335_v9 = vshrl.u32 %v1334_v7, 7  ;;  %v1902_v7 = vld [vmem:[#allocation10 + $0x60] sm:$0xff] }
 0x2d1   :  { %v7273_v11 = vpop.f32.mrf.mxu0  ;;  %v7279_v12 = vpop.f32.mrf.mxu1  ;;  %7290 = vmatprep.subr.mxu0 %v8215_v0 }
 0x2d2   :  { %7291 = vmatpush3.msra.mxu0 %v1251_v17  ;;  %v8636_v10 = vsub.s32 0, %v1335_v9  ;;  %v8639_v12 = vsub.s32 1, %v1335_v9  ;;  %v1900_v9 = vld [vmem:[#allocation10 + $0x50] sm:$0xff] }
 0x2d3   :  { %7292 = vmatprep.subr.mxu0 %v8215_v0 }
 0x2d4   :  { %7293 = vmatpush3.msra.mxu0 %v1250_v18 }
 0x2d5   :  { %7294 = vmatprep.subr.mxu0 %v8215_v0 }
 0x2d6   :  { %7295 = vmatpush3.msra.mxu0 %v1249_v19 }
 0x2d7   :  { %7296 = vmatprep.subr.mxu0 %v8215_v0 }
 0x2d8   :  { %7297 = vmatpush3.msra.mxu0 %v1248_v20 }
 0x2d9   :  { %7298 = vmatprep.subr.mxu0 %v8215_v0 }
 0x2da   :  { %7299 = vmatpush3.msra.mxu0 %v1247_v21  ;;  %v1350_v21 = vld [vmem:[#allocation4] sm:$0x3] }
 0x2db   :  { %7300 = vmatprep.subr.mxu0 %v8215_v0 }
 0x2dc   :  { %7301 = vmatpush3.msra.mxu0 %v1246_v22  ;;  %v1400_v22 = vld [vmem:[#allocation4 + $0x2] sm:$0x3] }
 0x2dd   :  { %7302 = vmatprep.subr.mxu0 %v8215_v0 }
 0x2de   :  { %7303 = vmatpush3.msra.mxu0 %v1245_v23  ;;  %v1445_v23 = vld [vmem:[#allocation4 + $0x4] sm:$0x3] }
 0x2df   :  { %7304 = vmatprep.subr.mxu0 %v8215_v0 }
 0x2e0   :  { %7305 = vmatpush3.msra.mxu0 %v1244_v24  ;;  %v7783_v24 = vld [vmem:[%s9332_s6 + $0xf8] sm:$0xff]  }
 0x2e1   :  { %7306 = vmatprep.subr.mxu0 %v8215_v0 }
 0x2e2   :  { %7307 = vmatpush3.msra.mxu0 %v1243_v25  ;;  %v1490_v25 = vld [vmem:[#allocation4 + $0x6] sm:$0x3] }
 0x2e3   :  { %7308 = vmatprep.subr.mxu0 %v8215_v0 }
 0x2e4   :  { %7309 = vmatpush3.msra.mxu0 %v1242_v26  ;;  %v7785_v26 = vld [vmem:[%s9332_s6 + $0xb8] sm:$0xff]  }
 0x2e5   :  { %7310 = vmatprep.subr.mxu0 %v8215_v0 }
 0x2e6   :  { %7311 = vmatpush3.msra.mxu0 %v1241_v27  ;;  %v7786_v27 = vld [vmem:[%s9332_s6 + $0x50] sm:$0xff]  }
 0x2e7   :  { %6727 = vmatprep.subr.bf16.mxu0 %v7774_v53 }
 0x387   :  { %v6674_v28 = vpop.f32.mrf.mxu0 }
 0x389   :  { %v6675_v29 = vpop.f32.mrf.mxu0 }
 0x38a   :  { %v6676_v34 = vadd.f32 %v6675_v29, %v6674_v28  ;;  %v7787_v28 = vld [vmem:[%s9332_s6 + $0xf0] sm:$0xff]  }
 0x38b   :  { %v6677_v30 = vpop.f32.mrf.mxu0  ;;  %v7788_v29 = vld [vmem:[%s9332_s6 + $0x10] sm:$0xff]  }
 0x38c   :  { %v7789_v30 = vld [vmem:[%s9332_s6 + $0xb0] sm:$0xff]  }
 0x38d   :  { %v6678_v31 = vpop.f32.mrf.mxu0 }
 0x38e   :  { %v7790_v31 = vld [vmem:[%s9332_s6 + $0x48] sm:$0xff]  }
 0x38f   :  { %v6696_v32 = vpop.f32.mrf.mxu1 }
 0x391   :  { %v6697_v33 = vpop.f32.mrf.mxu1 }
 0x392   :  { %v6698_v35 = vadd.f32 %v6697_v33, %v6696_v32  ;;  %v7791_v32 = vld [vmem:[%s9332_s6 + $0xe8] sm:$0xff]  }
 0x393   :  { %v6699_v36 = vpop.f32.mrf.mxu1  ;;  %v7792_v33 = vld [vmem:[%s9332_s6 + $0x8] sm:$0xff]  }
 0x394   :  { %v1221_v37 = vadd.f32 %v6698_v35, %v6676_v34  ;;  %v7793_v34 = vld [vmem:[%s9332_s6 + $0xa8] sm:$0xff]   ;;  %v7794_v35 = vld [vmem:[%s9332_s6 + $0x40] sm:$0xff]  }
 0x395   :  { %v6700_v38 = vpop.f32.mrf.mxu1  ;;  %v7795_v36 = vld [vmem:[%s9332_s6 + $0xe0] sm:$0xff]  }
 0x396   :  { %v1226_v39 = vrot.slane %v1221_v37, 4  ;;  %v1232_v40 = vmul.f32 %v1221_v37, %v1221_v37  ;;  %v7797_v38 = vld [vmem:[%s9332_s6 + $0xa0] sm:$0xff]  }
 0x398   :  { %v1227_v41 = vadd.f32 %v1226_v39, %v1221_v37  ;;  %v1233_v42 = vrot.slane %v1232_v40, 4  ;;  %v7798_v39 = vld [vmem:[%s9332_s6 + $0xd8] sm:$0xff]  }
 0x39a   :  { %v1228_v43 = vrot.slane %v1227_v41, 2  ;;  %v1234_v44 = vadd.f32 %v1233_v42, %v1232_v40  ;;  %v7799_v40 = vld [vmem:[%s9332_s6 + $0x98] sm:$0xff]   ;;  %v7801_v42 = vld [vmem:[%s9332_s6 + $0x90] sm:$0xff]  }
 0x39c   :  { %v1229_v45 = vadd.f32 %v1228_v43, %v1227_v41  ;;  %v1235_v46 = vrot.slane %v1234_v44, 2  ;;  %v7800_v41 = vld [vmem:[%s9332_s6 + $0xd0] sm:$0xff]   ;;  %v7802_v43 = vld [vmem:[%s9332_s6 + $0xc8] sm:$0xff]  }
 0x39e   :  { %v1230_v47 = vrot.slane %v1229_v45, 1  ;;  %v1236_v48 = vadd.f32 %v1235_v46, %v1234_v44  ;;  %v7803_v44 = vld [vmem:[%s9332_s6 + $0x88] sm:$0xff]   ;;  %v7805_v46 = vld [vmem:[%s9332_s6 + $0x80] sm:$0xff]  }
 0x3a0   :  { %v1237_v49 = vrot.slane %v1236_v48, 1  ;;  %v1231_v50 = vadd.f32 %v1230_v47, %v1229_v45  ;;  %v7804_v45 = vld [vmem:[%s9332_s6 + $0xc0] sm:$0xff]  }
 0x3a2   :  { %v1238_v51 = vadd.f32 %v1237_v49, %v1236_v48 }
 0x3a4   :  { %v1240_v52 = vsel %vm1239_vm5, %v1231_v50, %v1238_v51 }
 0x3a5   :  { %7313 = vmatmul.mubr.f32.vlgmr.msra.gmra.mxu0 %v1240_v52 }
 0x3a6   :  { %6728 = vmatpush3.bf16.msra.mxu0 %v7775_v54 }
 0x3a7   :  { %6729 = vmatprep.subr.bf16.mxu0 %v7776_v55 }
 0x3aa   :  { %6730 = vmatpush3.bf16.msra.mxu0 %v7777_v56 }
 0x3ab   :  { %6731 = vmatprep.subr.bf16.mxu0 %v7778_v57 }
 0x3ae   :  { %6732 = vmatpush3.bf16.msra.mxu0 %v7779_v58 }
 0x3af   :  { %6733 = vmatprep.subr.bf16.mxu0 %v7780_v59 }
 0x3b2   :  { %6734 = vmatpush3.bf16.msra.mxu0 %v7781_v60 }
 0x3b3   :  { %6735 = vmatprep.subr.bf16.mxu0 %v7782_v61 }
 0x3b6   :  { %6736 = vmatpush3.bf16.msra.mxu0 %v7784_v62 }
 0x3b7   :  { %6737 = vmatprep.subr.bf16.mxu0 %v7786_v27 }
 0x3ba   :  { %6738 = vmatpush3.bf16.msra.mxu0 %v7788_v29 }
 0x3bb   :  { %6739 = vmatprep.subr.bf16.mxu0 %v7790_v31 }
 0x3be   :  { %6740 = vmatpush3.bf16.msra.mxu0 %v7792_v33 }
 0x3bf   :  { %6741 = vmatprep.subr.bf16.mxu0 %v7794_v35 }
 0x465   :  { %v1323_v63 = vpop.f32.mrf.mxu0 }
 0x466   :  { %v1327_v1 = vmul.f32 0.015625, %v1323_v63 }
 0x467   :  { %v7314_v2 = vpop.f32.mrf.mxu0 }
 0x468   :  { %v1328_v3 = vmul.f32 %v1327_v1, %v1327_v1  ;;  %v1337_v11 = vrot.slane %v1327_v1, %v8636_v10 }
 0x46a   :  { %v1330_v4 = vrot.slane %v1328_v3, 7  ;;  %v1338_v14 = vsub.f32 %v1221_v37, %v1337_v11  ;;  %v7796_v37 = vld [vmem:[%s9332_s6] sm:$0xff]   ;;  %v1899_v11 = vld [vmem:[#allocation10 + $0x48] sm:$0xff] }
 0x46b   :  { %6742 = vmatpush3.bf16.msra.mxu0 %v7796_v37 }
 0x46c   :  { %v1332_v5 = vsub.f32 %v1327_v1, %v1330_v4  ;;  %7339 = vmatprep.subr.mxu0 %v8215_v0  ;;  %v1905_v4 = vld [vmem:[#allocation10 + $0x78] sm:$0xff] }
 0x46e   :  { %v1333_v6 = vmax.f32 %v1332_v5, 0.0  ;;  %v1904_v5 = vld [vmem:[#allocation10 + $0x70] sm:$0xff] }
 0x470   :  { %v1339_v8 = vadd.f32 1e-05, %v1333_v6  ;;  %v1903_v6 = vld [vmem:[#allocation10 + $0x68] sm:$0xff] }
 0x472   :  { %8034 = vrsqrt.f32 %v1339_v8  ;;  %v1901_v8 = vld [vmem:[#allocation10 + $0x58] sm:$0xff] }
 0x47f   :  { %v8035_v13 = vpop.eup %8034 }
 0x480   :  { %v1344_v15 = vrot.slane %v8035_v13, %v8639_v12  ;;  %v1898_v13 = vld [vmem:[#allocation10 + $0x40] sm:$0xff] }
 0x482   :  { %v1345_v16 = vmul.f32 %v1344_v15, %v1338_v14  ;;  %v1897_v14 = vld [vmem:[#allocation10 + $0x38] sm:$0xff]  ;;  %v1896_v15 = vld [vmem:[#allocation10 + $0x30] sm:$0xff] }
 0x484   :  { %vm1346_vm6 = vcmp.gt.f32.partialorder %v1345_v16, 0.0  ;;  %v1347_v17 = vmul.f32 0.2, %v1345_v16 }
 0x486   :  { %v1348_v18 = vsel %vm1346_vm6, %v1345_v16, %v1347_v17  ;;  %v1895_v16 = vld [vmem:[#allocation10 + $0x28] sm:$0xff]  ;;  %v1894_v17 = vld [vmem:[#allocation10 + $0x20] sm:$0xff] }
 0x487   :  { %v1349_v19 = vpack.c.bf16 %v1348_v18, %v1348_v18  ;;  %v1893_v18 = vld [vmem:[#allocation10 + $0x18] sm:$0xff] }
 0x489   :  { %v1357_v20 = vsel %vm1355_vm7, %v1349_v19, 0  ;;  %v1892_v19 = vld [vmem:[#allocation10 + $0x10] sm:$0xff] }
 0x48a   :  { %7316 = vmatpush3.bf16.msra.mxu1 %v1357_v20 }
 0x48b   :  { %7321 = vmatprep.subr.bf16.mxu1 %v8215_v0 }
 0x48d   :  { %7318 = vmatmul.mubr.msk.bf16.vlgmr.msra.gmra.mxu1 %vm1351_vm8, %v1350_v21  ;;  %v1890_v21 = vld [vmem:[#allocation10] sm:$0xff] }
 0x48e   :  { %7322 = vmatpush3.bf16.msra.mxu1 %v1357_v20  ;;  %7323 = vmatprep.mubr.msk.bf16.mxu1 %vm8216_vm0, %v8215_v0 }
 0x48f   :  { %7327 = vmatprep.subr.bf16.mxu1 %v8215_v0 }
 0x495   :  { %7324 = vmatmul.mubr.msk.bf16.vlgmr.msra.gmra.mxu1 %vm1351_vm8, %v1400_v22 }
 0x496   :  { %7328 = vmatpush3.bf16.msra.mxu1 %v1357_v20  ;;  %7329 = vmatprep.mubr.msk.bf16.mxu1 %vm8216_vm0, %v8215_v0 }
 0x497   :  { %7333 = vmatprep.subr.bf16.mxu1 %v8215_v0 }
 0x49d   :  { %7330 = vmatmul.mubr.msk.bf16.vlgmr.msra.gmra.mxu1 %vm1351_vm8, %v1445_v23 }
 0x49e   :  { %7334 = vmatpush3.bf16.msra.mxu1 %v1357_v20  ;;  %7335 = vmatprep.mubr.msk.bf16.mxu1 %vm8216_vm0, %v8215_v0  ;;  %v1891_v20 = vld [vmem:[#allocation10 + $0x8] sm:$0xff] }
 0x49f   :  { %6749 = vmatprep.subr.bf16.mxu1 %v7783_v24 }
 0x4a5   :  { %7336 = vmatmul.mubr.msk.bf16.vlgmr.msra.gmra.mxu1 %vm1351_vm8, %v1490_v25 }
 0x4a6   :  { %6750 = vmatpush3.bf16.msra.mxu1 %v7785_v26 }
 0x4a7   :  { %6751 = vmatprep.subr.bf16.mxu1 %v7787_v28 }
 0x4aa   :  { %6752 = vmatpush3.bf16.msra.mxu1 %v7789_v30 }
 0x4ab   :  { %6753 = vmatprep.subr.bf16.mxu1 %v7791_v32 }
 0x4ae   :  { %6754 = vmatpush3.bf16.msra.mxu1 %v7793_v34 }
 0x4af   :  { %6755 = vmatprep.subr.bf16.mxu1 %v7795_v36 }
 0x4b2   :  { %6756 = vmatpush3.bf16.msra.mxu1 %v7797_v38 }
 0x4b3   :  { %6757 = vmatprep.subr.bf16.mxu1 %v7798_v39 }
 0x4b6   :  { %6758 = vmatpush3.bf16.msra.mxu1 %v7799_v40 }
 0x4b7   :  { %6759 = vmatprep.subr.bf16.mxu1 %v7800_v41 }
 0x4ba   :  { %6760 = vmatpush3.bf16.msra.mxu1 %v7801_v42 }
 0x4bb   :  { %6761 = vmatprep.subr.bf16.mxu1 %v7802_v43 }
 0x4be   :  { %6762 = vmatpush3.bf16.msra.mxu1 %v7803_v44 }
 0x4bf   :  { %6763 = vmatprep.subr.bf16.mxu1 %v7804_v45 }
 0x4c2   :  { %6764 = vmatpush3.bf16.msra.mxu1 %v7805_v46 }
 0x4c3   :  { %7374 = vmatprep.subr.bf16.mxu1 %v8215_v0 }
 0x54d   :  { %v1393_v47 = vpop.f32.mrf.mxu1 }
 0x54e   :  { %v1534_v53 = vpack.c.bf16 %v1393_v47, %v1393_v47 }
 0x54f   :  { %v7319_v48 = vpop.f32.mrf.mxu1 }
 0x551   :  { %v1396_v49 = vpop.f32.mrf.mxu1 }
 0x552   :  { %v7806_v49 = vld [vmem:[#allocation6 + $0x78] sm:$0xff]  }
 0x553   :  { %v7320_v50 = vpop.f32.mrf.mxu1 }
 0x554   :  { %v7807_v50 = vld [vmem:[#allocation6 + $0x38] sm:$0xff]  }
 0x555   :  { %v1438_v51 = vpop.f32.mrf.mxu1 }
 0x556   :  { %v1535_v52 = vpack.c.bf16 %v1438_v51, %v1438_v51  ;;  %v7808_v51 = vld [vmem:[#allocation6 + $0x70] sm:$0xff]  }
 0x557   :  { %v7325_v54 = vpop.f32.mrf.mxu1 }
 0x558   :  { %1826 = vmatprep.mubr.bf16.mxu0 %v1535_v52  ;;  %v7809_v52 = vld [vmem:[#allocation6 + $0x30] sm:$0xff]   ;;  %v7811_v54 = vld [vmem:[#allocation6 + $0x28] sm:$0xff]  }
 0x559   :  { %v1441_v55 = vpop.f32.mrf.mxu1  ;;  %1827 = vmatmul.mubr.bf16.vlgmr.msra.gmra.mxu0 %v1534_v53  ;;  %v7810_v53 = vld [vmem:[#allocation6 + $0x68] sm:$0xff]  }
 0x55a   :  { %7371 = vmatprep.mubr.msk.f32.mxu0 %vm8216_vm0, %v8215_v0  ;;  %7340 = vmatpush3.msra.mxu0 %v1905_v4  ;;  %v7812_v55 = vld [vmem:[#allocation6 + $0x60] sm:$0xff]  }
 0x55b   :  { %v7326_v56 = vpop.f32.mrf.mxu1  ;;  %7341 = vmatprep.subr.mxu0 %v8215_v0 }
 0x55c   :  { %7342 = vmatpush3.msra.mxu0 %v1904_v5  ;;  %v7813_v56 = vld [vmem:[#allocation6 + $0x20] sm:$0xff]  }
 0x55d   :  { %v1483_v57 = vpop.f32.mrf.mxu1  ;;  %7343 = vmatprep.subr.mxu0 %v8215_v0 }
 0x55e   :  { %v1536_v63 = vpack.c.bf16 %v1483_v57, %v1483_v57  ;;  %7344 = vmatpush3.msra.mxu0 %v1903_v6  ;;  %v7814_v57 = vld [vmem:[#allocation6 + $0x58] sm:$0xff]  }
 0x55f   :  { %v7331_v58 = vpop.f32.mrf.mxu1  ;;  %7345 = vmatprep.subr.mxu0 %v8215_v0 }
 0x560   :  { %7346 = vmatpush3.msra.mxu0 %v1902_v7  ;;  %v7816_v58 = vld [vmem:[#allocation6 + $0x18] sm:$0xff]  }
 0x561   :  { %v1486_v59 = vpop.f32.mrf.mxu1  ;;  %7347 = vmatprep.subr.mxu0 %v8215_v0 }
 0x562   :  { %7348 = vmatpush3.msra.mxu0 %v1901_v8 }
 0x563   :  { %v7332_v60 = vpop.f32.mrf.mxu1  ;;  %7349 = vmatprep.subr.mxu0 %v8215_v0 }
 0x564   :  { %7350 = vmatpush3.msra.mxu0 %v1900_v9 }
 0x565   :  { %v1528_v61 = vpop.f32.mrf.mxu1  ;;  %7351 = vmatprep.subr.mxu0 %v8215_v0 }
 0x566   :  { %v1537_v62 = vpack.c.bf16 %v1528_v61, %v1528_v61  ;;  %7352 = vmatpush3.msra.mxu0 %v1899_v11 }
 0x567   :  { %v7337_v1 = vpop.f32.mrf.mxu1  ;;  %7353 = vmatprep.subr.mxu0 %v8215_v0 }
 0x568   :  { %1866 = vmatprep.mubr.bf16.mxu1 %v1537_v62  ;;  %7354 = vmatpush3.msra.mxu0 %v1898_v13 }
 0x569   :  { %v1531_v2 = vpop.f32.mrf.mxu1  ;;  %1867 = vmatmul.mubr.bf16.vlgmr.msra.gmra.mxu1 %v1536_v63  ;;  %7355 = vmatprep.subr.mxu0 %v8215_v0 }
 0x56a   :  { %7376 = vmatprep.mubr.msk.bf16.mxu1 %vm8216_vm0, %v8215_v0  ;;  %7356 = vmatpush3.msra.mxu0 %v1897_v14 }
 0x56b   :  { %v7338_v3 = vpop.f32.mrf.mxu1  ;;  %7357 = vmatprep.subr.mxu0 %v8215_v0 }
 0x56c   :  { %7358 = vmatpush3.msra.mxu0 %v1896_v15  ;;  %v1999_v15 = vld [vmem:[%s9333_s7] sm:$0x3] }
 0x56d   :  { %7359 = vmatprep.subr.mxu0 %v8215_v0 }
 0x56e   :  { %7360 = vmatpush3.msra.mxu0 %v1895_v16  ;;  %v6319_v16 = vld [vmem:[%s9333_s7 + $0x2] sm:$0x3] }
 0x56f   :  { %7361 = vmatprep.subr.mxu0 %v8215_v0 }
 0x570   :  { %7362 = vmatpush3.msra.mxu0 %v1894_v17  ;;  %v6321_v17 = vld [vmem:[%s9333_s7 + $0x4] sm:$0x3] }
 0x571   :  { %7363 = vmatprep.subr.mxu0 %v8215_v0 }
 0x572   :  { %7364 = vmatpush3.msra.mxu0 %v1893_v18  ;;  %v7815_v18 = vld [vmem:[#allocation6 + $0xf8] sm:$0xff]  }
 0x573   :  { %7365 = vmatprep.subr.mxu0 %v8215_v0 }
 0x574   :  { %7366 = vmatpush3.msra.mxu0 %v1892_v19  ;;  %v6323_v19 = vld [vmem:[%s9333_s7 + $0x6] sm:$0x3] }
 0x575   :  { %7367 = vmatprep.subr.mxu0 %v8215_v0 }
 0x576   :  { %7368 = vmatpush3.msra.mxu0 %v1891_v20  ;;  %v7817_v20 = vld [vmem:[#allocation6 + $0xb8] sm:$0xff]  }
 0x577   :  { %7369 = vmatprep.subr.mxu0 %v8215_v0 }
 0x578   :  { %7370 = vmatpush3.msra.mxu0 %v1890_v21  ;;  %v7818_v21 = vld [vmem:[#allocation6 + $0x50] sm:$0xff]  }
 0x579   :  { %6796 = vmatprep.subr.bf16.mxu0 %v7806_v49 }
 0x619   :  { %v6743_v22 = vpop.f32.mrf.mxu0 }
 0x61b   :  { %v6744_v23 = vpop.f32.mrf.mxu0 }
 0x61c   :  { %v6745_v28 = vadd.f32 %v6744_v23, %v6743_v22  ;;  %v7819_v22 = vld [vmem:[#allocation6 + $0xf0] sm:$0xff]  }
 0x61d   :  { %v6746_v24 = vpop.f32.mrf.mxu0  ;;  %v7820_v23 = vld [vmem:[#allocation6 + $0x10] sm:$0xff]  }
 0x61e   :  { %v7821_v24 = vld [vmem:[#allocation6 + $0xb0] sm:$0xff]  }
 0x61f   :  { %v6747_v25 = vpop.f32.mrf.mxu0 }
 0x620   :  { %v7822_v25 = vld [vmem:[#allocation6 + $0x48] sm:$0xff]  }
 0x629   :  { %v6765_v26 = vpop.f32.mrf.mxu1 }
 0x62b   :  { %v6766_v27 = vpop.f32.mrf.mxu1 }
 0x62c   :  { %v6767_v29 = vadd.f32 %v6766_v27, %v6765_v26  ;;  %v7823_v26 = vld [vmem:[#allocation6 + $0xe8] sm:$0xff]  }
 0x62d   :  { %v6768_v30 = vpop.f32.mrf.mxu1  ;;  %v7824_v27 = vld [vmem:[#allocation6 + $0x8] sm:$0xff]  }
 0x62e   :  { %v1869_v31 = vadd.f32 %v6767_v29, %v6745_v28  ;;  %v7825_v28 = vld [vmem:[#allocation6 + $0xa8] sm:$0xff]   ;;  %v7826_v29 = vld [vmem:[#allocation6 + $0x40] sm:$0xff]  }
 0x62f   :  { %v6769_v32 = vpop.f32.mrf.mxu1  ;;  %v7827_v30 = vld [vmem:[#allocation6 + $0xe0] sm:$0xff]  }
 0x630   :  { %v1874_v33 = vsel %vm1355_vm7, %v1869_v31, 0.0  ;;  %v1881_v34 = vmul.f32 %v1869_v31, %v1869_v31  ;;  %v7829_v32 = vld [vmem:[#allocation6 + $0xa0] sm:$0xff]  }
 0x631   :  { %v1875_v35 = vrot.slane %v1874_v33, 4 }
 0x632   :  { %v1882_v36 = vsel %vm1355_vm7, %v1881_v34, 0.0  ;;  %v7831_v34 = vld [vmem:[#allocation6 + $0x98] sm:$0xff]  }
 0x633   :  { %v1876_v37 = vadd.f32 %v1875_v35, %v1874_v33  ;;  %v1883_v38 = vrot.slane %v1882_v36, 4  ;;  %v7830_v33 = vld [vmem:[#allocation6 + $0xd8] sm:$0xff]   ;;  %v7832_v35 = vld [vmem:[#allocation6 + $0xd0] sm:$0xff]  }
 0x635   :  { %v1877_v39 = vrot.slane %v1876_v37, 2  ;;  %v1884_v40 = vadd.f32 %v1883_v38, %v1882_v36  ;;  %v7833_v36 = vld [vmem:[#allocation6 + $0x90] sm:$0xff]   ;;  %v7835_v38 = vld [vmem:[#allocation6 + $0x88] sm:$0xff]  }
 0x637   :  { %v1878_v41 = vadd.f32 %v1877_v39, %v1876_v37  ;;  %v1885_v42 = vrot.slane %v1884_v40, 2  ;;  %v7834_v37 = vld [vmem:[#allocation6 + $0xc8] sm:$0xff]   ;;  %v7836_v39 = vld [vmem:[#allocation6 + $0xc0] sm:$0xff]  }
 0x639   :  { %v1879_v43 = vrot.slane %v1878_v41, 1  ;;  %v1886_v44 = vadd.f32 %v1885_v42, %v1884_v40  ;;  %v7837_v40 = vld [vmem:[#allocation6 + $0x80] sm:$0xff]  }
 0x63b   :  { %v1887_v45 = vrot.slane %v1886_v44, 1  ;;  %v1880_v46 = vadd.f32 %v1879_v43, %v1878_v41 }
 0x63d   :  { %v1888_v47 = vadd.f32 %v1887_v45, %v1886_v44 }
 0x63f   :  { %v1889_v48 = vsel %vm1239_vm5, %v1880_v46, %v1888_v47 }
 0x640   :  { %7372 = vmatmul.mubr.f32.vlgmr.msra.gmra.mxu0 %v1889_v48 }
 0x641   :  { %6797 = vmatpush3.bf16.msra.mxu0 %v7807_v50 }
 0x642   :  { %6798 = vmatprep.subr.bf16.mxu0 %v7808_v51 }
 0x645   :  { %6799 = vmatpush3.bf16.msra.mxu0 %v7809_v52 }
 0x646   :  { %6800 = vmatprep.subr.bf16.mxu0 %v7810_v53 }
 0x649   :  { %6801 = vmatpush3.bf16.msra.mxu0 %v7811_v54 }
 0x64a   :  { %6802 = vmatprep.subr.bf16.mxu0 %v7812_v55 }
 0x64d   :  { %6803 = vmatpush3.bf16.msra.mxu0 %v7813_v56 }
 0x64e   :  { %6804 = vmatprep.subr.bf16.mxu0 %v7814_v57 }
 0x651   :  { %6805 = vmatpush3.bf16.msra.mxu0 %v7816_v58 }
 0x652   :  { %6806 = vmatprep.subr.bf16.mxu0 %v7818_v21 }
 0x655   :  { %6807 = vmatpush3.bf16.msra.mxu0 %v7820_v23 }
 0x656   :  { %6808 = vmatprep.subr.bf16.mxu0 %v7822_v25 }
 0x659   :  { %6809 = vmatpush3.bf16.msra.mxu0 %v7824_v27 }
 0x65a   :  { %6810 = vmatprep.subr.bf16.mxu0 %v7826_v29 }
 0x700   :  { %v1972_v59 = vpop.f32.mrf.mxu0 }
 0x701   :  { %v1976_v60 = vmul.f32 0.0625, %v1972_v59 }
 0x702   :  { %v7373_v61 = vpop.f32.mrf.mxu0 }
 0x703   :  { %v1977_v62 = vmul.f32 %v1976_v60, %v1976_v60  ;;  %v1986_v4 = vrot.slane %v1976_v60, %v8636_v10  ;;  %v2555_v61 = vld [vmem:[#allocation12 + $0x78] sm:$0xff] }
 0x705   :  { %v1979_v63 = vrot.slane %v1977_v62, 7  ;;  %v1987_v6 = vsub.f32 %v1869_v31, %v1986_v4  ;;  %v7828_v31 = vld [vmem:[#allocation6] sm:$0xff]   ;;  %v2554_v62 = vld [vmem:[#allocation12 + $0x70] sm:$0xff]  ;;  %v2549_v4 = vld [vmem:[#allocation12 + $0x48] sm:$0xff] }
 0x706   :  { %6811 = vmatpush3.bf16.msra.mxu0 %v7828_v31 }
 0x707   :  { %v1981_v1 = vsub.f32 %v1976_v60, %v1979_v63  ;;  %7398 = vmatprep.subr.mxu0 %v8215_v0  ;;  %v2553_v63 = vld [vmem:[#allocation12 + $0x68] sm:$0xff] }
 0x709   :  { %v1982_v2 = vmax.f32 %v1981_v1, 0.0  ;;  %v2552_v1 = vld [vmem:[#allocation12 + $0x60] sm:$0xff] }
 0x70b   :  { %v1988_v3 = vadd.f32 1e-05, %v1982_v2  ;;  %v2551_v2 = vld [vmem:[#allocation12 + $0x58] sm:$0xff] }
 0x70d   :  { %8036 = vrsqrt.f32 %v1988_v3  ;;  %v2550_v3 = vld [vmem:[#allocation12 + $0x50] sm:$0xff] }
 0x71a   :  { %v8037_v5 = vpop.eup %8036 }
 0x71b   :  { %v1993_v7 = vrot.slane %v8037_v5, %v8639_v12  ;;  %v2548_v5 = vld [vmem:[#allocation12 + $0x40] sm:$0xff] }
 0x71d   :  { %v1994_v8 = vmul.f32 %v1993_v7, %v1987_v6  ;;  %v2547_v6 = vld [vmem:[#allocation12 + $0x38] sm:$0xff]  ;;  %v2546_v7 = vld [vmem:[#allocation12 + $0x30] sm:$0xff] }
 0x71f   :  { %vm1995_vm9 = vcmp.gt.f32.partialorder %v1994_v8, 0.0  ;;  %v1996_v9 = vmul.f32 0.2, %v1994_v8 }
 0x721   :  { %v1997_v11 = vsel %vm1995_vm9, %v1994_v8, %v1996_v9  ;;  %v2545_v8 = vld [vmem:[#allocation12 + $0x28] sm:$0xff]  ;;  %v2544_v9 = vld [vmem:[#allocation12 + $0x20] sm:$0xff] }
 0x722   :  { %v1998_v13 = vpack.c.bf16 %v1997_v11, %v1997_v11  ;;  %v2543_v11 = vld [vmem:[#allocation12 + $0x18] sm:$0xff] }
 0x724   :  { %v2006_v14 = vsel %vm2004_vm10, %v1998_v13, 0  ;;  %v2542_v13 = vld [vmem:[#allocation12 + $0x10] sm:$0xff] }
 0x725   :  { %7375 = vmatpush3.bf16.msra.mxu1 %v2006_v14 }
 0x726   :  { %7380 = vmatprep.subr.bf16.mxu1 %v8215_v0 }
 0x728   :  { %7377 = vmatmul.mubr.msk.bf16.vlgmr.msra.gmra.mxu1 %vm2000_vm11, %v1999_v15  ;;  %v2540_v15 = vld [vmem:[#allocation12] sm:$0xff] }
 0x729   :  { %7381 = vmatpush3.bf16.msra.mxu1 %v2006_v14  ;;  %7382 = vmatprep.mubr.msk.bf16.mxu1 %vm8216_vm0, %v8215_v0 }
 0x72a   :  { %7386 = vmatprep.subr.bf16.mxu1 %v8215_v0 }
 0x730   :  { %7383 = vmatmul.mubr.msk.bf16.vlgmr.msra.gmra.mxu1 %vm2000_vm11, %v6319_v16 }
 0x731   :  { %7387 = vmatpush3.bf16.msra.mxu1 %v2006_v14  ;;  %7388 = vmatprep.mubr.msk.bf16.mxu1 %vm8216_vm0, %v8215_v0 }
 0x732   :  { %7392 = vmatprep.subr.bf16.mxu1 %v8215_v0 }
 0x738   :  { %7389 = vmatmul.mubr.msk.bf16.vlgmr.msra.gmra.mxu1 %vm2000_vm11, %v6321_v17 }
 0x739   :  { %7393 = vmatpush3.bf16.msra.mxu1 %v2006_v14  ;;  %7394 = vmatprep.mubr.msk.bf16.mxu1 %vm8216_vm0, %v8215_v0  ;;  %v2541_v14 = vld [vmem:[#allocation12 + $0x8] sm:$0xff] }
 0x73a   :  { %6818 = vmatprep.subr.bf16.mxu1 %v7815_v18 }
 0x740   :  { %7395 = vmatmul.mubr.msk.bf16.vlgmr.msra.gmra.mxu1 %vm2000_vm11, %v6323_v19 }
 0x741   :  { %6819 = vmatpush3.bf16.msra.mxu1 %v7817_v20 }
 0x742   :  { %6820 = vmatprep.subr.bf16.mxu1 %v7819_v22 }
 0x745   :  { %6821 = vmatpush3.bf16.msra.mxu1 %v7821_v24 }
 0x746   :  { %6822 = vmatprep.subr.bf16.mxu1 %v7823_v26 }
 0x749   :  { %6823 = vmatpush3.bf16.msra.mxu1 %v7825_v28 }
 0x74a   :  { %6824 = vmatprep.subr.bf16.mxu1 %v7827_v30 }
 0x74d   :  { %6825 = vmatpush3.bf16.msra.mxu1 %v7829_v32 }
 0x74e   :  { %6826 = vmatprep.subr.bf16.mxu1 %v7830_v33 }
 0x751   :  { %6827 = vmatpush3.bf16.msra.mxu1 %v7831_v34 }
 0x752   :  { %6828 = vmatprep.subr.bf16.mxu1 %v7832_v35 }
 0x755   :  { %6829 = vmatpush3.bf16.msra.mxu1 %v7833_v36 }
 0x756   :  { %6830 = vmatprep.subr.bf16.mxu1 %v7834_v37 }
 0x759   :  { %6831 = vmatpush3.bf16.msra.mxu1 %v7835_v38 }
 0x75a   :  { %6832 = vmatprep.subr.bf16.mxu1 %v7836_v39 }
 0x75d   :  { %6833 = vmatpush3.bf16.msra.mxu1 %v7837_v40 }
 0x75e   :  { %7433 = vmatprep.subr.bf16.mxu1 %v8215_v0 }
 0x7e8   :  { %v2042_v41 = vpop.f32.mrf.mxu1 }
 0x7e9   :  { %v2183_v47 = vpack.c.bf16 %v2042_v41, %v2042_v41 }
 0x7ea   :  { %v7378_v42 = vpop.f32.mrf.mxu1 }
 0x7ec   :  { %v2045_v43 = vpop.f32.mrf.mxu1 }
 0x7ed   :  { %v7838_v43 = vld [vmem:[#allocation7 + $0x78] sm:$0xff]  }
 0x7ee   :  { %v7379_v44 = vpop.f32.mrf.mxu1 }
 0x7ef   :  { %v7839_v44 = vld [vmem:[#allocation7 + $0x38] sm:$0xff]  }
 0x7f0   :  { %v2087_v45 = vpop.f32.mrf.mxu1 }
 0x7f1   :  { %v2184_v46 = vpack.c.bf16 %v2087_v45, %v2087_v45  ;;  %v7840_v45 = vld [vmem:[#allocation7 + $0x70] sm:$0xff]  }
 0x7f2   :  { %v7384_v48 = vpop.f32.mrf.mxu1 }
 0x7f3   :  { %2475 = vmatprep.mubr.bf16.mxu0 %v2184_v46  ;;  %v7841_v46 = vld [vmem:[#allocation7 + $0x30] sm:$0xff]   ;;  %v7843_v48 = vld [vmem:[#allocation7 + $0x28] sm:$0xff]  }
 0x7f4   :  { %v2090_v49 = vpop.f32.mrf.mxu1  ;;  %2476 = vmatmul.mubr.bf16.vlgmr.msra.gmra.mxu0 %v2183_v47  ;;  %v7842_v47 = vld [vmem:[#allocation7 + $0x68] sm:$0xff]  }
 0x7f5   :  { %7430 = vmatprep.mubr.msk.f32.mxu0 %vm8216_vm0, %v8215_v0  ;;  %7399 = vmatpush3.msra.mxu0 %v2555_v61  ;;  %v7844_v49 = vld [vmem:[#allocation7 + $0x60] sm:$0xff]  }
 0x7f6   :  { %v7385_v50 = vpop.f32.mrf.mxu1  ;;  %7400 = vmatprep.subr.mxu0 %v8215_v0 }
 0x7f7   :  { %7401 = vmatpush3.msra.mxu0 %v2554_v62  ;;  %v7845_v50 = vld [vmem:[#allocation7 + $0x20] sm:$0xff]  }
 0x7f8   :  { %v2132_v51 = vpop.f32.mrf.mxu1  ;;  %7402 = vmatprep.subr.mxu0 %v8215_v0 }
 0x7f9   :  { %v2185_v57 = vpack.c.bf16 %v2132_v51, %v2132_v51  ;;  %7403 = vmatpush3.msra.mxu0 %v2553_v63  ;;  %v7846_v51 = vld [vmem:[#allocation7 + $0x58] sm:$0xff]  }
 0x7fa   :  { %v7390_v52 = vpop.f32.mrf.mxu1  ;;  %7404 = vmatprep.subr.mxu0 %v8215_v0 }
 0x7fb   :  { %7405 = vmatpush3.msra.mxu0 %v2552_v1  ;;  %v7848_v52 = vld [vmem:[#allocation7 + $0x18] sm:$0xff]  }
 0x7fc   :  { %v2135_v53 = vpop.f32.mrf.mxu1  ;;  %7406 = vmatprep.subr.mxu0 %v8215_v0 }
 0x7fd   :  { %7407 = vmatpush3.msra.mxu0 %v2551_v2 }
 0x7fe   :  { %v7391_v54 = vpop.f32.mrf.mxu1  ;;  %7408 = vmatprep.subr.mxu0 %v8215_v0 }
 0x7ff   :  { %7409 = vmatpush3.msra.mxu0 %v2550_v3  ;;  %v8217_v3 = vmov 65535  }
 0x800   :  { %v2177_v55 = vpop.f32.mrf.mxu1  ;;  %7410 = vmatprep.subr.mxu0 %v8215_v0 }
 0x801   :  { %v2186_v56 = vpack.c.bf16 %v2177_v55, %v2177_v55  ;;  %7411 = vmatpush3.msra.mxu0 %v2549_v4  ;;  %v2654_v4 = vsel %vm1239_vm5, 4294967295, %v8217_v3  ;;  %v7871_v3 = vld [vmem:[#allocation2 + $0x8] sm:$0xff]  }
 0x802   :  { %v7396_v58 = vpop.f32.mrf.mxu1  ;;  %7412 = vmatprep.subr.mxu0 %v8215_v0 }
 0x803   :  { %2515 = vmatprep.mubr.bf16.mxu1 %v2186_v56  ;;  %7413 = vmatpush3.msra.mxu0 %v2548_v5 }
 0x804   :  { %v2180_v59 = vpop.f32.mrf.mxu1  ;;  %2516 = vmatmul.mubr.bf16.vlgmr.msra.gmra.mxu1 %v2185_v57  ;;  %7414 = vmatprep.subr.mxu0 %v8215_v0 }
 0x805   :  { %7435 = vmatprep.mubr.msk.bf16.mxu1 %vm8216_vm0, %v8215_v0  ;;  %7415 = vmatpush3.msra.mxu0 %v2547_v6  ;;  %v8802_v6 = vsel %vm2004_vm10, %v2654_v4, 0  ;;  %v7873_v4 = vld [vmem:[#allocation2 + $0x18] sm:$0xff]  }
 0x806   :  { %v7397_v60 = vpop.f32.mrf.mxu1  ;;  %7416 = vmatprep.subr.mxu0 %v8215_v0 }
 0x807   :  { %7417 = vmatpush3.msra.mxu0 %v2546_v7 }
 0x808   :  { %7418 = vmatprep.subr.mxu0 %v8215_v0 }
 0x809   :  { %7419 = vmatpush3.msra.mxu0 %v2545_v8 }
 0x80a   :  { %7420 = vmatprep.subr.mxu0 %v8215_v0 }
 0x80b   :  { %7421 = vmatpush3.msra.mxu0 %v2544_v9 }
 0x80c   :  { %7422 = vmatprep.subr.mxu0 %v8215_v0 }
 0x80d   :  { %7423 = vmatpush3.msra.mxu0 %v2543_v11  ;;  %v2649_v11 = vld [vmem:[%s9335_s9] sm:$0x1] }
 0x80e   :  { %7424 = vmatprep.subr.mxu0 %v8215_v0 }
 0x80f   :  { %7425 = vmatpush3.msra.mxu0 %v2542_v13  ;;  %v6358_v13 = vld [vmem:[%s9335_s9 + $0x1] sm:$0x1] }
 0x810   :  { %7426 = vmatprep.subr.mxu0 %v8215_v0 }
 0x811   :  { %7427 = vmatpush3.msra.mxu0 %v2541_v14  ;;  %v6360_v14 = vld [vmem:[%s9335_s9 + $0x2] sm:$0x1] }
 0x812   :  { %7428 = vmatprep.subr.mxu0 %v8215_v0 }
 0x813   :  { %7429 = vmatpush3.msra.mxu0 %v2540_v15  ;;  %v7847_v15 = vld [vmem:[#allocation7 + $0xf8] sm:$0xff]  }
 0x814   :  { %6865 = vmatprep.subr.bf16.mxu0 %v7838_v43  ;;  %v6399_v43 = vld [vmem:[%s9326_s0 + $0x38] sm:$0xff] }
 0x8b4   :  { %v6812_v16 = vpop.f32.mrf.mxu0 }
 0x8b6   :  { %v6813_v17 = vpop.f32.mrf.mxu0 }
 0x8b7   :  { %v6814_v22 = vadd.f32 %v6813_v17, %v6812_v16  ;;  %v6362_v16 = vld [vmem:[%s9335_s9 + $0x3] sm:$0x1] }
 0x8b8   :  { %v6815_v18 = vpop.f32.mrf.mxu0  ;;  %v7849_v17 = vld [vmem:[#allocation7 + $0xb8] sm:$0xff]  }
 0x8b9   :  { %v7850_v18 = vld [vmem:[#allocation7 + $0x50] sm:$0xff]  }
 0x8ba   :  { %v6816_v19 = vpop.f32.mrf.mxu0 }
 0x8bb   :  { %v7851_v19 = vld [vmem:[#allocation7 + $0xf0] sm:$0xff]  }
 0x8c4   :  { %v6834_v20 = vpop.f32.mrf.mxu1 }
 0x8c6   :  { %v6835_v21 = vpop.f32.mrf.mxu1 }
 0x8c7   :  { %v6836_v23 = vadd.f32 %v6835_v21, %v6834_v20  ;;  %v7852_v20 = vld [vmem:[#allocation7 + $0x10] sm:$0xff]  }
 0x8c8   :  { %v6837_v24 = vpop.f32.mrf.mxu1  ;;  %v7853_v21 = vld [vmem:[#allocation7 + $0xb0] sm:$0xff]  }
 0x8c9   :  { %v2518_v25 = vadd.f32 %v6836_v23, %v6814_v22  ;;  %v7854_v22 = vld [vmem:[#allocation7 + $0x48] sm:$0xff]  }
 0x8ca   :  { %v6838_v26 = vpop.f32.mrf.mxu1  ;;  %v7855_v23 = vld [vmem:[#allocation7 + $0xe8] sm:$0xff]  }
 0x8cb   :  { %v2524_v27 = vsel %vm2523_vm12, %v2518_v25, 0.0  ;;  %v2531_v28 = vmul.f32 %v2518_v25, %v2518_v25  ;;  %v7856_v24 = vld [vmem:[#allocation7 + $0x8] sm:$0xff]   ;;  %v7858_v26 = vld [vmem:[#allocation7 + $0x40] sm:$0xff]  }
 0x8cc   :  { %v2525_v29 = vrot.slane %v2524_v27, 4 }
 0x8cd   :  { %v2532_v30 = vsel %vm2523_vm12, %v2531_v28, 0.0  ;;  %v7860_v28 = vld [vmem:[#allocation7] sm:$0xff]  }
 0x8ce   :  { %v2526_v31 = vadd.f32 %v2525_v29, %v2524_v27  ;;  %v2533_v32 = vrot.slane %v2532_v30, 4  ;;  %v7859_v27 = vld [vmem:[#allocation7 + $0xe0] sm:$0xff]  }
 0x8cf   :  { %v7861_v29 = vld [vmem:[#allocation7 + $0xa0] sm:$0xff]  }
 0x8d0   :  { %v2527_v33 = vrot.slane %v2526_v31, 2  ;;  %v2534_v34 = vadd.f32 %v2533_v32, %v2532_v30  ;;  %v7862_v30 = vld [vmem:[#allocation7 + $0xd8] sm:$0xff]   ;;  %v7864_v32 = vld [vmem:[#allocation7 + $0xd0] sm:$0xff]  }
 0x8d2   :  { %v2528_v35 = vadd.f32 %v2527_v33, %v2526_v31  ;;  %v2535_v36 = vrot.slane %v2534_v34, 2  ;;  %v7863_v31 = vld [vmem:[#allocation7 + $0x98] sm:$0xff]   ;;  %v7865_v33 = vld [vmem:[#allocation7 + $0x90] sm:$0xff]  }
 0x8d4   :  { %v2529_v37 = vrot.slane %v2528_v35, 1  ;;  %v2536_v38 = vadd.f32 %v2535_v36, %v2534_v34  ;;  %v7866_v34 = vld [vmem:[#allocation7 + $0xc8] sm:$0xff]   ;;  %v7868_v36 = vld [vmem:[#allocation7 + $0xc0] sm:$0xff]  }
 0x8d6   :  { %v2537_v39 = vrot.slane %v2536_v38, 1  ;;  %v2530_v40 = vadd.f32 %v2529_v37, %v2528_v35  ;;  %v7867_v35 = vld [vmem:[#allocation7 + $0x88] sm:$0xff]   ;;  %v7869_v37 = vld [vmem:[#allocation7 + $0x80] sm:$0xff]  }
 0x8d8   :  { %v2538_v41 = vadd.f32 %v2537_v39, %v2536_v38 }
 0x8da   :  { %v2539_v42 = vsel %vm1239_vm5, %v2530_v40, %v2538_v41 }
 0x8db   :  { %7431 = vmatmul.mubr.f32.vlgmr.msra.gmra.mxu0 %v2539_v42  ;;  %v6398_v42 = vld [vmem:[%s9326_s0 + $0x30] sm:$0xff] }
 0x8dc   :  { %6866 = vmatpush3.bf16.msra.mxu0 %v7839_v44 }
 0x8dd   :  { %6867 = vmatprep.subr.bf16.mxu0 %v7840_v45 }
 0x8e0   :  { %6868 = vmatpush3.bf16.msra.mxu0 %v7841_v46  ;;  %v3187_v46 = vpack.c.bf16 %v6399_v43, %v6398_v42 }
 0x8e1   :  { %6869 = vmatprep.subr.bf16.mxu0 %v7842_v47 }
 0x8e4   :  { %6870 = vmatpush3.bf16.msra.mxu0 %v7843_v48 }
 0x8e5   :  { %6871 = vmatprep.subr.bf16.mxu0 %v7844_v49  ;;  %v6396_v49 = vld [vmem:[%s9326_s0 + $0x20] sm:$0xff] }
 0x8e8   :  { %6872 = vmatpush3.bf16.msra.mxu0 %v7845_v50  ;;  %v6397_v50 = vld [vmem:[%s9326_s0 + $0x28] sm:$0xff] }
 0x8e9   :  { %6873 = vmatprep.subr.bf16.mxu0 %v7846_v51 }
 0x8ec   :  { %6874 = vmatpush3.bf16.msra.mxu0 %v7848_v52  ;;  %v3186_v52 = vpack.c.bf16 %v6397_v50, %v6396_v49 }
 0x8ed   :  { %6875 = vmatprep.subr.bf16.mxu0 %v7850_v18  ;;  %v7885_v18 = vld [vmem:[%s9328_s2 + $0xb0] sm:$0xff]  }
 0x8f0   :  { %6876 = vmatpush3.bf16.msra.mxu0 %v7852_v20  ;;  %v7886_v20 = vld [vmem:[%s9328_s2 + $0x58] sm:$0xff]  }
 0x8f1   :  { %6877 = vmatprep.subr.bf16.mxu0 %v7854_v22  ;;  %v7888_v22 = vld [vmem:[%s9328_s2 + $0x18] sm:$0xff]  }
 0x8f4   :  { %6878 = vmatpush3.bf16.msra.mxu0 %v7856_v24  ;;  %v7890_v24 = vld [vmem:[%s9328_s2 + $0x50] sm:$0xff]  }
 0x8f5   :  { %6879 = vmatprep.subr.bf16.mxu0 %v7858_v26  ;;  %v7892_v26 = vld [vmem:[%s9328_s2 + $0x10] sm:$0xff]  }
 0x8f8   :  { %6880 = vmatpush3.bf16.msra.mxu0 %v7860_v28  ;;  %v7894_v28 = vld [vmem:[%s9328_s2 + $0x48] sm:$0xff]  }
 0x8f9   :  { %7457 = vmatprep.subr.bf16.mxu0 %v8215_v0 }
 0x99b   :  { %v2622_v53 = vpop.f32.mrf.mxu0 }
 0x99c   :  { %v2626_v54 = vmul.f32 0.11111111, %v2622_v53 }
 0x99d   :  { %v7432_v55 = vpop.f32.mrf.mxu0 }
 0x99e   :  { %v2627_v56 = vmul.f32 %v2626_v54, %v2626_v54  ;;  %v2636_v61 = vrot.slane %v2626_v54, %v8636_v10  ;;  %v7870_v55 = vld [vmem:[#allocation2] sm:$0xff]  }
 0x9a0   :  { %v2629_v57 = vrot.slane %v2627_v56, 7  ;;  %v2637_v63 = vsub.f32 %v2518_v25, %v2636_v61  ;;  %v7857_v25 = vld [vmem:[#allocation7 + $0xa8] sm:$0xff]  }
 0x9a2   :  { %v2631_v58 = vsub.f32 %v2626_v54, %v2629_v57 }
 0x9a4   :  { %v2632_v59 = vmax.f32 %v2631_v58, 0.0 }
 0x9a6   :  { %v2638_v60 = vadd.f32 1e-05, %v2632_v59 }
 0x9a8   :  { %8038 = vrsqrt.f32 %v2638_v60  ;;  %v7872_v60 = vld [vmem:[#allocation2 + $0x10] sm:$0xff]  }
 0x9b5   :  { %v8039_v62 = vpop.eup %8038 }
 0x9b6   :  { %v2643_v1 = vrot.slane %v8039_v62, %v8639_v12 }
 0x9b8   :  { %v2644_v2 = vmul.f32 %v2643_v1, %v2637_v63 }
 0x9ba   :  { %v2646_v5 = vmul.f32 0.2, %v2644_v2  ;;  %vm2645_vm13 = vcmp.gt.f32.partialorder %v2644_v2, 0.0 }
 0x9bc   :  { %v2647_v7 = vsel %vm2645_vm13, %v2644_v2, %v2646_v5  ;;  %v7874_v5 = vld [vmem:[%s9328_s2 + $0x78] sm:$0xff]  }
 0x9bd   :  { %v2648_v8 = vpack.c.bf16 %v2647_v7, %v2647_v7  ;;  %v7875_v7 = vld [vmem:[%s9328_s2 + $0x38] sm:$0xff]  }
 0x9bf   :  { %v2657_v9 = vand.u32 %v8802_v6, %v2648_v8  ;;  %v7876_v8 = vld [vmem:[%s9328_s2 + $0x70] sm:$0xff]  }
 0x9c1   :  { %7434 = vmatpush3.bf16.msra.mxu1 %v2657_v9 }
 0x9c2   :  { %7439 = vmatprep.subr.bf16.mxu1 %v8215_v0 }
 0x9c4   :  { %7436 = vmatmul.mubr.msk.bf16.vlgmr.msra.gmra.mxu1 %vm2650_vm14, %v2649_v11  ;;  %v7878_v11 = vld [vmem:[%s9328_s2 + $0x68] sm:$0xff]  }
 0x9c5   :  { %7440 = vmatpush3.bf16.msra.mxu1 %v2657_v9  ;;  %7441 = vmatprep.mubr.msk.bf16.mxu1 %vm8216_vm0, %v8215_v0 }
 0x9c6   :  { %7445 = vmatprep.subr.bf16.mxu1 %v8215_v0 }
 0x9cc   :  { %7442 = vmatmul.mubr.msk.bf16.vlgmr.msra.gmra.mxu1 %vm2650_vm14, %v6358_v13  ;;  %v7879_v13 = vld [vmem:[%s9328_s2 + $0xf8] sm:$0xff]  }
 0x9cd   :  { %7446 = vmatpush3.bf16.msra.mxu1 %v2657_v9  ;;  %7447 = vmatprep.mubr.msk.bf16.mxu1 %vm8216_vm0, %v8215_v0 }
 0x9ce   :  { %7451 = vmatprep.subr.bf16.mxu1 %v8215_v0 }
 0x9d4   :  { %7448 = vmatmul.mubr.msk.bf16.vlgmr.msra.gmra.mxu1 %vm2650_vm14, %v6360_v14  ;;  %v7880_v14 = vld [vmem:[%s9328_s2 + $0x28] sm:$0xff]  }
 0x9d5   :  { %7452 = vmatpush3.bf16.msra.mxu1 %v2657_v9  ;;  %7453 = vmatprep.mubr.msk.bf16.mxu1 %vm8216_vm0, %v8215_v0  ;;  %v7877_v9 = vld [vmem:[%s9328_s2 + $0x30] sm:$0xff]  }
 0x9d6   :  { %6887 = vmatprep.subr.bf16.mxu1 %v7847_v15  ;;  %v7881_v15 = vld [vmem:[%s9328_s2 + $0xb8] sm:$0xff]  }
 0x9dc   :  { %7454 = vmatmul.mubr.msk.bf16.vlgmr.msra.gmra.mxu1 %vm2650_vm14, %v6362_v16  ;;  %v7882_v16 = vld [vmem:[%s9328_s2 + $0x60] sm:$0xff]  }
 0x9dd   :  { %6888 = vmatpush3.bf16.msra.mxu1 %v7849_v17  ;;  %v7883_v17 = vld [vmem:[%s9328_s2 + $0xf0] sm:$0xff]  }
 0x9de   :  { %6889 = vmatprep.subr.bf16.mxu1 %v7851_v19  ;;  %v7884_v19 = vld [vmem:[%s9328_s2 + $0x20] sm:$0xff]  }
 0x9e1   :  { %6890 = vmatpush3.bf16.msra.mxu1 %v7853_v21  ;;  %v7887_v21 = vld [vmem:[%s9328_s2 + $0xe8] sm:$0xff]  }
 0x9e2   :  { %6891 = vmatprep.subr.bf16.mxu1 %v7855_v23  ;;  %v7889_v23 = vld [vmem:[%s9328_s2 + $0xa8] sm:$0xff]  }
 0x9e5   :  { %6892 = vmatpush3.bf16.msra.mxu1 %v7857_v25  ;;  %v7891_v25 = vld [vmem:[%s9328_s2 + $0xe0] sm:$0xff]  }
 0x9e6   :  { %6893 = vmatprep.subr.bf16.mxu1 %v7859_v27  ;;  %v7893_v27 = vld [vmem:[%s9328_s2 + $0xa0] sm:$0xff]  }
 0x9e9   :  { %6894 = vmatpush3.bf16.msra.mxu1 %v7861_v29  ;;  %v7895_v29 = vld [vmem:[%s9328_s2 + $0xd8] sm:$0xff]  }
 0x9ea   :  { %6895 = vmatprep.subr.bf16.mxu1 %v7862_v30  ;;  %v7896_v30 = vld [vmem:[%s9328_s2 + $0x8] sm:$0xff]  }
 0x9ed   :  { %6896 = vmatpush3.bf16.msra.mxu1 %v7863_v31  ;;  %v7897_v31 = vld [vmem:[%s9328_s2 + $0x98] sm:$0xff]  }
 0x9ee   :  { %6897 = vmatprep.subr.bf16.mxu1 %v7864_v32  ;;  %v7898_v32 = vld [vmem:[%s9328_s2 + $0x40] sm:$0xff]  }
 0x9f1   :  { %6898 = vmatpush3.bf16.msra.mxu1 %v7865_v33  ;;  %v7899_v33 = vld [vmem:[%s9328_s2 + $0xd0] sm:$0xff]  }
 0x9f2   :  { %6899 = vmatprep.subr.bf16.mxu1 %v7866_v34  ;;  %v7900_v34 = vld [vmem:[%s9328_s2] sm:$0xff]  }
 0x9f5   :  { %6900 = vmatpush3.bf16.msra.mxu1 %v7867_v35  ;;  %v7901_v35 = vld [vmem:[%s9328_s2 + $0x90] sm:$0xff]  }
 0x9f6   :  { %6901 = vmatprep.subr.bf16.mxu1 %v7868_v36  ;;  %v7902_v36 = vld [vmem:[%s9328_s2 + $0xc8] sm:$0xff]  }
 0x9f9   :  { %6902 = vmatpush3.bf16.msra.mxu1 %v7869_v37  ;;  %v7903_v37 = vld [vmem:[%s9328_s2 + $0x88] sm:$0xff]  }
 0x9fa   :  { %7465 = vmatprep.subr.bf16.mxu1 %v8215_v0 }
 0xa84   :  { %v2693_v38 = vpop.f32.mrf.mxu1 }
 0xa85   :  { %v2834_v47 = vpack.c.bf16 %v2693_v38, %v2693_v38  ;;  %v7904_v38 = vld [vmem:[%s9328_s2 + $0xc0] sm:$0xff]  }
 0xa86   :  { %v7437_v39 = vpop.f32.mrf.mxu1 }
 0xa87   :  { %v7905_v39 = vld [vmem:[%s9328_s2 + $0x80] sm:$0xff]  }
 0xa88   :  { %v2696_v40 = vpop.f32.mrf.mxu1 }
 0xa8a   :  { %v7438_v41 = vpop.f32.mrf.mxu1 }
 0xa8c   :  { %v2738_v44 = vpop.f32.mrf.mxu1 }
 0xa8d   :  { %v2835_v45 = vpack.c.bf16 %v2738_v44, %v2738_v44 }
 0xa8e   :  { %v7443_v48 = vpop.f32.mrf.mxu1 }
 0xa8f   :  { %3126 = vmatprep.mubr.bf16.mxu0 %v2835_v45 }
 0xa90   :  { %v2741_v51 = vpop.f32.mrf.mxu1  ;;  %3127 = vmatmul.mubr.bf16.vlgmr.msra.gmra.mxu0 %v2834_v47 }
 0xa91   :  { %7458 = vmatpush3.bf16.msra.mxu0 %v3187_v46  ;;  %7461 = vmatprep.mubr.msk.bf16.mxu0 %vm8216_vm0, %v8215_v0 }
 0xa92   :  { %v7444_v53 = vpop.f32.mrf.mxu1  ;;  %7459 = vmatprep.subr.bf16.mxu0 %v8215_v0 }
 0xa94   :  { %v2783_v54 = vpop.f32.mrf.mxu1 }
 0xa95   :  { %7460 = vmatpush3.bf16.msra.mxu0 %v3186_v52  ;;  %v2836_v62 = vpack.c.bf16 %v2783_v54, %v2783_v54 }
 0xa96   :  { %v7449_v56 = vpop.f32.mrf.mxu1  ;;  %7473 = vmatprep.subr.bf16.mxu0 %v8215_v0 }
 0xa98   :  { %v2786_v57 = vpop.f32.mrf.mxu1  ;;  %7462 = vmatmul.mubr.msk.bf16.vlgmr.msra.gmra.mxu0 %vm156_vm1, %v7870_v55 }
 0xa99   :  { %7474 = vmatpush3.bf16.msra.mxu0 %v3187_v46  ;;  %7477 = vmatprep.mubr.msk.bf16.mxu0 %vm8216_vm0, %v8215_v0 }
 0xa9a   :  { %v7450_v58 = vpop.f32.mrf.mxu1  ;;  %7475 = vmatprep.subr.bf16.mxu0 %v8215_v0 }
 0xa9c   :  { %v2828_v59 = vpop.f32.mrf.mxu1 }
 0xa9d   :  { %v2837_v61 = vpack.c.bf16 %v2828_v59, %v2828_v59  ;;  %7476 = vmatpush3.bf16.msra.mxu0 %v3186_v52 }
 0xa9e   :  { %v7455_v63 = vpop.f32.mrf.mxu1  ;;  %6921 = vmatprep.subr.bf16.mxu0 %v7874_v5 }
 0xa9f   :  { %3166 = vmatprep.mubr.bf16.mxu1 %v2837_v61 }
 0xaa0   :  { %v2831_v1 = vpop.f32.mrf.mxu1  ;;  %3167 = vmatmul.mubr.bf16.vlgmr.msra.gmra.mxu1 %v2836_v62  ;;  %7478 = vmatmul.mubr.msk.bf16.vlgmr.msra.gmra.mxu0 %vm156_vm1, %v7872_v60 }
 0xaa1   :  { %7466 = vmatpush3.bf16.msra.mxu1 %v3187_v46  ;;  %7469 = vmatprep.mubr.msk.bf16.mxu1 %vm8216_vm0, %v8215_v0 }
 0xaa2   :  { %v7456_v2 = vpop.f32.mrf.mxu1  ;;  %7467 = vmatprep.subr.bf16.mxu1 %v8215_v0  ;;  %6922 = vmatpush3.bf16.msra.mxu0 %v7875_v7 }
 0xaa3   :  { %6923 = vmatprep.subr.bf16.mxu0 %v7876_v8 }
 0xaa5   :  { %7468 = vmatpush3.bf16.msra.mxu1 %v3186_v52 }
 0xaa6   :  { %7481 = vmatprep.subr.bf16.mxu1 %v8215_v0  ;;  %6924 = vmatpush3.bf16.msra.mxu0 %v7877_v9 }
 0xaa7   :  { %6925 = vmatprep.subr.bf16.mxu0 %v7878_v11 }
 0xaa8   :  { %7470 = vmatmul.mubr.msk.bf16.vlgmr.msra.gmra.mxu1 %vm156_vm1, %v7871_v3 }
 0xaa9   :  { %7482 = vmatpush3.bf16.msra.mxu1 %v3187_v46  ;;  %7485 = vmatprep.mubr.msk.bf16.mxu1 %vm8216_vm0, %v8215_v0 }
 0xaaa   :  { %7483 = vmatprep.subr.bf16.mxu1 %v8215_v0  ;;  %6926 = vmatpush3.bf16.msra.mxu0 %v7880_v14 }
 0xaab   :  { %6927 = vmatprep.subr.bf16.mxu0 %v7882_v16 }
 0xaad   :  { %7484 = vmatpush3.bf16.msra.mxu1 %v3186_v52 }
 0xaae   :  { %6943 = vmatprep.subr.bf16.mxu1 %v7879_v13  ;;  %6928 = vmatpush3.bf16.msra.mxu0 %v7884_v19 }
 0xaaf   :  { %6929 = vmatprep.subr.bf16.mxu0 %v7886_v20 }
 0xab0   :  { %7486 = vmatmul.mubr.msk.bf16.vlgmr.msra.gmra.mxu1 %vm156_vm1, %v7873_v4 }
 0xab1   :  { %6944 = vmatpush3.bf16.msra.mxu1 %v7881_v15 }
 0xab2   :  { %6945 = vmatprep.subr.bf16.mxu1 %v7883_v17  ;;  %6930 = vmatpush3.bf16.msra.mxu0 %v7888_v22 }
 0xab3   :  { %6931 = vmatprep.subr.bf16.mxu0 %v7890_v24 }
 0xab5   :  { %6946 = vmatpush3.bf16.msra.mxu1 %v7885_v18 }
 0xab6   :  { %6947 = vmatprep.subr.bf16.mxu1 %v7887_v21  ;;  %6932 = vmatpush3.bf16.msra.mxu0 %v7892_v26 }
 0xab7   :  { %6933 = vmatprep.subr.bf16.mxu0 %v7894_v28 }
 0xab9   :  { %6948 = vmatpush3.bf16.msra.mxu1 %v7889_v23 }
 0xaba   :  { %6949 = vmatprep.subr.bf16.mxu1 %v7891_v25  ;;  %6934 = vmatpush3.bf16.msra.mxu0 %v7896_v30 }
 0xabb   :  { %6935 = vmatprep.subr.bf16.mxu0 %v7898_v32 }
 0xabd   :  { %6950 = vmatpush3.bf16.msra.mxu1 %v7893_v27 }
 0xabe   :  { %6951 = vmatprep.subr.bf16.mxu1 %v7895_v29  ;;  %6936 = vmatpush3.bf16.msra.mxu0 %v7900_v34 }
 0xabf   :  { %7489 = vmatprep.subr.bf16.mxu0 %v8215_v0 }
 0xac1   :  { %6952 = vmatpush3.bf16.msra.mxu1 %v7897_v31 }
 0xac2   :  { %6953 = vmatprep.subr.bf16.mxu1 %v7899_v33 }
 0xac5   :  { %6954 = vmatpush3.bf16.msra.mxu1 %v7901_v35  ;;  %v3741_v35 = vld [vmem:[%s9329_s3] sm:$0xf] }
 0xac6   :  { %6955 = vmatprep.subr.bf16.mxu1 %v7902_v36  ;;  %v6441_v36 = vld [vmem:[%s9329_s3 + $0x4] sm:$0xf] }
 0xac9   :  { %6956 = vmatpush3.bf16.msra.mxu1 %v7903_v37  ;;  %v7906_v37 = vld [vmem:[%s9330_s4 + $0x78] sm:$0xff]  }
 0xaca   :  { %6957 = vmatprep.subr.bf16.mxu1 %v7904_v38  ;;  %v7911_v38 = vld [vmem:[%s9330_s4 + $0xf8] sm:$0xff]  }
 0xacd   :  { %6958 = vmatpush3.bf16.msra.mxu1 %v7905_v39  ;;  %v6443_v39 = vld [vmem:[%s9329_s3 + $0x8] sm:$0xf] }
 0xace   :  { %7495 = vmatprep.subr.bf16.mxu1 %v8215_v0 }
 0xb50   :  { %v6881_v40 = vpop.f32.mrf.mxu0 }
 0xb52   :  { %v6882_v41 = vpop.f32.mrf.mxu0 }
 0xb53   :  { %v6883_v52 = vadd.f32 %v6882_v41, %v6881_v40  ;;  %v6445_v40 = vld [vmem:[%s9329_s3 + $0xc] sm:$0xf]  ;;  %v7907_v41 = vld [vmem:[%s9330_s4 + $0x38] sm:$0xff]  }
 0xb54   :  { %v6884_v42 = vpop.f32.mrf.mxu0 }
 0xb55   :  { %v7913_v42 = vld [vmem:[%s9330_s4 + $0xb8] sm:$0xff]  }
 0xb56   :  { %v6885_v43 = vpop.f32.mrf.mxu0 }
 0xb57   :  { %v7908_v43 = vld [vmem:[%s9330_s4 + $0x70] sm:$0xff]  }
 0xb58   :  { %v3232_v44 = vpop.f32.mrf.mxu0 }
 0xb5a   :  { %v7463_v45 = vpop.f32.mrf.mxu0 }
 0xb5b   :  { %v7909_v45 = vld [vmem:[%s9330_s4 + $0x30] sm:$0xff]  }
 0xb5c   :  { %v3235_v46 = vpop.f32.mrf.mxu0 }
 0xb5d   :  { %v3392_v2 = vpack.c.bf16 %v3235_v46, %v3232_v44  ;;  %v7915_v44 = vld [vmem:[%s9330_s4 + $0xf0] sm:$0xff]  }
 0xb5e   :  { %v7464_v47 = vpop.f32.mrf.mxu0  ;;  %v7917_v46 = vld [vmem:[%s9330_s4 + $0xb0] sm:$0xff]  }
 0xb5f   :  { %v7910_v47 = vld [vmem:[%s9330_s4 + $0x68] sm:$0xff]  }
 0xb60   :  { %v6903_v48 = vpop.f32.mrf.mxu1  ;;  %v3334_v49 = vpop.f32.mrf.mxu0 }
 0xb62   :  { %v6904_v50 = vpop.f32.mrf.mxu1  ;;  %v7479_v51 = vpop.f32.mrf.mxu0 }
 0xb63   :  { %v6905_v53 = vadd.f32 %v6904_v50, %v6903_v48  ;;  %v7919_v48 = vld [vmem:[%s9330_s4 + $0xe8] sm:$0xff]   ;;  %v7914_v51 = vld [vmem:[%s9330_s4 + $0x60] sm:$0xff]  }
 0xb64   :  { %v6906_v54 = vpop.f32.mrf.mxu1  ;;  %v3337_v55 = vpop.f32.mrf.mxu0  ;;  %v7921_v50 = vld [vmem:[%s9330_s4 + $0xa8] sm:$0xff]  }
 0xb65   :  { %v3169_v56 = vadd.f32 %v6905_v53, %v6883_v52  ;;  %v3394_v9 = vpack.c.bf16 %v3337_v55, %v3334_v49  ;;  %v7912_v49 = vld [vmem:[%s9330_s4 + $0x28] sm:$0xff]   ;;  %v7923_v52 = vld [vmem:[%s9330_s4 + $0xe0] sm:$0xff]   ;;  %v7918_v55 = vld [vmem:[%s9330_s4 + $0x58] sm:$0xff]  }
 0xb66   :  { %v6907_v57 = vpop.f32.mrf.mxu1  ;;  %v7480_v58 = vpop.f32.mrf.mxu0  ;;  %v7916_v53 = vld [vmem:[%s9330_s4 + $0x20] sm:$0xff]  }
 0xb67   :  { %v3174_v59 = vsub.f32 0.0, %v3169_v56  ;;  %v7925_v54 = vld [vmem:[%s9330_s4 + $0xa0] sm:$0xff]   ;;  %v7927_v56 = vld [vmem:[%s9330_s4 + $0xd8] sm:$0xff]  }
 0xb68   :  { %v3283_v60 = vpop.f32.mrf.mxu1  ;;  %v7920_v57 = vld [vmem:[%s9330_s4 + $0x18] sm:$0xff]  }
 0xb69   :  { %v3175_v61 = vmul.f32 1.442695, %v3174_v59  ;;  %v7929_v58 = vld [vmem:[%s9330_s4 + $0x98] sm:$0xff]   ;;  %v7922_v59 = vld [vmem:[%s9330_s4 + $0x50] sm:$0xff]  }
 0xb6a   :  { %v7471_v62 = vpop.f32.mrf.mxu1 }
 0xb6b   :  { %8040 = vpow2.f32 %v3175_v61  ;;  %v7926_v61 = vld [vmem:[%s9330_s4 + $0x48] sm:$0xff]  }
 0xb6c   :  { %v3286_v63 = vpop.f32.mrf.mxu1  ;;  %v7928_v62 = vld [vmem:[%s9330_s4 + $0x8] sm:$0xff]  }
 0xb6d   :  { %v3393_v1 = vpack.c.bf16 %v3286_v63, %v3283_v60  ;;  %v7924_v60 = vld [vmem:[%s9330_s4 + $0x10] sm:$0xff]   ;;  %v7930_v63 = vld [vmem:[%s9330_s4 + $0x40] sm:$0xff]  }
 0xb6e   :  { %v7472_v3 = vpop.f32.mrf.mxu1 }
 0xb6f   :  { %3684 = vmatprep.mubr.bf16.mxu0 %v3393_v1  ;;  %v7931_v1 = vld [vmem:[%s9330_s4 + $0xd0] sm:$0xff]  }
 0xb70   :  { %v3385_v4 = vpop.f32.mrf.mxu1  ;;  %3685 = vmatmul.mubr.bf16.vlgmr.msra.gmra.mxu0 %v3392_v2  ;;  %v7932_v2 = vld [vmem:[%s9330_s4] sm:$0xff]   ;;  %v7933_v3 = vld [vmem:[%s9330_s4 + $0x90] sm:$0xff]  }
 0xb71   :  { %7491 = vmatprep.mubr.msk.bf16.mxu0 %vm8216_vm0, %v8215_v0 }
 0xb72   :  { %v7487_v5 = vpop.f32.mrf.mxu1 }
 0xb73   :  { %v7935_v5 = vld [vmem:[%s9330_s4 + $0x88] sm:$0xff]  }
 0xb74   :  { %v3388_v7 = vpop.f32.mrf.mxu1 }
 0xb75   :  { %v3395_v8 = vpack.c.bf16 %v3388_v7, %v3385_v4  ;;  %v7934_v4 = vld [vmem:[%s9330_s4 + $0xc8] sm:$0xff]   ;;  %v7936_v7 = vld [vmem:[%s9330_s4 + $0xc0] sm:$0xff]  }
 0xb76   :  { %v7488_v11 = vpop.f32.mrf.mxu1 }
 0xb77   :  { %3725 = vmatprep.mubr.bf16.mxu1 %v3395_v8  ;;  %v7937_v8 = vld [vmem:[%s9330_s4 + $0x80] sm:$0xff]  }
 0xb78   :  { %v8041_v13 = vpop.eup %8040  ;;  %3726 = vmatmul.mubr.bf16.vlgmr.msra.gmra.mxu1 %v3394_v9 }
 0xb79   :  { %v3177_v14 = vadd.f32 1.0, %v8041_v13  ;;  %7497 = vmatprep.mubr.msk.bf16.mxu1 %vm8216_vm0, %v8215_v0 }
 0xb7b   :  { %8042 = vrcp.f32 %v3177_v14 }
 0xb88   :  { %v8043_v15 = vpop.eup %8042 }
 0xb89   :  { %3180 = vst [vmem:[%s9340_s14] sm:$0x3] %v8043_v15 }
 0xc30   :  { %v6937_v16 = vpop.f32.mrf.mxu0 }
 0xc32   :  { %v6938_v17 = vpop.f32.mrf.mxu0 }
 0xc33   :  { %v6939_v21 = vadd.f32 %v6938_v17, %v6937_v16  ;;  %v4286_v17 = vld [vmem:[#allocation9 + $0x78] sm:$0xff] }
 0xc34   :  { %v6940_v18 = vpop.f32.mrf.mxu0 }
 0xc36   :  { %v6941_v23 = vpop.f32.mrf.mxu0 }
 0xc37   :  { %v6942_v27 = vadd.f32 %v6941_v23, %v6940_v18 }
 0xc38   :  { %v6959_v19 = vpop.f32.mrf.mxu1 }
 0xc3a   :  { %v6960_v20 = vpop.f32.mrf.mxu1 }
 0xc3b   :  { %v6961_v22 = vadd.f32 %v6960_v20, %v6959_v19 }
 0xc3c   :  { %v6962_v24 = vpop.f32.mrf.mxu1 }
 0xc3d   :  { %v3728_v25 = vadd.f32 %v6961_v22, %v6939_v21 }
 0xc3e   :  { %v6963_v26 = vpop.f32.mrf.mxu1 }
 0xc3f   :  { %v6964_v28 = vadd.f32 %v6963_v26, %v6962_v24  ;;  %v3736_v29 = vmul.f32 0.2, %v3728_v25  ;;  %vm3734_vm15 = vcmp.gt.f32.partialorder %v3728_v25, 0.0 }
 0xc41   :  { %v3731_v30 = vadd.f32 %v6964_v28, %v6942_v27  ;;  %v3738_v32 = vsel %vm3734_vm15, %v3728_v25, %v3736_v29 }
 0xc43   :  { %vm3735_vm1 = vcmp.gt.f32.partialorder %v3731_v30, 0.0  ;;  %v3737_v31 = vmul.f32 0.2, %v3731_v30 }
 0xc45   :  { %v3739_v33 = vsel %vm3735_vm1, %v3731_v30, %v3737_v31 }
 0xc46   :  { %v3740_v34 = vpack.c.bf16 %v3739_v33, %v3738_v32  ;;  %v4285_v32 = vld [vmem:[#allocation9 + $0x70] sm:$0xff]  ;;  %v4284_v33 = vld [vmem:[#allocation9 + $0x68] sm:$0xff] }
 0xc48   :  { %7490 = vmatpush3.bf16.msra.mxu0 %v3740_v34  ;;  %7496 = vmatpush3.bf16.msra.mxu1 %v3740_v34 }
 0xc49   :  { %7501 = vmatprep.subr.bf16.mxu0 %v8215_v0  ;;  %7507 = vmatprep.subr.bf16.mxu1 %v8215_v0 }
 0xc4b   :  { %7492 = vmatmul.mubr.msk.bf16.vlgmr.msra.gmra.mxu0 %vm707_vm4, %v3741_v35  ;;  %7498 = vmatmul.mubr.msk.bf16.vlgmr.msra.gmra.mxu1 %vm707_vm4, %v6441_v36  ;;  %v4282_v35 = vld [vmem:[#allocation9 + $0x58] sm:$0xff]  ;;  %v4281_v36 = vld [vmem:[#allocation9 + $0x50] sm:$0xff] }
 0xc4c   :  { %7502 = vmatpush3.bf16.msra.mxu0 %v3740_v34  ;;  %7508 = vmatpush3.bf16.msra.mxu1 %v3740_v34  ;;  %v4283_v34 = vld [vmem:[#allocation9 + $0x60] sm:$0xff] }
 0xc4d   :  { %7503 = vmatprep.mubr.msk.bf16.mxu0 %vm8216_vm0, %v8215_v0  ;;  %7509 = vmatprep.mubr.msk.bf16.mxu1 %vm8216_vm0, %v8215_v0 }
 0xc4e   :  { %6973 = vmatprep.subr.bf16.mxu0 %v7906_v37  ;;  %6995 = vmatprep.subr.bf16.mxu1 %v7911_v38  ;;  %v4280_v37 = vld [vmem:[#allocation9 + $0x48] sm:$0xff]  ;;  %v4279_v38 = vld [vmem:[#allocation9 + $0x40] sm:$0xff] }
 0xc53   :  { %7504 = vmatmul.mubr.msk.bf16.vlgmr.msra.gmra.mxu0 %vm707_vm4, %v6443_v39  ;;  %7510 = vmatmul.mubr.msk.bf16.vlgmr.msra.gmra.mxu1 %vm707_vm4, %v6445_v40  ;;  %v4278_v39 = vld [vmem:[#allocation9 + $0x38] sm:$0xff]  ;;  %v4277_v40 = vld [vmem:[#allocation9 + $0x30] sm:$0xff] }
 0xc54   :  { %6974 = vmatpush3.bf16.msra.mxu0 %v7907_v41  ;;  %6996 = vmatpush3.bf16.msra.mxu1 %v7913_v42  ;;  %v4276_v41 = vld [vmem:[#allocation9 + $0x28] sm:$0xff]  ;;  %v4275_v42 = vld [vmem:[#allocation9 + $0x20] sm:$0xff] }
 0xc55   :  { %6975 = vmatprep.subr.bf16.mxu0 %v7908_v43  ;;  %6997 = vmatprep.subr.bf16.mxu1 %v7915_v44  ;;  %v4274_v43 = vld [vmem:[#allocation9 + $0x18] sm:$0xff]  ;;  %v4273_v44 = vld [vmem:[#allocation9 + $0x10] sm:$0xff] }
 0xc58   :  { %6976 = vmatpush3.bf16.msra.mxu0 %v7909_v45  ;;  %6998 = vmatpush3.bf16.msra.mxu1 %v7917_v46  ;;  %v4272_v45 = vld [vmem:[#allocation9 + $0x8] sm:$0xff]  ;;  %v4271_v46 = vld [vmem:[#allocation9] sm:$0xff] }
 0xc59   :  { %6977 = vmatprep.subr.bf16.mxu0 %v7910_v47  ;;  %6999 = vmatprep.subr.bf16.mxu1 %v7919_v48 }
 0xc5c   :  { %6978 = vmatpush3.bf16.msra.mxu0 %v7912_v49  ;;  %7000 = vmatpush3.bf16.msra.mxu1 %v7921_v50 }
 0xc5d   :  { %6979 = vmatprep.subr.bf16.mxu0 %v7914_v51  ;;  %7001 = vmatprep.subr.bf16.mxu1 %v7923_v52 }
 0xc60   :  { %6980 = vmatpush3.bf16.msra.mxu0 %v7916_v53  ;;  %7002 = vmatpush3.bf16.msra.mxu1 %v7925_v54 }
 0xc61   :  { %6981 = vmatprep.subr.bf16.mxu0 %v7918_v55  ;;  %7003 = vmatprep.subr.bf16.mxu1 %v7927_v56 }
 0xc64   :  { %6982 = vmatpush3.bf16.msra.mxu0 %v7920_v57  ;;  %7004 = vmatpush3.bf16.msra.mxu1 %v7929_v58 }
 0xc65   :  { %6983 = vmatprep.subr.bf16.mxu0 %v7922_v59  ;;  %7005 = vmatprep.subr.bf16.mxu1 %v7931_v1 }
 0xc68   :  { %6984 = vmatpush3.bf16.msra.mxu0 %v7924_v60  ;;  %7006 = vmatpush3.bf16.msra.mxu1 %v7933_v3 }
 0xc69   :  { %6985 = vmatprep.subr.bf16.mxu0 %v7926_v61  ;;  %7007 = vmatprep.subr.bf16.mxu1 %v7934_v4 }
 0xc6c   :  { %6986 = vmatpush3.bf16.msra.mxu0 %v7928_v62  ;;  %7008 = vmatpush3.bf16.msra.mxu1 %v7935_v5 }
 0xc6d   :  { %6987 = vmatprep.subr.bf16.mxu0 %v7930_v63  ;;  %7009 = vmatprep.subr.bf16.mxu1 %v7936_v7 }
 0xc70   :  { %6988 = vmatpush3.bf16.msra.mxu0 %v7932_v2  ;;  %7010 = vmatpush3.bf16.msra.mxu1 %v7937_v8 }
 0xc71   :  { %7513 = vmatprep.subr.mxu0 %v8215_v0  ;;  %7548 = vmatprep.subr.bf16.mxu1 %v8215_v0 }
 0xd0b   :  { %v3779_v9 = vpop.f32.mrf.mxu0  ;;  %v3823_v11 = vpop.f32.mrf.mxu1 }
 0xd0c   :  { %v3917_v13 = vpack.c.bf16 %v3779_v9, %v3779_v9  ;;  %v3918_v14 = vpack.c.bf16 %v3823_v11, %v3823_v11  ;;  %v7938_v11 = vld [vmem:[%s9332_s6 + $0x78] sm:$0xff]  }
 0xd0d   :  { %v7493_v15 = vpop.f32.mrf.mxu0  ;;  %v7499_v16 = vpop.f32.mrf.mxu1 }
 0xd0e   :  { %4209 = vmatprep.mubr.bf16.mxu0 %v3918_v14  ;;  %v7940_v14 = vld [vmem:[%s9332_s6 + $0x70] sm:$0xff]   ;;  %v7942_v16 = vld [vmem:[%s9332_s6 + $0x68] sm:$0xff]  }
 0xd0f   :  { %v3782_v18 = vpop.f32.mrf.mxu0  ;;  %v3826_v19 = vpop.f32.mrf.mxu1  ;;  %4210 = vmatmul.mubr.bf16.vlgmr.msra.gmra.mxu0 %v3917_v13  ;;  %v7939_v13 = vld [vmem:[%s9332_s6 + $0x38] sm:$0xff]   ;;  %v7941_v15 = vld [vmem:[%s9332_s6 + $0x30] sm:$0xff]  }
 0xd10   :  { %7514 = vmatpush3.msra.mxu0 %v4286_v17  ;;  %7545 = vmatprep.mubr.msk.f32.mxu0 %vm8216_vm0, %v8215_v0  ;;  %v7943_v17 = vld [vmem:[%s9332_s6 + $0x28] sm:$0xff]   ;;  %v7944_v18 = vld [vmem:[%s9332_s6 + $0x60] sm:$0xff]  }
 0xd11   :  { %v7494_v20 = vpop.f32.mrf.mxu0  ;;  %v7500_v21 = vpop.f32.mrf.mxu1  ;;  %7515 = vmatprep.subr.mxu0 %v8215_v0  ;;  %v7945_v19 = vld [vmem:[%s9332_s6 + $0x20] sm:$0xff]  }
 0xd12   :  { %7516 = vmatpush3.msra.mxu0 %v4285_v32  ;;  %v7946_v20 = vld [vmem:[%s9332_s6 + $0x58] sm:$0xff]  }
 0xd13   :  { %v3867_v22 = vpop.f32.mrf.mxu0  ;;  %v3911_v23 = vpop.f32.mrf.mxu1  ;;  %7517 = vmatprep.subr.mxu0 %v8215_v0  ;;  %v7948_v21 = vld [vmem:[%s9332_s6 + $0x18] sm:$0xff]  }
 0xd14   :  { %v3919_v24 = vpack.c.bf16 %v3867_v22, %v3867_v22  ;;  %v3920_v25 = vpack.c.bf16 %v3911_v23, %v3911_v23  ;;  %7518 = vmatpush3.msra.mxu0 %v4284_v33 }
 0xd15   :  { %v7505_v26 = vpop.f32.mrf.mxu0  ;;  %v7511_v27 = vpop.f32.mrf.mxu1  ;;  %7519 = vmatprep.subr.mxu0 %v8215_v0 }
 0xd16   :  { %4249 = vmatprep.mubr.bf16.mxu1 %v3920_v25  ;;  %7520 = vmatpush3.msra.mxu0 %v4283_v34 }
 0xd17   :  { %v3870_v28 = vpop.f32.mrf.mxu0  ;;  %v3914_v29 = vpop.f32.mrf.mxu1  ;;  %4250 = vmatmul.mubr.bf16.vlgmr.msra.gmra.mxu1 %v3919_v24  ;;  %7521 = vmatprep.subr.mxu0 %v8215_v0 }
 0xd18   :  { %7550 = vmatprep.mubr.msk.bf16.mxu1 %vm8216_vm0, %v8215_v0  ;;  %7522 = vmatpush3.msra.mxu0 %v4282_v35 }
 0xd19   :  { %v7506_v30 = vpop.f32.mrf.mxu0  ;;  %v7512_v31 = vpop.f32.mrf.mxu1  ;;  %7523 = vmatprep.subr.mxu0 %v8215_v0 }
 0xd1a   :  { %7524 = vmatpush3.msra.mxu0 %v4281_v36 }
 0xd1b   :  { %7525 = vmatprep.subr.mxu0 %v8215_v0 }
 0xd1c   :  { %7526 = vmatpush3.msra.mxu0 %v4280_v37 }
 0xd1d   :  { %7527 = vmatprep.subr.mxu0 %v8215_v0 }
 0xd1e   :  { %7528 = vmatpush3.msra.mxu0 %v4279_v38 }
 0xd1f   :  { %7529 = vmatprep.subr.mxu0 %v8215_v0 }
 0xd20   :  { %7530 = vmatpush3.msra.mxu0 %v4278_v39  ;;  %v4380_v39 = vld [vmem:[#allocation4] sm:$0x3] }
 0xd21   :  { %7531 = vmatprep.subr.mxu0 %v8215_v0 }
 0xd22   :  { %7532 = vmatpush3.msra.mxu0 %v4277_v40  ;;  %v4427_v40 = vld [vmem:[#allocation4 + $0x2] sm:$0x3] }
 0xd23   :  { %7533 = vmatprep.subr.mxu0 %v8215_v0 }
 0xd24   :  { %7534 = vmatpush3.msra.mxu0 %v4276_v41  ;;  %v4471_v41 = vld [vmem:[#allocation4 + $0x4] sm:$0x3] }
 0xd25   :  { %7535 = vmatprep.subr.mxu0 %v8215_v0 }
 0xd26   :  { %7536 = vmatpush3.msra.mxu0 %v4275_v42  ;;  %v7947_v42 = vld [vmem:[%s9332_s6 + $0xf8] sm:$0xff]  }
 0xd27   :  { %7537 = vmatprep.subr.mxu0 %v8215_v0 }
 0xd28   :  { %7538 = vmatpush3.msra.mxu0 %v4274_v43  ;;  %v4515_v43 = vld [vmem:[#allocation4 + $0x6] sm:$0x3] }
 0xd29   :  { %7539 = vmatprep.subr.mxu0 %v8215_v0 }
 0xd2a   :  { %7540 = vmatpush3.msra.mxu0 %v4273_v44  ;;  %v7949_v44 = vld [vmem:[%s9332_s6 + $0xb8] sm:$0xff]  }
 0xd2b   :  { %7541 = vmatprep.subr.mxu0 %v8215_v0 }
 0xd2c   :  { %7542 = vmatpush3.msra.mxu0 %v4272_v45  ;;  %v7950_v45 = vld [vmem:[%s9332_s6 + $0x50] sm:$0xff]  }
 0xd2d   :  { %7543 = vmatprep.subr.mxu0 %v8215_v0 }
 0xd2e   :  { %7544 = vmatpush3.msra.mxu0 %v4271_v46  ;;  %v7951_v46 = vld [vmem:[%s9332_s6 + $0xf0] sm:$0xff]  }
 0xd2f   :  { %7042 = vmatprep.subr.bf16.mxu0 %v7938_v11 }
 0xdcf   :  { %v6989_v47 = vpop.f32.mrf.mxu0 }
 0xdd1   :  { %v6990_v48 = vpop.f32.mrf.mxu0 }
 0xdd2   :  { %v6991_v53 = vadd.f32 %v6990_v48, %v6989_v47  ;;  %v7952_v47 = vld [vmem:[%s9332_s6 + $0x10] sm:$0xff]  }
 0xdd3   :  { %v6992_v49 = vpop.f32.mrf.mxu0  ;;  %v7953_v48 = vld [vmem:[%s9332_s6 + $0xb0] sm:$0xff]  }
 0xdd4   :  { %v7954_v49 = vld [vmem:[%s9332_s6 + $0x48] sm:$0xff]  }
 0xdd5   :  { %v6993_v50 = vpop.f32.mrf.mxu0 }
 0xdd6   :  { %v7955_v50 = vld [vmem:[%s9332_s6 + $0xe8] sm:$0xff]  }
 0xdd7   :  { %v7011_v51 = vpop.f32.mrf.mxu1 }
 0xdd9   :  { %v7012_v52 = vpop.f32.mrf.mxu1 }
 0xdda   :  { %v7013_v54 = vadd.f32 %v7012_v52, %v7011_v51  ;;  %v7956_v51 = vld [vmem:[%s9332_s6 + $0x8] sm:$0xff]  }
 0xddb   :  { %v7014_v55 = vpop.f32.mrf.mxu1  ;;  %v7957_v52 = vld [vmem:[%s9332_s6 + $0xa8] sm:$0xff]  }
 0xddc   :  { %v4252_v56 = vadd.f32 %v7013_v54, %v6991_v53  ;;  %v7958_v53 = vld [vmem:[%s9332_s6 + $0x40] sm:$0xff]  }
 0xddd   :  { %v7015_v57 = vpop.f32.mrf.mxu1  ;;  %v7959_v54 = vld [vmem:[%s9332_s6 + $0xe0] sm:$0xff]  }
 0xdde   :  { %v4257_v58 = vrot.slane %v4252_v56, 4  ;;  %v4263_v59 = vmul.f32 %v4252_v56, %v4252_v56  ;;  %v7960_v55 = vld [vmem:[%s9332_s6] sm:$0xff]   ;;  %v7962_v57 = vld [vmem:[%s9332_s6 + $0xd8] sm:$0xff]  }
 0xde0   :  { %v4258_v60 = vadd.f32 %v4257_v58, %v4252_v56  ;;  %v4264_v61 = vrot.slane %v4263_v59, 4  ;;  %v7963_v58 = vld [vmem:[%s9332_s6 + $0x98] sm:$0xff]  }
 0xde2   :  { %v4259_v62 = vrot.slane %v4258_v60, 2  ;;  %v4265_v63 = vadd.f32 %v4264_v61, %v4263_v59  ;;  %v7964_v59 = vld [vmem:[%s9332_s6 + $0xd0] sm:$0xff]   ;;  %v7966_v61 = vld [vmem:[%s9332_s6 + $0xc8] sm:$0xff]  }
 0xde4   :  { %v4260_v1 = vadd.f32 %v4259_v62, %v4258_v60  ;;  %v4266_v2 = vrot.slane %v4265_v63, 2  ;;  %v7965_v60 = vld [vmem:[%s9332_s6 + $0x90] sm:$0xff]   ;;  %v7967_v62 = vld [vmem:[%s9332_s6 + $0x88] sm:$0xff]  }
 0xde6   :  { %v4261_v3 = vrot.slane %v4260_v1, 1  ;;  %v4267_v4 = vadd.f32 %v4266_v2, %v4265_v63  ;;  %v7968_v63 = vld [vmem:[%s9332_s6 + $0xc0] sm:$0xff]  }
 0xde8   :  { %v4268_v5 = vrot.slane %v4267_v4, 1  ;;  %v4262_v7 = vadd.f32 %v4261_v3, %v4260_v1  ;;  %v7969_v1 = vld [vmem:[%s9332_s6 + $0x80] sm:$0xff]  }
 0xdea   :  { %v4269_v8 = vadd.f32 %v4268_v5, %v4267_v4 }
 0xdec   :  { %v4270_v9 = vsel %vm1239_vm5, %v4262_v7, %v4269_v8 }
 0xded   :  { %7546 = vmatmul.mubr.f32.vlgmr.msra.gmra.mxu0 %v4270_v9 }
 0xdee   :  { %7043 = vmatpush3.bf16.msra.mxu0 %v7939_v13 }
 0xdef   :  { %7044 = vmatprep.subr.bf16.mxu0 %v7940_v14 }
 0xdf2   :  { %7045 = vmatpush3.bf16.msra.mxu0 %v7941_v15 }
 0xdf3   :  { %7046 = vmatprep.subr.bf16.mxu0 %v7942_v16 }
 0xdf6   :  { %7047 = vmatpush3.bf16.msra.mxu0 %v7943_v17 }
 0xdf7   :  { %7048 = vmatprep.subr.bf16.mxu0 %v7944_v18 }
 0xdfa   :  { %7049 = vmatpush3.bf16.msra.mxu0 %v7945_v19 }
 0xdfb   :  { %7050 = vmatprep.subr.bf16.mxu0 %v7946_v20 }
 0xdfe   :  { %7051 = vmatpush3.bf16.msra.mxu0 %v7948_v21 }
 0xdff   :  { %7052 = vmatprep.subr.bf16.mxu0 %v7950_v45 }
 0xe02   :  { %7053 = vmatpush3.bf16.msra.mxu0 %v7952_v47 }
 0xe03   :  { %7054 = vmatprep.subr.bf16.mxu0 %v7954_v49 }
 0xe06   :  { %7055 = vmatpush3.bf16.msra.mxu0 %v7956_v51 }
 0xe07   :  { %7056 = vmatprep.subr.bf16.mxu0 %v7958_v53 }
 0xe0a   :  { %7057 = vmatpush3.bf16.msra.mxu0 %v7960_v55 }
 0xe0b   :  { %7572 = vmatprep.subr.mxu0 %v8215_v0 }
 0xead   :  { %v4353_v22 = vpop.f32.mrf.mxu0 }
 0xeae   :  { %v4357_v23 = vmul.f32 0.015625, %v4353_v22 }
 0xeaf   :  { %v7547_v24 = vpop.f32.mrf.mxu0 }
 0xeb0   :  { %v4358_v25 = vmul.f32 %v4357_v23, %v4357_v23  ;;  %v4367_v30 = vrot.slane %v4357_v23, %v8636_v10 }
 0xeb2   :  { %v4360_v26 = vrot.slane %v4358_v25, 7  ;;  %v4368_v32 = vsub.f32 %v4252_v56, %v4367_v30  ;;  %v7961_v56 = vld [vmem:[%s9332_s6 + $0xa0] sm:$0xff]   ;;  %v4925_v30 = vld [vmem:[#allocation10 + $0x50] sm:$0xff] }
 0xeb3   :  { %v4930_v25 = vld [vmem:[#allocation10 + $0x78] sm:$0xff] }
 0xeb4   :  { %v4362_v27 = vsub.f32 %v4357_v23, %v4360_v26  ;;  %v4929_v26 = vld [vmem:[#allocation10 + $0x70] sm:$0xff] }
 0xeb6   :  { %v4363_v28 = vmax.f32 %v4362_v27, 0.0  ;;  %v4928_v27 = vld [vmem:[#allocation10 + $0x68] sm:$0xff] }
 0xeb8   :  { %v4369_v29 = vadd.f32 1e-05, %v4363_v28  ;;  %v4927_v28 = vld [vmem:[#allocation10 + $0x60] sm:$0xff] }
 0xeba   :  { %8044 = vrsqrt.f32 %v4369_v29  ;;  %v4926_v29 = vld [vmem:[#allocation10 + $0x58] sm:$0xff] }
 0xec7   :  { %v8045_v31 = vpop.eup %8044 }
 0xec8   :  { %v4374_v33 = vrot.slane %v8045_v31, %v8639_v12  ;;  %v4924_v31 = vld [vmem:[#allocation10 + $0x48] sm:$0xff] }
 0xeca   :  { %v4375_v34 = vmul.f32 %v4374_v33, %v4368_v32  ;;  %v4923_v32 = vld [vmem:[#allocation10 + $0x40] sm:$0xff]  ;;  %v4922_v33 = vld [vmem:[#allocation10 + $0x38] sm:$0xff] }
 0xecc   :  { %vm4376_vm2 = vcmp.gt.f32.partialorder %v4375_v34, 0.0  ;;  %v4377_v35 = vmul.f32 0.2, %v4375_v34 }
 0xece   :  { %v4378_v36 = vsel %vm4376_vm2, %v4375_v34, %v4377_v35  ;;  %v4921_v34 = vld [vmem:[#allocation10 + $0x30] sm:$0xff]  ;;  %v4920_v35 = vld [vmem:[#allocation10 + $0x28] sm:$0xff] }
 0xecf   :  { %v4379_v37 = vpack.c.bf16 %v4378_v36, %v4378_v36  ;;  %v4919_v36 = vld [vmem:[#allocation10 + $0x20] sm:$0xff] }
 0xed1   :  { %v4385_v38 = vsel %vm1355_vm7, %v4379_v37, 0  ;;  %v4918_v37 = vld [vmem:[#allocation10 + $0x18] sm:$0xff] }
 0xed2   :  { %7549 = vmatpush3.bf16.msra.mxu1 %v4385_v38 }
 0xed3   :  { %7554 = vmatprep.subr.bf16.mxu1 %v8215_v0 }
 0xed5   :  { %7551 = vmatmul.mubr.msk.bf16.vlgmr.msra.gmra.mxu1 %vm1351_vm8, %v4380_v39  ;;  %v4916_v39 = vld [vmem:[#allocation10 + $0x8] sm:$0xff] }
 0xed6   :  { %7555 = vmatpush3.bf16.msra.mxu1 %v4385_v38  ;;  %7556 = vmatprep.mubr.msk.bf16.mxu1 %vm8216_vm0, %v8215_v0 }
 0xed7   :  { %7560 = vmatprep.subr.bf16.mxu1 %v8215_v0 }
 0xedd   :  { %7557 = vmatmul.mubr.msk.bf16.vlgmr.msra.gmra.mxu1 %vm1351_vm8, %v4427_v40  ;;  %v4915_v40 = vld [vmem:[#allocation10] sm:$0xff] }
 0xede   :  { %7561 = vmatpush3.bf16.msra.mxu1 %v4385_v38  ;;  %7562 = vmatprep.mubr.msk.bf16.mxu1 %vm8216_vm0, %v8215_v0 }
 0xedf   :  { %7566 = vmatprep.subr.bf16.mxu1 %v8215_v0 }
 0xee5   :  { %7563 = vmatmul.mubr.msk.bf16.vlgmr.msra.gmra.mxu1 %vm1351_vm8, %v4471_v41 }
 0xee6   :  { %7567 = vmatpush3.bf16.msra.mxu1 %v4385_v38  ;;  %7568 = vmatprep.mubr.msk.bf16.mxu1 %vm8216_vm0, %v8215_v0  ;;  %v4917_v38 = vld [vmem:[#allocation10 + $0x10] sm:$0xff] }
 0xee7   :  { %7064 = vmatprep.subr.bf16.mxu1 %v7947_v42 }
 0xeed   :  { %7569 = vmatmul.mubr.msk.bf16.vlgmr.msra.gmra.mxu1 %vm1351_vm8, %v4515_v43 }
 0xeee   :  { %7065 = vmatpush3.bf16.msra.mxu1 %v7949_v44 }
 0xeef   :  { %7066 = vmatprep.subr.bf16.mxu1 %v7951_v46 }
 0xef2   :  { %7067 = vmatpush3.bf16.msra.mxu1 %v7953_v48 }
 0xef3   :  { %7068 = vmatprep.subr.bf16.mxu1 %v7955_v50 }
 0xef6   :  { %7069 = vmatpush3.bf16.msra.mxu1 %v7957_v52 }
 0xef7   :  { %7070 = vmatprep.subr.bf16.mxu1 %v7959_v54 }
 0xefa   :  { %7071 = vmatpush3.bf16.msra.mxu1 %v7961_v56 }
 0xefb   :  { %7072 = vmatprep.subr.bf16.mxu1 %v7962_v57 }
 0xefe   :  { %7073 = vmatpush3.bf16.msra.mxu1 %v7963_v58 }
 0xeff   :  { %7074 = vmatprep.subr.bf16.mxu1 %v7964_v59 }
 0xf02   :  { %7075 = vmatpush3.bf16.msra.mxu1 %v7965_v60 }
 0xf03   :  { %7076 = vmatprep.subr.bf16.mxu1 %v7966_v61 }
 0xf06   :  { %7077 = vmatpush3.bf16.msra.mxu1 %v7967_v62 }
 0xf07   :  { %7078 = vmatprep.subr.bf16.mxu1 %v7968_v63 }
 0xf0a   :  { %7079 = vmatpush3.bf16.msra.mxu1 %v7969_v1 }
 0xf0b   :  { %7607 = vmatprep.subr.bf16.mxu1 %v8215_v0 }
 0xf95   :  { %v4421_v2 = vpop.f32.mrf.mxu1 }
 0xf96   :  { %v4559_v9 = vpack.c.bf16 %v4421_v2, %v4421_v2 }
 0xf97   :  { %v7552_v3 = vpop.f32.mrf.mxu1 }
 0xf99   :  { %v4424_v4 = vpop.f32.mrf.mxu1 }
 0xf9b   :  { %v7553_v5 = vpop.f32.mrf.mxu1 }
 0xf9c   :  { %v7970_v5 = vld [vmem:[#allocation6 + $0x78] sm:$0xff]  }
 0xf9d   :  { %v4465_v7 = vpop.f32.mrf.mxu1 }
 0xf9e   :  { %v4560_v8 = vpack.c.bf16 %v4465_v7, %v4465_v7  ;;  %v7971_v7 = vld [vmem:[#allocation6 + $0x38] sm:$0xff]  }
 0xf9f   :  { %v7558_v11 = vpop.f32.mrf.mxu1 }
 0xfa0   :  { %4851 = vmatprep.mubr.bf16.mxu0 %v4560_v8  ;;  %v7972_v8 = vld [vmem:[#allocation6 + $0x70] sm:$0xff]   ;;  %v7974_v11 = vld [vmem:[#allocation6 + $0x68] sm:$0xff]  }
 0xfa1   :  { %v4468_v13 = vpop.f32.mrf.mxu1  ;;  %4852 = vmatmul.mubr.bf16.vlgmr.msra.gmra.mxu0 %v4559_v9  ;;  %v7973_v9 = vld [vmem:[#allocation6 + $0x30] sm:$0xff]  }
 0xfa2   :  { %7604 = vmatprep.mubr.msk.f32.mxu0 %vm8216_vm0, %v8215_v0  ;;  %7573 = vmatpush3.msra.mxu0 %v4930_v25  ;;  %v7975_v13 = vld [vmem:[#allocation6 + $0x28] sm:$0xff]  }
 0xfa3   :  { %v7559_v14 = vpop.f32.mrf.mxu1  ;;  %7574 = vmatprep.subr.mxu0 %v8215_v0 }
 0xfa4   :  { %7575 = vmatpush3.msra.mxu0 %v4929_v26  ;;  %v7976_v14 = vld [vmem:[#allocation6 + $0x60] sm:$0xff]  }
 0xfa5   :  { %v4509_v15 = vpop.f32.mrf.mxu1  ;;  %7576 = vmatprep.subr.mxu0 %v8215_v0 }
 0xfa6   :  { %v4561_v21 = vpack.c.bf16 %v4509_v15, %v4509_v15  ;;  %7577 = vmatpush3.msra.mxu0 %v4928_v27  ;;  %v7977_v15 = vld [vmem:[#allocation6 + $0x20] sm:$0xff]  }
 0xfa7   :  { %v7564_v16 = vpop.f32.mrf.mxu1  ;;  %7578 = vmatprep.subr.mxu0 %v8215_v0 }
 0xfa8   :  { %7579 = vmatpush3.msra.mxu0 %v4927_v28  ;;  %v7978_v16 = vld [vmem:[#allocation6 + $0x58] sm:$0xff]  }
 0xfa9   :  { %v4512_v17 = vpop.f32.mrf.mxu1  ;;  %7580 = vmatprep.subr.mxu0 %v8215_v0 }
 0xfaa   :  { %7581 = vmatpush3.msra.mxu0 %v4926_v29  ;;  %v7980_v17 = vld [vmem:[#allocation6 + $0x18] sm:$0xff]  }
 0xfab   :  { %v7565_v18 = vpop.f32.mrf.mxu1  ;;  %7582 = vmatprep.subr.mxu0 %v8215_v0 }
 0xfac   :  { %7583 = vmatpush3.msra.mxu0 %v4925_v30 }
 0xfad   :  { %v4553_v19 = vpop.f32.mrf.mxu1  ;;  %7584 = vmatprep.subr.mxu0 %v8215_v0 }
 0xfae   :  { %v4562_v20 = vpack.c.bf16 %v4553_v19, %v4553_v19  ;;  %7585 = vmatpush3.msra.mxu0 %v4924_v31 }
 0xfaf   :  { %v7570_v22 = vpop.f32.mrf.mxu1  ;;  %7586 = vmatprep.subr.mxu0 %v8215_v0 }
 0xfb0   :  { %4891 = vmatprep.mubr.bf16.mxu1 %v4562_v20  ;;  %7587 = vmatpush3.msra.mxu0 %v4923_v32 }
 0xfb1   :  { %v4556_v23 = vpop.f32.mrf.mxu1  ;;  %4892 = vmatmul.mubr.bf16.vlgmr.msra.gmra.mxu1 %v4561_v21  ;;  %7588 = vmatprep.subr.mxu0 %v8215_v0 }
 0xfb2   :  { %7609 = vmatprep.mubr.msk.bf16.mxu1 %vm8216_vm0, %v8215_v0  ;;  %7589 = vmatpush3.msra.mxu0 %v4922_v33 }
 0xfb3   :  { %v7571_v24 = vpop.f32.mrf.mxu1  ;;  %7590 = vmatprep.subr.mxu0 %v8215_v0 }
 0xfb4   :  { %7591 = vmatpush3.msra.mxu0 %v4921_v34 }
 0xfb5   :  { %7592 = vmatprep.subr.mxu0 %v8215_v0 }
 0xfb6   :  { %7593 = vmatpush3.msra.mxu0 %v4920_v35  ;;  %v5024_v35 = vld [vmem:[%s9333_s7] sm:$0x3] }
 0xfb7   :  { %7594 = vmatprep.subr.mxu0 %v8215_v0 }
 0xfb8   :  { %7595 = vmatpush3.msra.mxu0 %v4919_v36  ;;  %v6516_v36 = vld [vmem:[%s9333_s7 + $0x2] sm:$0x3] }
 0xfb9   :  { %7596 = vmatprep.subr.mxu0 %v8215_v0 }
 0xfba   :  { %7597 = vmatpush3.msra.mxu0 %v4918_v37  ;;  %v6518_v37 = vld [vmem:[%s9333_s7 + $0x4] sm:$0x3] }
 0xfbb   :  { %7598 = vmatprep.subr.mxu0 %v8215_v0 }
 0xfbc   :  { %7599 = vmatpush3.msra.mxu0 %v4917_v38  ;;  %v7979_v38 = vld [vmem:[#allocation6 + $0xf8] sm:$0xff]  }
 0xfbd   :  { %7600 = vmatprep.subr.mxu0 %v8215_v0 }
 0xfbe   :  { %7601 = vmatpush3.msra.mxu0 %v4916_v39  ;;  %v6520_v39 = vld [vmem:[%s9333_s7 + $0x6] sm:$0x3] }
 0xfbf   :  { %7602 = vmatprep.subr.mxu0 %v8215_v0 }
 0xfc0   :  { %7603 = vmatpush3.msra.mxu0 %v4915_v40  ;;  %v7981_v40 = vld [vmem:[#allocation6 + $0xb8] sm:$0xff]  }
 0xfc1   :  { %7111 = vmatprep.subr.bf16.mxu0 %v7970_v5 }
0x1061   :  { %v7058_v41 = vpop.f32.mrf.mxu0 }
0x1063   :  { %v7059_v42 = vpop.f32.mrf.mxu0 }
0x1064   :  { %v7060_v47 = vadd.f32 %v7059_v42, %v7058_v41  ;;  %v7982_v41 = vld [vmem:[#allocation6 + $0x50] sm:$0xff]  }
0x1065   :  { %v7061_v43 = vpop.f32.mrf.mxu0  ;;  %v7983_v42 = vld [vmem:[#allocation6 + $0xf0] sm:$0xff]  }
0x1066   :  { %v7984_v43 = vld [vmem:[#allocation6 + $0x10] sm:$0xff]  }
0x1067   :  { %v7062_v44 = vpop.f32.mrf.mxu0 }
0x1068   :  { %v7985_v44 = vld [vmem:[#allocation6 + $0xb0] sm:$0xff]  }
0x1071   :  { %v7080_v45 = vpop.f32.mrf.mxu1 }
0x1073   :  { %v7081_v46 = vpop.f32.mrf.mxu1 }
0x1074   :  { %v7082_v48 = vadd.f32 %v7081_v46, %v7080_v45  ;;  %v7986_v45 = vld [vmem:[#allocation6 + $0x48] sm:$0xff]  }
0x1075   :  { %v7083_v49 = vpop.f32.mrf.mxu1  ;;  %v7987_v46 = vld [vmem:[#allocation6 + $0xe8] sm:$0xff]  }
0x1076   :  { %v4894_v50 = vadd.f32 %v7082_v48, %v7060_v47  ;;  %v7988_v47 = vld [vmem:[#allocation6 + $0x8] sm:$0xff]   ;;  %v7990_v49 = vld [vmem:[#allocation6 + $0x40] sm:$0xff]  }
0x1077   :  { %v7084_v51 = vpop.f32.mrf.mxu1  ;;  %v7989_v48 = vld [vmem:[#allocation6 + $0xa8] sm:$0xff]  }
0x1078   :  { %v4899_v52 = vsel %vm1355_vm7, %v4894_v50, 0.0  ;;  %v4906_v53 = vmul.f32 %v4894_v50, %v4894_v50  ;;  %v7992_v51 = vld [vmem:[#allocation6] sm:$0xff]  }
0x1079   :  { %v4900_v54 = vrot.slane %v4899_v52, 4 }
0x107a   :  { %v4907_v55 = vsel %vm1355_vm7, %v4906_v53, 0.0  ;;  %v7994_v53 = vld [vmem:[#allocation6 + $0xd8] sm:$0xff]  }
0x107b   :  { %v4901_v56 = vadd.f32 %v4900_v54, %v4899_v52  ;;  %v4908_v57 = vrot.slane %v4907_v55, 4  ;;  %v7993_v52 = vld [vmem:[#allocation6 + $0xa0] sm:$0xff]   ;;  %v7995_v54 = vld [vmem:[#allocation6 + $0x98] sm:$0xff]  }
0x107d   :  { %v4902_v58 = vrot.slane %v4901_v56, 2  ;;  %v4909_v59 = vadd.f32 %v4908_v57, %v4907_v55  ;;  %v7996_v55 = vld [vmem:[#allocation6 + $0xd0] sm:$0xff]   ;;  %v7998_v57 = vld [vmem:[#allocation6 + $0xc8] sm:$0xff]  }
0x107f   :  { %v4903_v60 = vadd.f32 %v4902_v58, %v4901_v56  ;;  %v4910_v61 = vrot.slane %v4909_v59, 2  ;;  %v7997_v56 = vld [vmem:[#allocation6 + $0x90] sm:$0xff]   ;;  %v7999_v58 = vld [vmem:[#allocation6 + $0x88] sm:$0xff]  }
0x1081   :  { %v4904_v62 = vrot.slane %v4903_v60, 1  ;;  %v4911_v63 = vadd.f32 %v4910_v61, %v4909_v59  ;;  %v8000_v59 = vld [vmem:[#allocation6 + $0xc0] sm:$0xff]  }
0x1083   :  { %v4912_v1 = vrot.slane %v4911_v63, 1  ;;  %v4905_v2 = vadd.f32 %v4904_v62, %v4903_v60  ;;  %v8001_v60 = vld [vmem:[#allocation6 + $0x80] sm:$0xff]  }
0x1085   :  { %v4913_v3 = vadd.f32 %v4912_v1, %v4911_v63 }
0x1087   :  { %v4914_v4 = vsel %vm1239_vm5, %v4905_v2, %v4913_v3 }
0x1088   :  { %7605 = vmatmul.mubr.f32.vlgmr.msra.gmra.mxu0 %v4914_v4 }
0x1089   :  { %7112 = vmatpush3.bf16.msra.mxu0 %v7971_v7 }
0x108a   :  { %7113 = vmatprep.subr.bf16.mxu0 %v7972_v8 }
0x108d   :  { %7114 = vmatpush3.bf16.msra.mxu0 %v7973_v9 }
0x108e   :  { %7115 = vmatprep.subr.bf16.mxu0 %v7974_v11 }
0x1091   :  { %7116 = vmatpush3.bf16.msra.mxu0 %v7975_v13 }
0x1092   :  { %7117 = vmatprep.subr.bf16.mxu0 %v7976_v14 }
0x1095   :  { %7118 = vmatpush3.bf16.msra.mxu0 %v7977_v15 }
0x1096   :  { %7119 = vmatprep.subr.bf16.mxu0 %v7978_v16 }
0x1099   :  { %7120 = vmatpush3.bf16.msra.mxu0 %v7980_v17 }
0x109a   :  { %7121 = vmatprep.subr.bf16.mxu0 %v7982_v41 }
0x109d   :  { %7122 = vmatpush3.bf16.msra.mxu0 %v7984_v43 }
0x109e   :  { %7123 = vmatprep.subr.bf16.mxu0 %v7986_v45 }
0x10a1   :  { %7124 = vmatpush3.bf16.msra.mxu0 %v7988_v47 }
0x10a2   :  { %7125 = vmatprep.subr.bf16.mxu0 %v7990_v49 }
0x10a5   :  { %7126 = vmatpush3.bf16.msra.mxu0 %v7992_v51 }
0x10a6   :  { %7631 = vmatprep.subr.mxu0 %v8215_v0 }
0x1148   :  { %v4997_v18 = vpop.f32.mrf.mxu0 }
0x1149   :  { %v5001_v19 = vmul.f32 0.0625, %v4997_v18 }
0x114a   :  { %v7606_v20 = vpop.f32.mrf.mxu0 }
0x114b   :  { %v5002_v21 = vmul.f32 %v5001_v19, %v5001_v19  ;;  %v5011_v26 = vrot.slane %v5001_v19, %v8636_v10 }
0x114d   :  { %v5004_v22 = vrot.slane %v5002_v21, 7  ;;  %v5012_v28 = vsub.f32 %v4894_v50, %v5011_v26  ;;  %v7991_v50 = vld [vmem:[#allocation6 + $0xe0] sm:$0xff]   ;;  %v5574_v21 = vld [vmem:[#allocation12 + $0x78] sm:$0xff]  ;;  %v5569_v26 = vld [vmem:[#allocation12 + $0x50] sm:$0xff] }
0x114f   :  { %v5006_v23 = vsub.f32 %v5001_v19, %v5004_v22  ;;  %v5573_v22 = vld [vmem:[#allocation12 + $0x70] sm:$0xff] }
0x1151   :  { %v5007_v24 = vmax.f32 %v5006_v23, 0.0  ;;  %v5572_v23 = vld [vmem:[#allocation12 + $0x68] sm:$0xff] }
0x1153   :  { %v5013_v25 = vadd.f32 1e-05, %v5007_v24  ;;  %v5571_v24 = vld [vmem:[#allocation12 + $0x60] sm:$0xff] }
0x1155   :  { %8046 = vrsqrt.f32 %v5013_v25  ;;  %v5570_v25 = vld [vmem:[#allocation12 + $0x58] sm:$0xff] }
0x1162   :  { %v8047_v27 = vpop.eup %8046 }
0x1163   :  { %v5018_v29 = vrot.slane %v8047_v27, %v8639_v12  ;;  %v5568_v27 = vld [vmem:[#allocation12 + $0x48] sm:$0xff] }
0x1165   :  { %v5019_v30 = vmul.f32 %v5018_v29, %v5012_v28  ;;  %v5567_v28 = vld [vmem:[#allocation12 + $0x40] sm:$0xff]  ;;  %v5566_v29 = vld [vmem:[#allocation12 + $0x38] sm:$0xff] }
0x1167   :  { %vm5020_vm3 = vcmp.gt.f32.partialorder %v5019_v30, 0.0  ;;  %v5021_v31 = vmul.f32 0.2, %v5019_v30 }
0x1169   :  { %v5022_v32 = vsel %vm5020_vm3, %v5019_v30, %v5021_v31  ;;  %v5565_v30 = vld [vmem:[#allocation12 + $0x30] sm:$0xff]  ;;  %v5564_v31 = vld [vmem:[#allocation12 + $0x28] sm:$0xff] }
0x116a   :  { %v5023_v33 = vpack.c.bf16 %v5022_v32, %v5022_v32  ;;  %v5563_v32 = vld [vmem:[#allocation12 + $0x20] sm:$0xff] }
0x116c   :  { %v5029_v34 = vsel %vm2004_vm10, %v5023_v33, 0  ;;  %v5562_v33 = vld [vmem:[#allocation12 + $0x18] sm:$0xff] }
0x116d   :  { %7608 = vmatpush3.bf16.msra.mxu1 %v5029_v34 }
0x116e   :  { %7613 = vmatprep.subr.bf16.mxu1 %v8215_v0 }
0x1170   :  { %7610 = vmatmul.mubr.msk.bf16.vlgmr.msra.gmra.mxu1 %vm2000_vm11, %v5024_v35  ;;  %v5560_v35 = vld [vmem:[#allocation12 + $0x8] sm:$0xff] }
0x1171   :  { %7614 = vmatpush3.bf16.msra.mxu1 %v5029_v34  ;;  %7615 = vmatprep.mubr.msk.bf16.mxu1 %vm8216_vm0, %v8215_v0 }
0x1172   :  { %7619 = vmatprep.subr.bf16.mxu1 %v8215_v0 }
0x1178   :  { %7616 = vmatmul.mubr.msk.bf16.vlgmr.msra.gmra.mxu1 %vm2000_vm11, %v6516_v36  ;;  %v5559_v36 = vld [vmem:[#allocation12] sm:$0xff] }
0x1179   :  { %7620 = vmatpush3.bf16.msra.mxu1 %v5029_v34  ;;  %7621 = vmatprep.mubr.msk.bf16.mxu1 %vm8216_vm0, %v8215_v0 }
0x117a   :  { %7625 = vmatprep.subr.bf16.mxu1 %v8215_v0 }
0x1180   :  { %7622 = vmatmul.mubr.msk.bf16.vlgmr.msra.gmra.mxu1 %vm2000_vm11, %v6518_v37 }
0x1181   :  { %7626 = vmatpush3.bf16.msra.mxu1 %v5029_v34  ;;  %7627 = vmatprep.mubr.msk.bf16.mxu1 %vm8216_vm0, %v8215_v0  ;;  %v5561_v34 = vld [vmem:[#allocation12 + $0x10] sm:$0xff] }
0x1182   :  { %7133 = vmatprep.subr.bf16.mxu1 %v7979_v38 }
0x1188   :  { %7628 = vmatmul.mubr.msk.bf16.vlgmr.msra.gmra.mxu1 %vm2000_vm11, %v6520_v39 }
0x1189   :  { %7134 = vmatpush3.bf16.msra.mxu1 %v7981_v40 }
0x118a   :  { %7135 = vmatprep.subr.bf16.mxu1 %v7983_v42 }
0x118d   :  { %7136 = vmatpush3.bf16.msra.mxu1 %v7985_v44 }
0x118e   :  { %7137 = vmatprep.subr.bf16.mxu1 %v7987_v46 }
0x1191   :  { %7138 = vmatpush3.bf16.msra.mxu1 %v7989_v48 }
0x1192   :  { %7139 = vmatprep.subr.bf16.mxu1 %v7991_v50 }
0x1195   :  { %7140 = vmatpush3.bf16.msra.mxu1 %v7993_v52 }
0x1196   :  { %7141 = vmatprep.subr.bf16.mxu1 %v7994_v53 }
0x1199   :  { %7142 = vmatpush3.bf16.msra.mxu1 %v7995_v54 }
0x119a   :  { %7143 = vmatprep.subr.bf16.mxu1 %v7996_v55 }
0x119d   :  { %7144 = vmatpush3.bf16.msra.mxu1 %v7997_v56 }
0x119e   :  { %7145 = vmatprep.subr.bf16.mxu1 %v7998_v57 }
0x11a1   :  { %7146 = vmatpush3.bf16.msra.mxu1 %v7999_v58 }
0x11a2   :  { %7147 = vmatprep.subr.bf16.mxu1 %v8000_v59 }
0x11a5   :  { %7148 = vmatpush3.bf16.msra.mxu1 %v8001_v60 }
0x11a6   :  { %7666 = vmatprep.subr.bf16.mxu1 %v8215_v0 }
0x1230   :  { %v5065_v61 = vpop.f32.mrf.mxu1 }
0x1231   :  { %v5203_v4 = vpack.c.bf16 %v5065_v61, %v5065_v61 }
0x1232   :  { %v7611_v62 = vpop.f32.mrf.mxu1 }
0x1234   :  { %v5068_v63 = vpop.f32.mrf.mxu1 }
0x1236   :  { %v7612_v1 = vpop.f32.mrf.mxu1 }
0x1237   :  { %v8002_v1 = vld [vmem:[#allocation7 + $0x78] sm:$0xff]  }
0x1238   :  { %v5109_v2 = vpop.f32.mrf.mxu1 }
0x1239   :  { %v5204_v3 = vpack.c.bf16 %v5109_v2, %v5109_v2  ;;  %v8003_v2 = vld [vmem:[#allocation7 + $0x38] sm:$0xff]  }
0x123a   :  { %v7617_v5 = vpop.f32.mrf.mxu1 }
0x123b   :  { %5495 = vmatprep.mubr.bf16.mxu0 %v5204_v3  ;;  %v8004_v3 = vld [vmem:[#allocation7 + $0x70] sm:$0xff]   ;;  %v8006_v5 = vld [vmem:[#allocation7 + $0x68] sm:$0xff]  }
0x123c   :  { %v5112_v7 = vpop.f32.mrf.mxu1  ;;  %5496 = vmatmul.mubr.bf16.vlgmr.msra.gmra.mxu0 %v5203_v4  ;;  %v8005_v4 = vld [vmem:[#allocation7 + $0x30] sm:$0xff]  }
0x123d   :  { %7663 = vmatprep.mubr.msk.f32.mxu0 %vm8216_vm0, %v8215_v0  ;;  %7632 = vmatpush3.msra.mxu0 %v5574_v21  ;;  %v8007_v7 = vld [vmem:[#allocation7 + $0x28] sm:$0xff]  }
0x123e   :  { %v7618_v8 = vpop.f32.mrf.mxu1  ;;  %7633 = vmatprep.subr.mxu0 %v8215_v0 }
0x123f   :  { %7634 = vmatpush3.msra.mxu0 %v5573_v22  ;;  %v8008_v8 = vld [vmem:[#allocation7 + $0x60] sm:$0xff]  }
0x1240   :  { %v5153_v9 = vpop.f32.mrf.mxu1  ;;  %7635 = vmatprep.subr.mxu0 %v8215_v0 }
0x1241   :  { %v5205_v17 = vpack.c.bf16 %v5153_v9, %v5153_v9  ;;  %7636 = vmatpush3.msra.mxu0 %v5572_v23  ;;  %v8009_v9 = vld [vmem:[#allocation7 + $0x20] sm:$0xff]  }
0x1242   :  { %v7623_v11 = vpop.f32.mrf.mxu1  ;;  %7637 = vmatprep.subr.mxu0 %v8215_v0 }
0x1243   :  { %7638 = vmatpush3.msra.mxu0 %v5571_v24  ;;  %v8010_v11 = vld [vmem:[#allocation7 + $0x58] sm:$0xff]  }
0x1244   :  { %v5156_v13 = vpop.f32.mrf.mxu1  ;;  %7639 = vmatprep.subr.mxu0 %v8215_v0 }
0x1245   :  { %7640 = vmatpush3.msra.mxu0 %v5570_v25  ;;  %v8012_v13 = vld [vmem:[#allocation7 + $0x18] sm:$0xff]  }
0x1246   :  { %v7624_v14 = vpop.f32.mrf.mxu1  ;;  %7641 = vmatprep.subr.mxu0 %v8215_v0 }
0x1247   :  { %7642 = vmatpush3.msra.mxu0 %v5569_v26 }
0x1248   :  { %v5197_v15 = vpop.f32.mrf.mxu1  ;;  %7643 = vmatprep.subr.mxu0 %v8215_v0 }
0x1249   :  { %v5206_v16 = vpack.c.bf16 %v5197_v15, %v5197_v15  ;;  %7644 = vmatpush3.msra.mxu0 %v5568_v27 }
0x124a   :  { %v7629_v18 = vpop.f32.mrf.mxu1  ;;  %7645 = vmatprep.subr.mxu0 %v8215_v0 }
0x124b   :  { %5535 = vmatprep.mubr.bf16.mxu1 %v5206_v16  ;;  %7646 = vmatpush3.msra.mxu0 %v5567_v28 }
0x124c   :  { %v5200_v19 = vpop.f32.mrf.mxu1  ;;  %5536 = vmatmul.mubr.bf16.vlgmr.msra.gmra.mxu1 %v5205_v17  ;;  %7647 = vmatprep.subr.mxu0 %v8215_v0 }
0x124d   :  { %7668 = vmatprep.mubr.msk.bf16.mxu1 %vm8216_vm0, %v8215_v0  ;;  %7648 = vmatpush3.msra.mxu0 %v5566_v29 }
0x124e   :  { %v7630_v20 = vpop.f32.mrf.mxu1  ;;  %7649 = vmatprep.subr.mxu0 %v8215_v0 }
0x124f   :  { %7650 = vmatpush3.msra.mxu0 %v5565_v30 }
0x1250   :  { %7651 = vmatprep.subr.mxu0 %v8215_v0 }
0x1251   :  { %7652 = vmatpush3.msra.mxu0 %v5564_v31  ;;  %v5668_v31 = vld [vmem:[%s9335_s9] sm:$0x1] }
0x1252   :  { %7653 = vmatprep.subr.mxu0 %v8215_v0 }
0x1253   :  { %7654 = vmatpush3.msra.mxu0 %v5563_v32  ;;  %v6559_v32 = vld [vmem:[%s9335_s9 + $0x3] sm:$0x1] }
0x1254   :  { %7655 = vmatprep.subr.mxu0 %v8215_v0 }
0x1255   :  { %7656 = vmatpush3.msra.mxu0 %v5562_v33  ;;  %v8013_v33 = vld [vmem:[#allocation7 + $0xb8] sm:$0xff]  }
0x1256   :  { %7657 = vmatprep.subr.mxu0 %v8215_v0 }
0x1257   :  { %7658 = vmatpush3.msra.mxu0 %v5561_v34  ;;  %v8014_v34 = vld [vmem:[#allocation7 + $0x50] sm:$0xff]  }
0x1258   :  { %7659 = vmatprep.subr.mxu0 %v8215_v0 }
0x1259   :  { %7660 = vmatpush3.msra.mxu0 %v5560_v35  ;;  %v8015_v35 = vld [vmem:[#allocation7 + $0xf0] sm:$0xff]  }
0x125a   :  { %7661 = vmatprep.subr.mxu0 %v8215_v0 }
0x125b   :  { %7662 = vmatpush3.msra.mxu0 %v5559_v36  ;;  %v8016_v36 = vld [vmem:[#allocation7 + $0x10] sm:$0xff]  }
0x125c   :  { %7180 = vmatprep.subr.bf16.mxu0 %v8002_v1 }
0x12fc   :  { %v7127_v37 = vpop.f32.mrf.mxu0 }
0x12fe   :  { %v7128_v38 = vpop.f32.mrf.mxu0 }
0x12ff   :  { %v7129_v43 = vadd.f32 %v7128_v38, %v7127_v37  ;;  %v8017_v37 = vld [vmem:[#allocation7 + $0xb0] sm:$0xff]   ;;  %v8018_v38 = vld [vmem:[#allocation7 + $0x48] sm:$0xff]  }
0x1300   :  { %v7130_v39 = vpop.f32.mrf.mxu0 }
0x1301   :  { %v8019_v39 = vld [vmem:[#allocation7 + $0xe8] sm:$0xff]  }
0x1302   :  { %v7131_v40 = vpop.f32.mrf.mxu0 }
0x1303   :  { %v8021_v40 = vld [vmem:[#allocation7 + $0xa8] sm:$0xff]  }
0x130c   :  { %v7149_v41 = vpop.f32.mrf.mxu1 }
0x130e   :  { %v7150_v42 = vpop.f32.mrf.mxu1 }
0x130f   :  { %v7151_v44 = vadd.f32 %v7150_v42, %v7149_v41  ;;  %v8022_v41 = vld [vmem:[#allocation7 + $0x40] sm:$0xff]  }
0x1310   :  { %v7152_v45 = vpop.f32.mrf.mxu1  ;;  %v8023_v42 = vld [vmem:[#allocation7 + $0xe0] sm:$0xff]  }
0x1311   :  { %v5538_v46 = vadd.f32 %v7151_v44, %v7129_v43  ;;  %v8024_v43 = vld [vmem:[#allocation7] sm:$0xff]   ;;  %v8026_v45 = vld [vmem:[#allocation7 + $0xd8] sm:$0xff]  }
0x1312   :  { %v7153_v47 = vpop.f32.mrf.mxu1  ;;  %v8025_v44 = vld [vmem:[#allocation7 + $0xa0] sm:$0xff]  }
0x1313   :  { %v5543_v48 = vsel %vm2523_vm12, %v5538_v46, 0.0  ;;  %v5550_v49 = vmul.f32 %v5538_v46, %v5538_v46  ;;  %v8028_v47 = vld [vmem:[#allocation7 + $0xd0] sm:$0xff]  }
0x1314   :  { %v5544_v50 = vrot.slane %v5543_v48, 4 }
0x1315   :  { %v5551_v51 = vsel %vm2523_vm12, %v5550_v49, 0.0  ;;  %v8030_v49 = vld [vmem:[#allocation7 + $0xc8] sm:$0xff]  }
0x1316   :  { %v5545_v52 = vadd.f32 %v5544_v50, %v5543_v48  ;;  %v5552_v53 = vrot.slane %v5551_v51, 4  ;;  %v8029_v48 = vld [vmem:[#allocation7 + $0x90] sm:$0xff]   ;;  %v8031_v50 = vld [vmem:[#allocation7 + $0x88] sm:$0xff]  }
0x1318   :  { %v5546_v54 = vrot.slane %v5545_v52, 2  ;;  %v5553_v55 = vadd.f32 %v5552_v53, %v5551_v51  ;;  %v8032_v51 = vld [vmem:[#allocation7 + $0xc0] sm:$0xff]  }
0x131a   :  { %v5547_v56 = vadd.f32 %v5546_v54, %v5545_v52  ;;  %v5554_v57 = vrot.slane %v5553_v55, 2  ;;  %v8033_v52 = vld [vmem:[#allocation7 + $0x80] sm:$0xff]  }
0x131c   :  { %v5548_v58 = vrot.slane %v5547_v56, 1  ;;  %v5555_v59 = vadd.f32 %v5554_v57, %v5553_v55 }
0x131e   :  { %v5556_v60 = vrot.slane %v5555_v59, 1  ;;  %v5549_v61 = vadd.f32 %v5548_v58, %v5547_v56 }
0x1320   :  { %v5557_v62 = vadd.f32 %v5556_v60, %v5555_v59 }
0x1322   :  { %v5558_v63 = vsel %vm1239_vm5, %v5549_v61, %v5557_v62 }
0x1323   :  { %7664 = vmatmul.mubr.f32.vlgmr.msra.gmra.mxu0 %v5558_v63 }
0x1324   :  { %7181 = vmatpush3.bf16.msra.mxu0 %v8003_v2 }
0x1325   :  { %7182 = vmatprep.subr.bf16.mxu0 %v8004_v3 }
0x1328   :  { %7183 = vmatpush3.bf16.msra.mxu0 %v8005_v4 }
0x1329   :  { %7184 = vmatprep.subr.bf16.mxu0 %v8006_v5 }
0x132c   :  { %7185 = vmatpush3.bf16.msra.mxu0 %v8007_v7 }
0x132d   :  { %7186 = vmatprep.subr.bf16.mxu0 %v8008_v8 }
0x1330   :  { %7187 = vmatpush3.bf16.msra.mxu0 %v8009_v9 }
0x1331   :  { %7188 = vmatprep.subr.bf16.mxu0 %v8010_v11 }
0x1334   :  { %7189 = vmatpush3.bf16.msra.mxu0 %v8012_v13 }
0x1335   :  { %7190 = vmatprep.subr.bf16.mxu0 %v8014_v34 }
0x1338   :  { %7191 = vmatpush3.bf16.msra.mxu0 %v8016_v36 }
0x1339   :  { %7192 = vmatprep.subr.bf16.mxu0 %v8018_v38 }
0x13e3   :  { %v5641_v14 = vpop.f32.mrf.mxu0 }
0x13e4   :  { %v5645_v15 = vmul.f32 0.11111111, %v5641_v14 }
0x13e5   :  { %v7665_v16 = vpop.f32.mrf.mxu0 }
0x13e6   :  { %v5646_v17 = vmul.f32 %v5645_v15, %v5645_v15  ;;  %v5655_v22 = vrot.slane %v5645_v15, %v8636_v10  ;;  %v6555_v10 = vld [vmem:[%s9335_s9 + $0x1] sm:$0x1] }
0x13e8   :  { %v5648_v18 = vrot.slane %v5646_v17, 7  ;;  %v5656_v24 = vsub.f32 %v5538_v46, %v5655_v22  ;;  %v8027_v46 = vld [vmem:[#allocation7 + $0x98] sm:$0xff]  }
0x13ea   :  { %v5650_v19 = vsub.f32 %v5645_v15, %v5648_v18 }
0x13ec   :  { %v5651_v20 = vmax.f32 %v5650_v19, 0.0 }
0x13ee   :  { %v5657_v21 = vadd.f32 1e-05, %v5651_v20 }
0x13f0   :  { %8048 = vrsqrt.f32 %v5657_v21 }
0x13fd   :  { %v8049_v23 = vpop.eup %8048 }
0x13fe   :  { %v5662_v25 = vrot.slane %v8049_v23, %v8639_v12  ;;  %v6557_v12 = vld [vmem:[%s9335_s9 + $0x2] sm:$0x1] }
0x1400   :  { %v5663_v26 = vmul.f32 %v5662_v25, %v5656_v24 }
0x1402   :  { %v5665_v27 = vmul.f32 0.2, %v5663_v26  ;;  %vm5664_vm4 = vcmp.gt.f32.partialorder %v5663_v26, 0.0 }
0x1404   :  { %v5666_v28 = vsel %vm5664_vm4, %v5663_v26, %v5665_v27 }
0x1405   :  { %v5667_v29 = vpack.c.bf16 %v5666_v28, %v5666_v28 }
0x1407   :  { %v5673_v30 = vand.u32 %v5667_v29, %v8802_v6  ;;  %v8011_v6 = vld [vmem:[#allocation7 + $0xf8] sm:$0xff]  }
0x1409   :  { %7667 = vmatpush3.bf16.msra.mxu1 %v5673_v30 }
0x140a   :  { %7672 = vmatprep.subr.bf16.mxu1 %v8215_v0 }
0x140c   :  { %7669 = vmatmul.mubr.msk.bf16.vlgmr.msra.gmra.mxu1 %vm2650_vm14, %v5668_v31 }
0x140d   :  { %7673 = vmatpush3.bf16.msra.mxu1 %v5673_v30  ;;  %7674 = vmatprep.mubr.msk.bf16.mxu1 %vm8216_vm0, %v8215_v0 }
0x140e   :  { %7678 = vmatprep.subr.bf16.mxu1 %v8215_v0 }
0x1414   :  { %7675 = vmatmul.mubr.msk.bf16.vlgmr.msra.gmra.mxu1 %vm2650_vm14, %v6555_v10 }
0x1415   :  { %7679 = vmatpush3.bf16.msra.mxu1 %v5673_v30  ;;  %7680 = vmatprep.mubr.msk.bf16.mxu1 %vm8216_vm0, %v8215_v0 }
0x1416   :  { %7684 = vmatprep.subr.bf16.mxu1 %v8215_v0 }
0x141c   :  { %7681 = vmatmul.mubr.msk.bf16.vlgmr.msra.gmra.mxu1 %vm2650_vm14, %v6557_v12 }
0x141d   :  { %7685 = vmatpush3.bf16.msra.mxu1 %v5673_v30  ;;  %7686 = vmatprep.mubr.msk.bf16.mxu1 %vm8216_vm0, %v8215_v0  ;;  %v8020_v0 = vld [vmem:[#allocation7 + $0x8] sm:$0xff]  }
0x141e   :  { %7202 = vmatprep.subr.bf16.mxu1 %v8011_v6  ;;  %7193 = vmatpush3.bf16.msra.mxu0 %v8020_v0 }
0x141f   :  { %7194 = vmatprep.subr.bf16.mxu0 %v8022_v41 }
0x1422   :  { %7195 = vmatpush3.bf16.msra.mxu0 %v8024_v43 }
0x1424   :  { %7687 = vmatmul.mubr.msk.bf16.vlgmr.msra.gmra.mxu1 %vm2650_vm14, %v6559_v32 }
0x1425   :  { %7203 = vmatpush3.bf16.msra.mxu1 %v8013_v33 }
0x1426   :  { %7204 = vmatprep.subr.bf16.mxu1 %v8015_v35 }
0x1429   :  { %7205 = vmatpush3.bf16.msra.mxu1 %v8017_v37 }
0x142a   :  { %7206 = vmatprep.subr.bf16.mxu1 %v8019_v39 }
0x142d   :  { %7207 = vmatpush3.bf16.msra.mxu1 %v8021_v40 }
0x142e   :  { %7208 = vmatprep.subr.bf16.mxu1 %v8023_v42 }
0x1431   :  { %7209 = vmatpush3.bf16.msra.mxu1 %v8025_v44 }
0x1432   :  { %7210 = vmatprep.subr.bf16.mxu1 %v8026_v45 }
0x1435   :  { %7211 = vmatpush3.bf16.msra.mxu1 %v8027_v46 }
0x1436   :  { %7212 = vmatprep.subr.bf16.mxu1 %v8028_v47 }
0x1439   :  { %7213 = vmatpush3.bf16.msra.mxu1 %v8029_v48 }
0x143a   :  { %7214 = vmatprep.subr.bf16.mxu1 %v8030_v49 }
0x143d   :  { %7215 = vmatpush3.bf16.msra.mxu1 %v8031_v50 }
0x143e   :  { %7216 = vmatprep.subr.bf16.mxu1 %v8032_v51 }
0x1441   :  { %7217 = vmatpush3.bf16.msra.mxu1 %v8033_v52 }
0x14cc   :  { %v5709_v53 = vpop.f32.mrf.mxu1 }
0x14cd   :  { %v5847_v59 = vpack.c.bf16 %v5709_v53, %v5709_v53 }
0x14ce   :  { %v7670_v54 = vpop.f32.mrf.mxu1 }
0x14d0   :  { %v5712_v55 = vpop.f32.mrf.mxu1 }
0x14d2   :  { %v7671_v56 = vpop.f32.mrf.mxu1 }
0x14d4   :  { %v5753_v57 = vpop.f32.mrf.mxu1 }
0x14d5   :  { %v5848_v58 = vpack.c.bf16 %v5753_v57, %v5753_v57 }
0x14d6   :  { %v7676_v60 = vpop.f32.mrf.mxu1 }
0x14d7   :  { %6139 = vmatprep.mubr.bf16.mxu0 %v5848_v58 }
0x14d8   :  { %v5756_v61 = vpop.f32.mrf.mxu1  ;;  %6140 = vmatmul.mubr.bf16.vlgmr.msra.gmra.mxu0 %v5847_v59 }
0x14da   :  { %v7677_v62 = vpop.f32.mrf.mxu1 }
0x14dc   :  { %v5797_v63 = vpop.f32.mrf.mxu1 }
0x14dd   :  { %v5849_v7 = vpack.c.bf16 %v5797_v63, %v5797_v63 }
0x14de   :  { %v7682_v1 = vpop.f32.mrf.mxu1 }
0x14e0   :  { %v5800_v2 = vpop.f32.mrf.mxu1 }
0x14e2   :  { %v7683_v3 = vpop.f32.mrf.mxu1 }
0x14e4   :  { %v5841_v4 = vpop.f32.mrf.mxu1 }
0x14e5   :  { %v5850_v5 = vpack.c.bf16 %v5841_v4, %v5841_v4 }
0x14e6   :  { %v7688_v8 = vpop.f32.mrf.mxu1 }
0x14e7   :  { %6179 = vmatprep.mubr.bf16.mxu1 %v5850_v5 }
0x14e8   :  { %v5844_v9 = vpop.f32.mrf.mxu1  ;;  %6180 = vmatmul.mubr.bf16.vlgmr.msra.gmra.mxu1 %v5849_v7 }
0x14ea   :  { %v7689_v11 = vpop.f32.mrf.mxu1 }
0x1598   :  { %v7196_v13 = vpop.f32.mrf.mxu0 }
0x159a   :  { %v7197_v14 = vpop.f32.mrf.mxu0 }
0x159b   :  { %v7198_v19 = vadd.f32 %v7197_v14, %v7196_v13 }
0x159c   :  { %v7199_v15 = vpop.f32.mrf.mxu0 }
0x159e   :  { %v7200_v16 = vpop.f32.mrf.mxu0 }
0x15a8   :  { %v7218_v17 = vpop.f32.mrf.mxu1 }
0x15aa   :  { %v7219_v18 = vpop.f32.mrf.mxu1 }
0x15ab   :  { %v7220_v20 = vadd.f32 %v7219_v18, %v7218_v17 }
0x15ac   :  { %v7221_v21 = vpop.f32.mrf.mxu1 }
0x15ad   :  { %v6182_v22 = vadd.f32 %v7220_v20, %v7198_v19 }
0x15ae   :  { %v7222_v23 = vpop.f32.mrf.mxu1 }
0x15af   :  { %v6187_v24 = vsub.f32 0.0, %v6182_v22 }
0x15b1   :  { %v6188_v25 = vmul.f32 1.442695, %v6187_v24 }
0x15b3   :  { %8050 = vpow2.f32 %v6188_v25 }
0x15c0   :  { %v8051_v26 = vpop.eup %8050 }
0x15c1   :  { %v6190_v27 = vadd.f32 1.0, %v8051_v26 }
0x15c3   :  { %8052 = vrcp.f32 %v6190_v27 }
0x15d0   :  { %v8053_v28 = vpop.eup %8052 }
0x15d1   :  { %6593 = vst [vmem:[%s9340_s14 + $0x2] sm:$0x3] %v8053_v28 }
0x15d2   :  { %6199 = vsyncpa [#allocation3], 1 }
0x15d3   :  { %6200 = vsyncpa [#allocation5], 1 }
0x15d4   :  { %6201 = vsyncpa [#allocation8], 1 }
0x15d5   :  { %6202 = vsyncpa [#allocation11], 1 }

</bundles_post_ra>
